<compile_context>
chip_gen: v7x
topology: tpu7x:2x2x1
jax: 0.10.0
libtpu: 0.0.40
codegen_flags: <defaults>
</compile_context>

<pallas_src>
import jax
import jax.numpy as jnp
from jax.experimental import pallas as pl
from jax.experimental.pallas import tpu as pltpu

EMBEDDING_DIM = 32      # opt.embedding_dim (NLP embedding input width)
RL_EMBEDDING_DIM = 16   # opt.rl_embedding_dim
STATE_DIM = 16
ACTION_DIM = 8
MORE_EMBEDDING = True   # opt.more_embedding (kernel assumes True)


def _round_up(x, m):
    return ((x + m - 1) // m) * m


def _relu(x):
    return jnp.maximum(x, 0.0)


# -----------------------------------------------------------------------------
# Kernel
# -----------------------------------------------------------------------------
def critic_kernel(ae_ref, sa_ref,
                  ff_w0_ref, w256_ref, nl_w0_ref, nl_w1_ref, nl_w2_ref,
                  fc1_w_ref, fc2_we_ref, fc2_wq_ref, fc2_w1_ref,
                  fc3_we_ref, fc3_wq_ref, fc3_w1_ref, fc3_w2_ref, fc3_w3t_ref,
                  expand_ref, reduce_ref, bias_ref, q_ref):
    f32 = jnp.float32
    bf16 = jnp.bfloat16
    E = RL_EMBEDDING_DIM

    def bias(i, n):
        return bias_ref[i:i + 1, :n]                      # (1, n) f32

    def lin(x_bf, w_bf, bi, n):
        # bf16 MXU operands, f32 accumulation; bias add stays f32.
        return jnp.dot(x_bf, w_bf, preferred_element_type=f32) + bias(bi, n)

    def lin_relu(x_bf, w_bf, bi, n):
        # ReLU in f32, then carry the activation as bf16 (identical numerics
        # to casting at the next dot, half the vreg/VMEM traffic).
        return _relu(lin(x_bf, w_bf, bi, n)).astype(bf16)

    ae = ae_ref[...].astype(bf16)                         # (Bt, 32)
    sa40 = sa_ref[...]                                    # (Bt, 40) f32, cols 0:16 zero

    # feature_fc: 32 -> 512 -> 256 -> 256 -> 256 (no ReLU after last layer)
    h = lin_relu(ae, ff_w0_ref[...], 0, 512)
    h = lin_relu(h, w256_ref[0:512, :], 1, 256)
    h = lin_relu(h, w256_ref[512:768, :], 2, 256)
    feat_f32 = lin(h, w256_ref[768:1024, :], 3, 256)      # (Bt, 256) f32
    feat = feat_f32.astype(bf16)

    # nlp_fc: 256 -> 128 -> 64 -> E
    e = lin_relu(feat, nl_w0_ref[...], 4, 128)
    e = lin_relu(e, nl_w1_ref[...], 5, 64)
    emb = lin(e, nl_w2_ref[...], 6, E)                    # (Bt, 16) f32

    # stn: 256 -> 256 -> 256 -> E*E
    s = lin_relu(feat, w256_ref[1024:1280, :], 7, 256)
    s = lin_relu(s, w256_ref[1280:1536, :], 8, 256)
    stn = lin(s, w256_ref[1536:1792, :], 9, 256)          # (Bt, 256) f32

    # bmm(emb.unsqueeze(1), stn.view(B,E,E)).squeeze(1):
    #   emb_t[b, f] = sum_e emb[b, e] * stn[b, e*E + f]
    # done as two precomputed 0/1 mask matmuls (bf16 MXU, f32 accumulate).
    rep = jnp.dot(emb.astype(bf16), expand_ref[...],
                  preferred_element_type=f32)             # rep[b, e*E+f] = emb[b, e]
    prod = rep * stn                                      # (Bt, 256) f32
    emb_t40 = jnp.dot(prod.astype(bf16), reduce_ref[...],
                      preferred_element_type=f32)         # (Bt, 40), cols 16:40 zero

    emb_bf = emb_t40[:, :E].astype(bf16)                  # (Bt, 16)

    # fc1 over cat([emb_t, state, action], 1): single fused K=40 matmul.
    # sa40 already holds [0 | state | action]; emb_t lands in the first 16 lanes.
    q = lin_relu((emb_t40 + sa40).astype(bf16), fc1_w_ref[...], 10, 400)

    # more_embedding: fc2 over cat([emb_t, q], 1); outer F.relu(fc2(...))
    q = _relu(jnp.dot(emb_bf, fc2_we_ref[...], preferred_element_type=f32)
              + jnp.dot(q, fc2_wq_ref[...], preferred_element_type=f32)
              + bias(11, 300)).astype(bf16)
    q = lin_relu(q, fc2_w1_ref[...], 12, 200)             # (Bt, 200)

    # more_embedding: fc3 over cat([emb_t, q], 1); no ReLU after last layer
    q = _relu(jnp.dot(emb_bf, fc3_we_ref[...], preferred_element_type=f32)
              + jnp.dot(q, fc3_wq_ref[...], preferred_element_type=f32)
              + bias(13, 128)).astype(bf16)
    q = lin_relu(q, fc3_w1_ref[...], 14, 64)
    q32 = _relu(lin(q, fc3_w2_ref[...], 15, 32))          # (Bt, 32) f32 (feeds f32 head)

    # Final 32 -> 1: VPU multiply + lane reduce (skip an N=1 MXU pass).
    qv = jnp.sum(q32 * fc3_w3t_ref[...], axis=1, keepdims=True) + bias(16, 1)
    q_ref[...] = qv.astype(q_ref.dtype)


# -----------------------------------------------------------------------------
# Wrapper
# -----------------------------------------------------------------------------
def _choose_tiling(B, tile_b):
    """Pick (tile_rows, padded_batch) bounding padding waste; >=2 tiles for large B."""
    tile_b = max(8, _round_up(tile_b, 8))
    b8 = _round_up(max(B, 1), 8)
    n = -(-b8 // tile_b)                       # number of batch tiles
    if n == 1 and b8 >= 128:
        n = 2                                   # let v7x's 2nd TensorCore engage
    tb = _round_up(-(-b8 // n), 8)
    return tb, tb * n


def critic_forward(action_embedding, state, action, packed, *, tile_b=256):
    B = action_embedding.shape[0]
    E = RL_EMBEDDING_DIM
    sa_dim = E + STATE_DIM + ACTION_DIM                    # 40

    # [0 | state | action] so fc1 can run as one K=40 dot inside the kernel.
    sa40 = jnp.concatenate(
        [jnp.zeros((B, E), jnp.float32),
         state.astype(jnp.float32),
         action.astype(jnp.float32)], axis=1)

    tb, b_pad = _choose_tiling(B, tile_b)
    ae = action_embedding.astype(jnp.float32)
    if b_pad != B:
        ae = jnp.pad(ae, ((0, b_pad - B), (0, 0)))
        sa40 = jnp.pad(sa40, ((0, b_pad - B), (0, 0)))

    act_specs = [
        pl.BlockSpec((tb, EMBEDDING_DIM), lambda i: (i, 0)),
        pl.BlockSpec((tb, sa_dim), lambda i: (i, 0)),
    ]
    # Weights / masks / biases: full-array blocks with constant index maps ->
    # VMEM-resident across all batch tiles (DMA'd once per call).
    w_specs = [pl.BlockSpec(p.shape, lambda i: (0, 0)) for p in packed]

    out = pl.pallas_call(
        critic_kernel,
        out_shape=jax.ShapeDtypeStruct((b_pad, 1), jnp.float32),
        grid_spec=pltpu.PrefetchScalarGridSpec(
            num_scalar_prefetch=0,
            grid=(b_pad // tb,),
            in_specs=act_specs + w_specs,
            out_specs=pl.BlockSpec((tb, 1), lambda i: (i, 0)),
        ),
        compiler_params=pltpu.CompilerParams(
            dimension_semantics=("parallel",),
            vmem_limit_bytes=48 * 1024 * 1024),
    )(ae, sa40, *packed)
    return out[:B]


# -----------------------------------------------------------------------------
# Parameters
# -----------------------------------------------------------------------------
def _init_linear(key, fan_in, fan_out):
    # Deterministic init mimicking PyTorch's default Linear init.
    kw, kb = jax.random.split(key)
    bound = 1.0 / (float(fan_in) ** 0.5)
    w = jax.random.uniform(kw, (fan_in, fan_out), jnp.float32, -bound, bound)
    b = jax.random.uniform(kb, (fan_out,), jnp.float32, -bound, bound)
    return w, b


def make_params(key):
    E = RL_EMBEDDING_DIM
    dims = [
        (EMBEDDING_DIM, 512), (512, 256), (256, 256), (256, 256),   # feature_fc
        (256, 128), (128, 64), (64, E),                             # nlp_fc
        (256, 256), (256, 256), (256, E * E),                       # stn
        (E + STATE_DIM + ACTION_DIM, 400),                          # fc1
        (400 + E, 300), (300, 200),                                 # fc2
        (200 + E, 128), (128, 64), (64, 32), (32, 1),               # fc3
    ]
    keys = jax.random.split(key, len(dims))
    return [_init_linear(k, fi, fo) for k, (fi, fo) in zip(keys, dims)]


def pack_params(raw):
    """Pack raw f32 (w, b) pairs into the kernel's bf16/f32 blobs."""
    (ff0, ff1, ff2, ff3, nl0, nl1, nl2, sn0, sn1, sn2,
     fc1, fc2a, fc2b, fc3a, fc3b, fc3c, fc3d) = raw
    bf16 = jnp.bfloat16
    E = RL_EMBEDDING_DIM

    def w(p):
        return p[0].astype(bf16)

    ff_w0 = w(ff0)
    # All 256-column weights in one contiguous blob (one DMA descriptor).
    wblob256 = jnp.concatenate(
        [w(ff1), w(ff2), w(ff3), w(sn0), w(sn1), w(sn2)], axis=0)   # (1792, 256)
    nl_w0, nl_w1, nl_w2 = w(nl0), w(nl1), w(nl2)
    fc1_w = w(fc1)
    # fc2/fc3 concat weights split into emb-side / q-side pieces (no ragged
    # in-kernel ref slicing).
    fc2_we, fc2_wq = w(fc2a)[:E, :], w(fc2a)[E:, :]                  # (16,300), (400,300)
    fc2_w1 = w(fc2b)
    fc3_we, fc3_wq = w(fc3a)[:E, :], w(fc3a)[E:, :]                  # (16,128), (200,128)
    fc3_w1, fc3_w2 = w(fc3b), w(fc3c)
    fc3_w3t = fc3d[0].T.astype(jnp.float32)                          # (1, 32), f32 head

    # bmm expand/reduce masks, precomputed once (0/1 values are exact in bf16).
    EE = E * E
    sa_dim = E + STATE_DIM + ACTION_DIM
    row = jnp.arange(E)[:, None]
    col = jnp.arange(EE)[None, :]
    expand_m = (col // E == row).astype(bf16)                        # (16, 256)
    row2 = jnp.arange(EE)[:, None]
    col2 = jnp.arange(sa_dim)[None, :]
    reduce_m = (row2 % E == col2).astype(bf16)                       # (256, 40); cols>=16 zero

    # All biases in one f32 blob (row i = layer i, padded to 512 lanes).
    biases = jnp.zeros((17, 512), jnp.float32)
    for i, (_, b) in enumerate(raw):
        biases = biases.at[i, :b.shape[0]].set(b)

    return (ff_w0, wblob256, nl_w0, nl_w1, nl_w2, fc1_w,
            fc2_we, fc2_wq, fc2_w1, fc3_we, fc3_wq, fc3_w1, fc3_w2, fc3_w3t,
            expand_m, reduce_m, biases)


# -----------------------------------------------------------------------------
# Pure-JAX reference (mirrors torch forward; same bf16-weight numerics)
# -----------------------------------------------------------------------------
def critic_reference(action_embedding, state, action, raw):
    (ff0, ff1, ff2, ff3, nl0, nl1, nl2, sn0, sn1, sn2,
     fc1, fc2a, fc2b, fc3a, fc3b, fc3c, fc3d) = raw

    def lin(x, p):
        w, b = p
        return jnp.dot(x.astype(jnp.bfloat16), w.astype(jnp.bfloat16),
                       preferred_element_type=jnp.float32) + b

    feat = _relu(lin(action_embedding, ff0))
    feat = _relu(lin(feat, ff1))
    feat = _relu(lin(feat, ff2))
    feat = lin(feat, ff3)

    emb = _relu(lin(feat, nl0))
    emb = _relu(lin(emb, nl1))
    emb = lin(emb, nl2)

    stn = _relu(lin(feat, sn0))
    stn = _relu(lin(stn, sn1))
    stn = lin(stn, sn2)

    B, E = emb.shape
    # Mirror the kernel's bf16 rounding of emb feeding the bmm; stn stays f32.
    emb_r = emb.astype(jnp.bfloat16).astype(jnp.float32)
    emb_t = jnp.einsum('be,bef->bf', emb_r, stn.reshape(B, E, E))

    sa = jnp.concatenate([emb_t, state, action], axis=1)
    q = _relu(lin(sa, fc1))
    q = _relu(lin(jnp.concatenate([emb_t, q], axis=1), fc2a))
    q = _relu(lin(q, fc2b))
    q = _relu(lin(jnp.concatenate([emb_t, q], axis=1), fc3a))
    q = _relu(lin(q, fc3b))
    q = _relu(lin(q, fc3c))
    # Final 32->1 layer kept in f32 (kernel computes it on the VPU in f32).
    q = jnp.dot(q, fc3d[0], preferred_element_type=jnp.float32) + fc3d[1]
    return q


if __name__ == "__main__":
    key = jax.random.PRNGKey(0)
    k_ae, k_st, k_ac, k_p = jax.random.split(key, 4)
    B = 8
    action_embedding = jax.random.normal(k_ae, (B, EMBEDDING_DIM), jnp.float32)
    state = jax.random.normal(k_st, (B, STATE_DIM), jnp.float32)
    action = jax.random.normal(k_ac, (B, ACTION_DIM), jnp.float32)

    raw = make_params(k_p)
    packed = pack_params(raw)

    q = jax.block_until_ready(critic_forward(action_embedding, state, action, packed))
    q_ref = critic_reference(action_embedding, state, action, raw)
    assert q.shape == (B, 1), q.shape
    max_err = float(jnp.max(jnp.abs(q - q_ref)))
    assert max_err < 2e-3, f"mismatch vs reference: {max_err}"

    # Larger batch exercising the multi-tile grid, resident weights and padding.
    B2 = 200
    k2a, k2s, k2c = jax.random.split(jax.random.PRNGKey(1), 3)
    ae2 = jax.random.normal(k2a, (B2, EMBEDDING_DIM), jnp.float32)
    st2 = jax.random.normal(k2s, (B2, STATE_DIM), jnp.float32)
    ac2 = jax.random.normal(k2c, (B2, ACTION_DIM), jnp.float32)
    q2 = jax.block_until_ready(critic_forward(ae2, st2, ac2, packed))
    q2_ref = critic_reference(ae2, st2, ac2, raw)
    assert q2.shape == (B2, 1), q2.shape
    max_err2 = float(jnp.max(jnp.abs(q2 - q2_ref)))
    assert max_err2 < 2e-3, f"mismatch vs reference (batched): {max_err2}"

    print("KERNEL_OK")
</pallas_src>

<mosaic_0001>
module attributes {stable_mosaic.version = 11 : i64} {
  func.func @critic_kernel(%arg0: i32, %arg1: memref<8x32xf32, #tpu.memory_space<vmem>>, %arg2: memref<8x40xf32, #tpu.memory_space<vmem>>, %arg3: memref<32x512xbf16, #tpu.memory_space<vmem>>, %arg4: memref<1792x256xbf16, #tpu.memory_space<vmem>>, %arg5: memref<256x128xbf16, #tpu.memory_space<vmem>>, %arg6: memref<128x64xbf16, #tpu.memory_space<vmem>>, %arg7: memref<64x16xbf16, #tpu.memory_space<vmem>>, %arg8: memref<40x400xbf16, #tpu.memory_space<vmem>>, %arg9: memref<16x300xbf16, #tpu.memory_space<vmem>>, %arg10: memref<400x300xbf16, #tpu.memory_space<vmem>>, %arg11: memref<300x200xbf16, #tpu.memory_space<vmem>>, %arg12: memref<16x128xbf16, #tpu.memory_space<vmem>>, %arg13: memref<200x128xbf16, #tpu.memory_space<vmem>>, %arg14: memref<128x64xbf16, #tpu.memory_space<vmem>>, %arg15: memref<64x32xbf16, #tpu.memory_space<vmem>>, %arg16: memref<1x32xf32, #tpu.memory_space<vmem>>, %arg17: memref<16x256xbf16, #tpu.memory_space<vmem>>, %arg18: memref<256x40xbf16, #tpu.memory_space<vmem>>, %arg19: memref<17x512xf32, #tpu.memory_space<vmem>>, %arg20: memref<8x1xf32, #tpu.memory_space<vmem>>) attributes {dimension_semantics = [#tpu.dimension_semantics<parallel>], iteration_bounds = array<i64: 1>, scalar_prefetch = 0 : i64, scratch_operands = 0 : i64, tpu.core_type = #tpu.core_type<tc>, window_params = [{transform_indices = @transform_0, window_bounds = array<i64: 8, 32>}, {transform_indices = @transform_1, window_bounds = array<i64: 8, 40>}, {pipeline_mode = #tpu.pipeline_mode<synchronous>, transform_indices = @transform_2, window_bounds = array<i64: 32, 512>}, {pipeline_mode = #tpu.pipeline_mode<synchronous>, transform_indices = @transform_3, window_bounds = array<i64: 1792, 256>}, {pipeline_mode = #tpu.pipeline_mode<synchronous>, transform_indices = @transform_4, window_bounds = array<i64: 256, 128>}, {pipeline_mode = #tpu.pipeline_mode<synchronous>, transform_indices = @transform_5, window_bounds = array<i64: 128, 64>}, {pipeline_mode = #tpu.pipeline_mode<synchronous>, transform_indices = @transform_6, window_bounds = array<i64: 64, 16>}, {pipeline_mode = #tpu.pipeline_mode<synchronous>, transform_indices = @transform_7, window_bounds = array<i64: 40, 400>}, {pipeline_mode = #tpu.pipeline_mode<synchronous>, transform_indices = @transform_8, window_bounds = array<i64: 16, 300>}, {pipeline_mode = #tpu.pipeline_mode<synchronous>, transform_indices = @transform_9, window_bounds = array<i64: 400, 300>}, {pipeline_mode = #tpu.pipeline_mode<synchronous>, transform_indices = @transform_10, window_bounds = array<i64: 300, 200>}, {pipeline_mode = #tpu.pipeline_mode<synchronous>, transform_indices = @transform_11, window_bounds = array<i64: 16, 128>}, {pipeline_mode = #tpu.pipeline_mode<synchronous>, transform_indices = @transform_12, window_bounds = array<i64: 200, 128>}, {pipeline_mode = #tpu.pipeline_mode<synchronous>, transform_indices = @transform_13, window_bounds = array<i64: 128, 64>}, {pipeline_mode = #tpu.pipeline_mode<synchronous>, transform_indices = @transform_14, window_bounds = array<i64: 64, 32>}, {pipeline_mode = #tpu.pipeline_mode<synchronous>, transform_indices = @transform_15, window_bounds = array<i64: 1, 32>}, {pipeline_mode = #tpu.pipeline_mode<synchronous>, transform_indices = @transform_16, window_bounds = array<i64: 16, 256>}, {pipeline_mode = #tpu.pipeline_mode<synchronous>, transform_indices = @transform_17, window_bounds = array<i64: 256, 40>}, {pipeline_mode = #tpu.pipeline_mode<synchronous>, transform_indices = @transform_18, window_bounds = array<i64: 17, 512>}, {transform_indices = @transform_19, window_bounds = array<i64: 8, 1>}]} {
    %c0 = arith.constant 0 : index
    %c0_0 = arith.constant 0 : index
    %0 = vector.load %arg1[%c0, %c0_0] : memref<8x32xf32, #tpu.memory_space<vmem>>, vector<8x32xf32>
    %1 = arith.truncf %0 : vector<8x32xf32> to vector<8x32xbf16>
    %c0_1 = arith.constant 0 : index
    %c0_2 = arith.constant 0 : index
    %2 = vector.load %arg2[%c0_1, %c0_2] : memref<8x40xf32, #tpu.memory_space<vmem>>, vector<8x40xf32>
    %c0_3 = arith.constant 0 : index
    %c0_4 = arith.constant 0 : index
    %3 = vector.load %arg3[%c0_3, %c0_4] : memref<32x512xbf16, #tpu.memory_space<vmem>>, vector<32x512xbf16>
    %cst = arith.constant dense<0.000000e+00> : vector<8x512xf32>
    %4 = tpu.matmul %1, %3, %cst {dimension_numbers = #tpu.dot_dimension_numbers<[1], [0], [0], [1], [0, 0, 1, 1], [], []>} : vector<8x32xbf16>, vector<32x512xbf16>, vector<8x512xf32> -> vector<8x512xf32>
    %c0_5 = arith.constant 0 : index
    %c0_6 = arith.constant 0 : index
    %5 = vector.load %arg19[%c0_5, %c0_6] : memref<17x512xf32, #tpu.memory_space<vmem>>, vector<1x512xf32>
    %6 = vector.broadcast %5 : vector<1x512xf32> to vector<8x512xf32>
    %7 = arith.addf %4, %6 : vector<8x512xf32>
    %cst_7 = arith.constant 0.000000e+00 : f32
    %8 = vector.broadcast %cst_7 : f32 to vector<8x512xf32>
    %9 = arith.maximumf %7, %8 : vector<8x512xf32>
    %10 = arith.truncf %9 : vector<8x512xf32> to vector<8x512xbf16>
    %c0_8 = arith.constant 0 : index
    %c0_9 = arith.constant 0 : index
    %11 = vector.load %arg4[%c0_8, %c0_9] : memref<1792x256xbf16, #tpu.memory_space<vmem>>, vector<512x256xbf16>
    %cst_10 = arith.constant dense<0.000000e+00> : vector<8x256xf32>
    %12 = tpu.matmul %10, %11, %cst_10 {dimension_numbers = #tpu.dot_dimension_numbers<[1], [0], [0], [1], [0, 0, 1, 1], [], []>} : vector<8x512xbf16>, vector<512x256xbf16>, vector<8x256xf32> -> vector<8x256xf32>
    %c1 = arith.constant 1 : index
    %c0_11 = arith.constant 0 : index
    %13 = vector.load %arg19[%c1, %c0_11] : memref<17x512xf32, #tpu.memory_space<vmem>>, vector<1x256xf32>
    %14 = vector.broadcast %13 : vector<1x256xf32> to vector<8x256xf32>
    %15 = arith.addf %12, %14 : vector<8x256xf32>
    %cst_12 = arith.constant 0.000000e+00 : f32
    %16 = vector.broadcast %cst_12 : f32 to vector<8x256xf32>
    %17 = arith.maximumf %15, %16 : vector<8x256xf32>
    %18 = arith.truncf %17 : vector<8x256xf32> to vector<8x256xbf16>
    %c512 = arith.constant 512 : index
    %c0_13 = arith.constant 0 : index
    %19 = vector.load %arg4[%c512, %c0_13] : memref<1792x256xbf16, #tpu.memory_space<vmem>>, vector<256x256xbf16>
    %cst_14 = arith.constant dense<0.000000e+00> : vector<8x256xf32>
    %20 = tpu.matmul %18, %19, %cst_14 {dimension_numbers = #tpu.dot_dimension_numbers<[1], [0], [0], [1], [0, 0, 1, 1], [], []>} : vector<8x256xbf16>, vector<256x256xbf16>, vector<8x256xf32> -> vector<8x256xf32>
    %c2 = arith.constant 2 : index
    %c0_15 = arith.constant 0 : index
    %21 = vector.load %arg19[%c2, %c0_15] : memref<17x512xf32, #tpu.memory_space<vmem>>, vector<1x256xf32>
    %22 = vector.broadcast %21 : vector<1x256xf32> to vector<8x256xf32>
    %23 = arith.addf %20, %22 : vector<8x256xf32>
    %cst_16 = arith.constant 0.000000e+00 : f32
    %24 = vector.broadcast %cst_16 : f32 to vector<8x256xf32>
    %25 = arith.maximumf %23, %24 : vector<8x256xf32>
    %26 = arith.truncf %25 : vector<8x256xf32> to vector<8x256xbf16>
    %c768 = arith.constant 768 : index
    %c0_17 = arith.constant 0 : index
    %27 = vector.load %arg4[%c768, %c0_17] : memref<1792x256xbf16, #tpu.memory_space<vmem>>, vector<256x256xbf16>
    %cst_18 = arith.constant dense<0.000000e+00> : vector<8x256xf32>
    %28 = tpu.matmul %26, %27, %cst_18 {dimension_numbers = #tpu.dot_dimension_numbers<[1], [0], [0], [1], [0, 0, 1, 1], [], []>} : vector<8x256xbf16>, vector<256x256xbf16>, vector<8x256xf32> -> vector<8x256xf32>
    %c3 = arith.constant 3 : index
    %c0_19 = arith.constant 0 : index
    %29 = vector.load %arg19[%c3, %c0_19] : memref<17x512xf32, #tpu.memory_space<vmem>>, vector<1x256xf32>
    %30 = vector.broadcast %29 : vector<1x256xf32> to vector<8x256xf32>
    %31 = arith.addf %28, %30 : vector<8x256xf32>
    %32 = arith.truncf %31 : vector<8x256xf32> to vector<8x256xbf16>
    %c0_20 = arith.constant 0 : index
    %c0_21 = arith.constant 0 : index
    %33 = vector.load %arg5[%c0_20, %c0_21] : memref<256x128xbf16, #tpu.memory_space<vmem>>, vector<256x128xbf16>
    %cst_22 = arith.constant dense<0.000000e+00> : vector<8x128xf32>
    %34 = tpu.matmul %32, %33, %cst_22 {dimension_numbers = #tpu.dot_dimension_numbers<[1], [0], [0], [1], [0, 0, 1, 1], [], []>} : vector<8x256xbf16>, vector<256x128xbf16>, vector<8x128xf32> -> vector<8x128xf32>
    %c4 = arith.constant 4 : index
    %c0_23 = arith.constant 0 : index
    %35 = vector.load %arg19[%c4, %c0_23] : memref<17x512xf32, #tpu.memory_space<vmem>>, vector<1x128xf32>
    %36 = vector.broadcast %35 : vector<1x128xf32> to vector<8x128xf32>
    %37 = arith.addf %34, %36 : vector<8x128xf32>
    %cst_24 = arith.constant 0.000000e+00 : f32
    %38 = vector.broadcast %cst_24 : f32 to vector<8x128xf32>
    %39 = arith.maximumf %37, %38 : vector<8x128xf32>
    %40 = arith.truncf %39 : vector<8x128xf32> to vector<8x128xbf16>
    %c0_25 = arith.constant 0 : index
    %c0_26 = arith.constant 0 : index
    %41 = vector.load %arg6[%c0_25, %c0_26] : memref<128x64xbf16, #tpu.memory_space<vmem>>, vector<128x64xbf16>
    %cst_27 = arith.constant dense<0.000000e+00> : vector<8x64xf32>
    %42 = tpu.matmul %40, %41, %cst_27 {dimension_numbers = #tpu.dot_dimension_numbers<[1], [0], [0], [1], [0, 0, 1, 1], [], []>} : vector<8x128xbf16>, vector<128x64xbf16>, vector<8x64xf32> -> vector<8x64xf32>
    %c5 = arith.constant 5 : index
    %c0_28 = arith.constant 0 : index
    %43 = vector.load %arg19[%c5, %c0_28] : memref<17x512xf32, #tpu.memory_space<vmem>>, vector<1x64xf32>
    %44 = vector.broadcast %43 : vector<1x64xf32> to vector<8x64xf32>
    %45 = arith.addf %42, %44 : vector<8x64xf32>
    %cst_29 = arith.constant 0.000000e+00 : f32
    %46 = vector.broadcast %cst_29 : f32 to vector<8x64xf32>
    %47 = arith.maximumf %45, %46 : vector<8x64xf32>
    %48 = arith.truncf %47 : vector<8x64xf32> to vector<8x64xbf16>
    %c0_30 = arith.constant 0 : index
    %c0_31 = arith.constant 0 : index
    %49 = vector.load %arg7[%c0_30, %c0_31] : memref<64x16xbf16, #tpu.memory_space<vmem>>, vector<64x16xbf16>
    %cst_32 = arith.constant dense<0.000000e+00> : vector<8x16xf32>
    %50 = tpu.matmul %48, %49, %cst_32 {dimension_numbers = #tpu.dot_dimension_numbers<[1], [0], [0], [1], [0, 0, 1, 1], [], []>} : vector<8x64xbf16>, vector<64x16xbf16>, vector<8x16xf32> -> vector<8x16xf32>
    %c6 = arith.constant 6 : index
    %c0_33 = arith.constant 0 : index
    %51 = vector.load %arg19[%c6, %c0_33] : memref<17x512xf32, #tpu.memory_space<vmem>>, vector<1x16xf32>
    %52 = vector.broadcast %51 : vector<1x16xf32> to vector<8x16xf32>
    %53 = arith.addf %50, %52 : vector<8x16xf32>
    %c1024 = arith.constant 1024 : index
    %c0_34 = arith.constant 0 : index
    %54 = vector.load %arg4[%c1024, %c0_34] : memref<1792x256xbf16, #tpu.memory_space<vmem>>, vector<256x256xbf16>
    %cst_35 = arith.constant dense<0.000000e+00> : vector<8x256xf32>
    %55 = tpu.matmul %32, %54, %cst_35 {dimension_numbers = #tpu.dot_dimension_numbers<[1], [0], [0], [1], [0, 0, 1, 1], [], []>} : vector<8x256xbf16>, vector<256x256xbf16>, vector<8x256xf32> -> vector<8x256xf32>
    %c7 = arith.constant 7 : index
    %c0_36 = arith.constant 0 : index
    %56 = vector.load %arg19[%c7, %c0_36] : memref<17x512xf32, #tpu.memory_space<vmem>>, vector<1x256xf32>
    %57 = vector.broadcast %56 : vector<1x256xf32> to vector<8x256xf32>
    %58 = arith.addf %55, %57 : vector<8x256xf32>
    %cst_37 = arith.constant 0.000000e+00 : f32
    %59 = vector.broadcast %cst_37 : f32 to vector<8x256xf32>
    %60 = arith.maximumf %58, %59 : vector<8x256xf32>
    %61 = arith.truncf %60 : vector<8x256xf32> to vector<8x256xbf16>
    %c1280 = arith.constant 1280 : index
    %c0_38 = arith.constant 0 : index
    %62 = vector.load %arg4[%c1280, %c0_38] : memref<1792x256xbf16, #tpu.memory_space<vmem>>, vector<256x256xbf16>
    %cst_39 = arith.constant dense<0.000000e+00> : vector<8x256xf32>
    %63 = tpu.matmul %61, %62, %cst_39 {dimension_numbers = #tpu.dot_dimension_numbers<[1], [0], [0], [1], [0, 0, 1, 1], [], []>} : vector<8x256xbf16>, vector<256x256xbf16>, vector<8x256xf32> -> vector<8x256xf32>
    %c8 = arith.constant 8 : index
    %c0_40 = arith.constant 0 : index
    %64 = vector.load %arg19[%c8, %c0_40] : memref<17x512xf32, #tpu.memory_space<vmem>>, vector<1x256xf32>
    %65 = vector.broadcast %64 : vector<1x256xf32> to vector<8x256xf32>
    %66 = arith.addf %63, %65 : vector<8x256xf32>
    %cst_41 = arith.constant 0.000000e+00 : f32
    %67 = vector.broadcast %cst_41 : f32 to vector<8x256xf32>
    %68 = arith.maximumf %66, %67 : vector<8x256xf32>
    %69 = arith.truncf %68 : vector<8x256xf32> to vector<8x256xbf16>
    %c1536 = arith.constant 1536 : index
    %c0_42 = arith.constant 0 : index
    %70 = vector.load %arg4[%c1536, %c0_42] : memref<1792x256xbf16, #tpu.memory_space<vmem>>, vector<256x256xbf16>
    %cst_43 = arith.constant dense<0.000000e+00> : vector<8x256xf32>
    %71 = tpu.matmul %69, %70, %cst_43 {dimension_numbers = #tpu.dot_dimension_numbers<[1], [0], [0], [1], [0, 0, 1, 1], [], []>} : vector<8x256xbf16>, vector<256x256xbf16>, vector<8x256xf32> -> vector<8x256xf32>
    %c9 = arith.constant 9 : index
    %c0_44 = arith.constant 0 : index
    %72 = vector.load %arg19[%c9, %c0_44] : memref<17x512xf32, #tpu.memory_space<vmem>>, vector<1x256xf32>
    %73 = vector.broadcast %72 : vector<1x256xf32> to vector<8x256xf32>
    %74 = arith.addf %71, %73 : vector<8x256xf32>
    %75 = arith.truncf %53 : vector<8x16xf32> to vector<8x16xbf16>
    %c0_45 = arith.constant 0 : index
    %c0_46 = arith.constant 0 : index
    %76 = vector.load %arg17[%c0_45, %c0_46] : memref<16x256xbf16, #tpu.memory_space<vmem>>, vector<16x256xbf16>
    %cst_47 = arith.constant dense<0.000000e+00> : vector<8x256xf32>
    %77 = tpu.matmul %75, %76, %cst_47 {dimension_numbers = #tpu.dot_dimension_numbers<[1], [0], [0], [1], [0, 0, 1, 1], [], []>} : vector<8x16xbf16>, vector<16x256xbf16>, vector<8x256xf32> -> vector<8x256xf32>
    %78 = arith.mulf %77, %74 : vector<8x256xf32>
    %79 = arith.truncf %78 : vector<8x256xf32> to vector<8x256xbf16>
    %c0_48 = arith.constant 0 : index
    %c0_49 = arith.constant 0 : index
    %80 = vector.load %arg18[%c0_48, %c0_49] : memref<256x40xbf16, #tpu.memory_space<vmem>>, vector<256x40xbf16>
    %cst_50 = arith.constant dense<0.000000e+00> : vector<8x40xf32>
    %81 = tpu.matmul %79, %80, %cst_50 {dimension_numbers = #tpu.dot_dimension_numbers<[1], [0], [0], [1], [0, 0, 1, 1], [], []>} : vector<8x256xbf16>, vector<256x40xbf16>, vector<8x40xf32> -> vector<8x40xf32>
    %82 = vector.extract_strided_slice %81 {offsets = [0, 0], sizes = [8, 16], strides = [1, 1]} : vector<8x40xf32> to vector<8x16xf32>
    %83 = arith.truncf %82 : vector<8x16xf32> to vector<8x16xbf16>
    %84 = arith.addf %81, %2 : vector<8x40xf32>
    %85 = arith.truncf %84 : vector<8x40xf32> to vector<8x40xbf16>
    %c0_51 = arith.constant 0 : index
    %c0_52 = arith.constant 0 : index
    %86 = vector.load %arg8[%c0_51, %c0_52] : memref<40x400xbf16, #tpu.memory_space<vmem>>, vector<40x400xbf16>
    %cst_53 = arith.constant dense<0.000000e+00> : vector<8x400xf32>
    %87 = tpu.matmul %85, %86, %cst_53 {dimension_numbers = #tpu.dot_dimension_numbers<[1], [0], [0], [1], [0, 0, 1, 1], [], []>} : vector<8x40xbf16>, vector<40x400xbf16>, vector<8x400xf32> -> vector<8x400xf32>
    %c10 = arith.constant 10 : index
    %c0_54 = arith.constant 0 : index
    %88 = vector.load %arg19[%c10, %c0_54] : memref<17x512xf32, #tpu.memory_space<vmem>>, vector<1x400xf32>
    %89 = vector.broadcast %88 : vector<1x400xf32> to vector<8x400xf32>
    %90 = arith.addf %87, %89 : vector<8x400xf32>
    %cst_55 = arith.constant 0.000000e+00 : f32
    %91 = vector.broadcast %cst_55 : f32 to vector<8x400xf32>
    %92 = arith.maximumf %90, %91 : vector<8x400xf32>
    %93 = arith.truncf %92 : vector<8x400xf32> to vector<8x400xbf16>
    %c0_56 = arith.constant 0 : index
    %c0_57 = arith.constant 0 : index
    %94 = vector.load %arg9[%c0_56, %c0_57] : memref<16x300xbf16, #tpu.memory_space<vmem>>, vector<16x300xbf16>
    %cst_58 = arith.constant dense<0.000000e+00> : vector<8x300xf32>
    %95 = tpu.matmul %83, %94, %cst_58 {dimension_numbers = #tpu.dot_dimension_numbers<[1], [0], [0], [1], [0, 0, 1, 1], [], []>} : vector<8x16xbf16>, vector<16x300xbf16>, vector<8x300xf32> -> vector<8x300xf32>
    %c0_59 = arith.constant 0 : index
    %c0_60 = arith.constant 0 : index
    %96 = vector.load %arg10[%c0_59, %c0_60] : memref<400x300xbf16, #tpu.memory_space<vmem>>, vector<400x300xbf16>
    %cst_61 = arith.constant dense<0.000000e+00> : vector<8x300xf32>
    %97 = tpu.matmul %93, %96, %cst_61 {dimension_numbers = #tpu.dot_dimension_numbers<[1], [0], [0], [1], [0, 0, 1, 1], [], []>} : vector<8x400xbf16>, vector<400x300xbf16>, vector<8x300xf32> -> vector<8x300xf32>
    %98 = arith.addf %95, %97 : vector<8x300xf32>
    %c11 = arith.constant 11 : index
    %c0_62 = arith.constant 0 : index
    %99 = vector.load %arg19[%c11, %c0_62] : memref<17x512xf32, #tpu.memory_space<vmem>>, vector<1x300xf32>
    %100 = vector.broadcast %99 : vector<1x300xf32> to vector<8x300xf32>
    %101 = arith.addf %98, %100 : vector<8x300xf32>
    %cst_63 = arith.constant 0.000000e+00 : f32
    %102 = vector.broadcast %cst_63 : f32 to vector<8x300xf32>
    %103 = arith.maximumf %101, %102 : vector<8x300xf32>
    %104 = arith.truncf %103 : vector<8x300xf32> to vector<8x300xbf16>
    %c0_64 = arith.constant 0 : index
    %c0_65 = arith.constant 0 : index
    %105 = vector.load %arg11[%c0_64, %c0_65] : memref<300x200xbf16, #tpu.memory_space<vmem>>, vector<300x200xbf16>
    %cst_66 = arith.constant dense<0.000000e+00> : vector<8x200xf32>
    %106 = tpu.matmul %104, %105, %cst_66 {dimension_numbers = #tpu.dot_dimension_numbers<[1], [0], [0], [1], [0, 0, 1, 1], [], []>} : vector<8x300xbf16>, vector<300x200xbf16>, vector<8x200xf32> -> vector<8x200xf32>
    %c12 = arith.constant 12 : index
    %c0_67 = arith.constant 0 : index
    %107 = vector.load %arg19[%c12, %c0_67] : memref<17x512xf32, #tpu.memory_space<vmem>>, vector<1x200xf32>
    %108 = vector.broadcast %107 : vector<1x200xf32> to vector<8x200xf32>
    %109 = arith.addf %106, %108 : vector<8x200xf32>
    %cst_68 = arith.constant 0.000000e+00 : f32
    %110 = vector.broadcast %cst_68 : f32 to vector<8x200xf32>
    %111 = arith.maximumf %109, %110 : vector<8x200xf32>
    %112 = arith.truncf %111 : vector<8x200xf32> to vector<8x200xbf16>
    %c0_69 = arith.constant 0 : index
    %c0_70 = arith.constant 0 : index
    %113 = vector.load %arg12[%c0_69, %c0_70] : memref<16x128xbf16, #tpu.memory_space<vmem>>, vector<16x128xbf16>
    %cst_71 = arith.constant dense<0.000000e+00> : vector<8x128xf32>
    %114 = tpu.matmul %83, %113, %cst_71 {dimension_numbers = #tpu.dot_dimension_numbers<[1], [0], [0], [1], [0, 0, 1, 1], [], []>} : vector<8x16xbf16>, vector<16x128xbf16>, vector<8x128xf32> -> vector<8x128xf32>
    %c0_72 = arith.constant 0 : index
    %c0_73 = arith.constant 0 : index
    %115 = vector.load %arg13[%c0_72, %c0_73] : memref<200x128xbf16, #tpu.memory_space<vmem>>, vector<200x128xbf16>
    %cst_74 = arith.constant dense<0.000000e+00> : vector<8x128xf32>
    %116 = tpu.matmul %112, %115, %cst_74 {dimension_numbers = #tpu.dot_dimension_numbers<[1], [0], [0], [1], [0, 0, 1, 1], [], []>} : vector<8x200xbf16>, vector<200x128xbf16>, vector<8x128xf32> -> vector<8x128xf32>
    %117 = arith.addf %114, %116 : vector<8x128xf32>
    %c13 = arith.constant 13 : index
    %c0_75 = arith.constant 0 : index
    %118 = vector.load %arg19[%c13, %c0_75] : memref<17x512xf32, #tpu.memory_space<vmem>>, vector<1x128xf32>
    %119 = vector.broadcast %118 : vector<1x128xf32> to vector<8x128xf32>
    %120 = arith.addf %117, %119 : vector<8x128xf32>
    %cst_76 = arith.constant 0.000000e+00 : f32
    %121 = vector.broadcast %cst_76 : f32 to vector<8x128xf32>
    %122 = arith.maximumf %120, %121 : vector<8x128xf32>
    %123 = arith.truncf %122 : vector<8x128xf32> to vector<8x128xbf16>
    %c0_77 = arith.constant 0 : index
    %c0_78 = arith.constant 0 : index
    %124 = vector.load %arg14[%c0_77, %c0_78] : memref<128x64xbf16, #tpu.memory_space<vmem>>, vector<128x64xbf16>
    %cst_79 = arith.constant dense<0.000000e+00> : vector<8x64xf32>
    %125 = tpu.matmul %123, %124, %cst_79 {dimension_numbers = #tpu.dot_dimension_numbers<[1], [0], [0], [1], [0, 0, 1, 1], [], []>} : vector<8x128xbf16>, vector<128x64xbf16>, vector<8x64xf32> -> vector<8x64xf32>
    %c14 = arith.constant 14 : index
    %c0_80 = arith.constant 0 : index
    %126 = vector.load %arg19[%c14, %c0_80] : memref<17x512xf32, #tpu.memory_space<vmem>>, vector<1x64xf32>
    %127 = vector.broadcast %126 : vector<1x64xf32> to vector<8x64xf32>
    %128 = arith.addf %125, %127 : vector<8x64xf32>
    %cst_81 = arith.constant 0.000000e+00 : f32
    %129 = vector.broadcast %cst_81 : f32 to vector<8x64xf32>
    %130 = arith.maximumf %128, %129 : vector<8x64xf32>
    %131 = arith.truncf %130 : vector<8x64xf32> to vector<8x64xbf16>
    %c0_82 = arith.constant 0 : index
    %c0_83 = arith.constant 0 : index
    %132 = vector.load %arg15[%c0_82, %c0_83] : memref<64x32xbf16, #tpu.memory_space<vmem>>, vector<64x32xbf16>
    %cst_84 = arith.constant dense<0.000000e+00> : vector<8x32xf32>
    %133 = tpu.matmul %131, %132, %cst_84 {dimension_numbers = #tpu.dot_dimension_numbers<[1], [0], [0], [1], [0, 0, 1, 1], [], []>} : vector<8x64xbf16>, vector<64x32xbf16>, vector<8x32xf32> -> vector<8x32xf32>
    %c15 = arith.constant 15 : index
    %c0_85 = arith.constant 0 : index
    %134 = vector.load %arg19[%c15, %c0_85] : memref<17x512xf32, #tpu.memory_space<vmem>>, vector<1x32xf32>
    %135 = vector.broadcast %134 : vector<1x32xf32> to vector<8x32xf32>
    %136 = arith.addf %133, %135 : vector<8x32xf32>
    %cst_86 = arith.constant 0.000000e+00 : f32
    %137 = vector.broadcast %cst_86 : f32 to vector<8x32xf32>
    %138 = arith.maximumf %136, %137 : vector<8x32xf32>
    %c0_87 = arith.constant 0 : index
    %c0_88 = arith.constant 0 : index
    %139 = vector.load %arg16[%c0_87, %c0_88] : memref<1x32xf32, #tpu.memory_space<vmem>>, vector<1x32xf32>
    %140 = vector.broadcast %139 : vector<1x32xf32> to vector<8x32xf32>
    %141 = arith.mulf %138, %140 : vector<8x32xf32>
    %cst_89 = arith.constant dense<0.000000e+00> : vector<8xf32>
    %142 = vector.multi_reduction <add>, %141, %cst_89 [1] : vector<8x32xf32> to vector<8xf32>
    %143 = vector.shape_cast %142 : vector<8xf32> to vector<8x1xf32>
    %c16 = arith.constant 16 : index
    %c0_90 = arith.constant 0 : index
    %144 = vector.load %arg19[%c16, %c0_90] : memref<17x512xf32, #tpu.memory_space<vmem>>, vector<1x1xf32>
    %145 = vector.broadcast %144 : vector<1x1xf32> to vector<8x1xf32>
    %146 = arith.addf %143, %145 : vector<8x1xf32>
    %c0_91 = arith.constant 0 : index
    %c0_92 = arith.constant 0 : index
    %147 = vector.load %arg20[%c0_91, %c0_92] : memref<8x1xf32, #tpu.memory_space<vmem>>, vector<8x1xf32>
    tpu.vector_store %arg20[%c0_91, %c0_92], %146 {strides = array<i32>} : memref<8x1xf32, #tpu.memory_space<vmem>>, vector<8x1xf32>,
    return
  }
  func.func @transform_0(%arg0: i32) -> (i32, i32) {
    %c0_i32 = arith.constant 0 : i32
    %c0_i32_0 = arith.constant 0 : i32
    return %arg0, %c0_i32 : i32, i32
  }
  func.func @transform_1(%arg0: i32) -> (i32, i32) {
    %c0_i32 = arith.constant 0 : i32
    %c0_i32_0 = arith.constant 0 : i32
    return %arg0, %c0_i32 : i32, i32
  }
  func.func @transform_2(%arg0: i32) -> (i32, i32) {
    %c0_i32 = arith.constant 0 : i32
    %c0_i32_0 = arith.constant 0 : i32
    %c0_i32_1 = arith.constant 0 : i32
    return %c0_i32, %c0_i32_0 : i32, i32
  }
  func.func @transform_3(%arg0: i32) -> (i32, i32) {
    %c0_i32 = arith.constant 0 : i32
    %c0_i32_0 = arith.constant 0 : i32
    %c0_i32_1 = arith.constant 0 : i32
    return %c0_i32, %c0_i32_0 : i32, i32
  }
  func.func @transform_4(%arg0: i32) -> (i32, i32) {
    %c0_i32 = arith.constant 0 : i32
    %c0_i32_0 = arith.constant 0 : i32
    %c0_i32_1 = arith.constant 0 : i32
    return %c0_i32, %c0_i32_0 : i32, i32
  }
  func.func @transform_5(%arg0: i32) -> (i32, i32) {
    %c0_i32 = arith.constant 0 : i32
    %c0_i32_0 = arith.constant 0 : i32
    %c0_i32_1 = arith.constant 0 : i32
    return %c0_i32, %c0_i32_0 : i32, i32
  }
  func.func @transform_6(%arg0: i32) -> (i32, i32) {
    %c0_i32 = arith.constant 0 : i32
    %c0_i32_0 = arith.constant 0 : i32
    %c0_i32_1 = arith.constant 0 : i32
    return %c0_i32, %c0_i32_0 : i32, i32
  }
  func.func @transform_7(%arg0: i32) -> (i32, i32) {
    %c0_i32 = arith.constant 0 : i32
    %c0_i32_0 = arith.constant 0 : i32
    %c0_i32_1 = arith.constant 0 : i32
    return %c0_i32, %c0_i32_0 : i32, i32
  }
  func.func @transform_8(%arg0: i32) -> (i32, i32) {
    %c0_i32 = arith.constant 0 : i32
    %c0_i32_0 = arith.constant 0 : i32
    %c0_i32_1 = arith.constant 0 : i32
    return %c0_i32, %c0_i32_0 : i32, i32
  }
  func.func @transform_9(%arg0: i32) -> (i32, i32) {
    %c0_i32 = arith.constant 0 : i32
    %c0_i32_0 = arith.constant 0 : i32
    %c0_i32_1 = arith.constant 0 : i32
    return %c0_i32, %c0_i32_0 : i32, i32
  }
  func.func @transform_10(%arg0: i32) -> (i32, i32) {
    %c0_i32 = arith.constant 0 : i32
    %c0_i32_0 = arith.constant 0 : i32
    %c0_i32_1 = arith.constant 0 : i32
    return %c0_i32, %c0_i32_0 : i32, i32
  }
  func.func @transform_11(%arg0: i32) -> (i32, i32) {
    %c0_i32 = arith.constant 0 : i32
    %c0_i32_0 = arith.constant 0 : i32
    %c0_i32_1 = arith.constant 0 : i32
    return %c0_i32, %c0_i32_0 : i32, i32
  }
  func.func @transform_12(%arg0: i32) -> (i32, i32) {
    %c0_i32 = arith.constant 0 : i32
    %c0_i32_0 = arith.constant 0 : i32
    %c0_i32_1 = arith.constant 0 : i32
    return %c0_i32, %c0_i32_0 : i32, i32
  }
  func.func @transform_13(%arg0: i32) -> (i32, i32) {
    %c0_i32 = arith.constant 0 : i32
    %c0_i32_0 = arith.constant 0 : i32
    %c0_i32_1 = arith.constant 0 : i32
    return %c0_i32, %c0_i32_0 : i32, i32
  }
  func.func @transform_14(%arg0: i32) -> (i32, i32) {
    %c0_i32 = arith.constant 0 : i32
    %c0_i32_0 = arith.constant 0 : i32
    %c0_i32_1 = arith.constant 0 : i32
    return %c0_i32, %c0_i32_0 : i32, i32
  }
  func.func @transform_15(%arg0: i32) -> (i32, i32) {
    %c0_i32 = arith.constant 0 : i32
    %c0_i32_0 = arith.constant 0 : i32
    %c0_i32_1 = arith.constant 0 : i32
    return %c0_i32, %c0_i32_0 : i32, i32
  }
  func.func @transform_16(%arg0: i32) -> (i32, i32) {
    %c0_i32 = arith.constant 0 : i32
    %c0_i32_0 = arith.constant 0 : i32
    %c0_i32_1 = arith.constant 0 : i32
    return %c0_i32, %c0_i32_0 : i32, i32
  }
  func.func @transform_17(%arg0: i32) -> (i32, i32) {
    %c0_i32 = arith.constant 0 : i32
    %c0_i32_0 = arith.constant 0 : i32
    %c0_i32_1 = arith.constant 0 : i32
    return %c0_i32, %c0_i32_0 : i32, i32
  }
  func.func @transform_18(%arg0: i32) -> (i32, i32) {
    %c0_i32 = arith.constant 0 : i32
    %c0_i32_0 = arith.constant 0 : i32
    %c0_i32_1 = arith.constant 0 : i32
    return %c0_i32, %c0_i32_0 : i32, i32
  }
  func.func @transform_19(%arg0: i32) -> (i32, i32) {
    %c0_i32 = arith.constant 0 : i32
    %c0_i32_0 = arith.constant 0 : i32
    return %arg0, %c0_i32 : i32, i32
  }
}

</mosaic_0001>

<bundles_post_ra>
// kernel: tpu_custom_call.1
= control target key start
LH: loop header
LB: loop body
LE: loop exit
PB: predicated region body
PF: predicated region fallthrough
CT: control target
= control target key end

     0   :  { %s6838_s0 = inlined_call_operand.hbm [shape: f32[8,32], index: 0, kind: input, shape index: {}]   ;;  %s6839_s1 = inlined_call_operand.hbm [shape: f32[8,40], index: 1, kind: input, shape index: {}]   ;;  %s6840_s2 = inlined_call_operand.hbm [shape: bf16[32,512], index: 2, kind: input, shape index: {}]   ;;  %s6841_s3 = inlined_call_operand.hbm [shape: bf16[1792,256], index: 3, kind: input, shape index: {}]   ;;  %s6842_s4 = inlined_call_operand.vmem [shape: bf16[256,128], index: 4, kind: input, shape index: {}]   ;;  %s6843_s5 = inlined_call_operand.vmem [shape: bf16[128,64], index: 5, kind: input, shape index: {}]   ;;  %s6844_s6 = inlined_call_operand.vmem [shape: bf16[64,16], index: 6, kind: input, shape index: {}]   ;;  %s6845_s7 = inlined_call_operand.hbm [shape: bf16[40,400], index: 7, kind: input, shape index: {}]   ;;  %s6846_s8 = inlined_call_operand.hbm [shape: bf16[16,300], index: 8, kind: input, shape index: {}]   ;;  %s6847_s9 = inlined_call_operand.vmem [shape: bf16[400,300], index: 9, kind: input, shape index: {}]   ;;  %s6848_s10 = inlined_call_operand.vmem [shape: bf16[300,200], index: 10, kind: input, shape index: {}]   ;;  %s6849_s11 = inlined_call_operand.hbm [shape: bf16[16,128], index: 11, kind: input, shape index: {}]   ;;  %s6850_s12 = inlined_call_operand.hbm [shape: bf16[200,128], index: 12, kind: input, shape index: {}]   ;;  %s6851_s13 = inlined_call_operand.vmem [shape: bf16[128,64], index: 13, kind: input, shape index: {}]   ;;  %s6852_s14 = inlined_call_operand.vmem [shape: bf16[64,32], index: 14, kind: input, shape index: {}]   ;;  %s6853_s15 = inlined_call_operand.vmem [shape: f32[1,32], index: 15, kind: input, shape index: {}]   ;;  %s6854_s16 = inlined_call_operand.hbm [shape: bf16[16,256], index: 16, kind: input, shape index: {}]   ;;  %s6855_s17 = inlined_call_operand.vmem [shape: bf16[256,40], index: 17, kind: input, shape index: {}]   ;;  %s6856_s18 = inlined_call_operand.hbm [shape: f32[17,512], index: 18, kind: input, shape index: {}]   ;;  %s6857_s19 = inlined_call_operand.vmem [shape: f32[8,1], index: 19, kind: output, shape index: {}]  }
   0x1   :  { %6865 = sst [smem:[#allocation24_spill]] %s6838_s0 }
   0x2   :  { %6866 = sst [smem:[#allocation25_spill]] %s6839_s1 }
   0x3   :  { %6867 = sst [smem:[#allocation26_spill]] %s6840_s2 }
   0x4   :  { %6868 = sst [smem:[#allocation27_spill]] %s6841_s3 }
   0x5   :  { %6869 = sst [smem:[#allocation28_spill]] %s6857_s19 }
   0x6   :  { %24 = vsyncpa [#allocation3], 0 }
   0x7   :  { %25 = vsyncpa [#allocation5], 0 }
   0x8   :  { %26 = vsyncpa [#allocation8], 0 }
   0x9   :  { %27 = vsyncpa [#allocation11], 0 }
   0xa   :  { %28 = vsyncpa [#allocation14], 0 }
   0xb   :  { %29 = vsyncpa [#allocation17], 0  ;;  %s5896_s0 = smov [#allocation4]   ;;  %s5897_s20 = smov [#allocation7]  }
   0xc   :  { %s46_s30 = sshll.u32 %s5896_s0, 4  ;;  %s67_s21 = sshll.u32 %s5897_s20, 4  ;;  %s47_s30 = int_to_ptr.vmem [resolvable:$true] %s46_s30  ;;  %s6019_s21 = int_to_ptr.vmem [resolvable:$true] %s67_s21 }
   0xd   :  { %s6870_s2 = sld [smem:[#allocation25_spill]] }
  0x13   :  { %s5664_s23 = scalar_lea.hbm %s6870_s2, 128 }
  0x14   :  { %p5665_p0 = scmp.ne.s32.totalorder %s6870_s2, %s5664_s23  ;;  %p5668_p1 = scmp.lt.u32.totalorder %s5664_s23, %s6870_s2 }
  0x16   :  { %p5670_p2 = pnand %p5668_p1, %p5665_p0 }
  0x18   :  { %5673 = shalt.err (!%p5670_p2)
}
  0x19   :  { %s5674_s27 = scalar_lea.vmem %s47_s30, 128  ;;  %p5679_p4 = scmp.lt.s32.totalorder %s47_s30, %s47_s30 }
  0x1a   :  { %p5675_p3 = scmp.ne.s32.totalorder %s47_s30, %s5674_s27  ;;  %p5680_p5 = scmp.lt.s32.totalorder %s5674_s27, %s5674_s27 }
  0x1c   :  { %p5681_p6 = por %p5680_p5, %p5679_p4 }
  0x1e   :  { %p5682_p7 = pnand %p5681_p6, %p5675_p3 }
  0x20   :  { %5685 = shalt.err (!%p5682_p7)
}
  0x21   :  { %49 = dma.hbm_to_vmem [thread:$0]  %s6870_s2, 128, %s47_s30, [#allocation5]  }
  0x22   :  { %s6871_s1 = sld [smem:[#allocation27_spill]] }
  0x28   :  { %s5686_s22 = scalar_lea.hbm %s6871_s1, 28672 }
  0x29   :  { %p5687_p8 = scmp.ne.s32.totalorder %s6871_s1, %s5686_s22  ;;  %p5690_p9 = scmp.lt.u32.totalorder %s5686_s22, %s6871_s1 }
  0x2b   :  { %p5692_p10 = pnand %p5690_p9, %p5687_p8 }
  0x2d   :  { %5695 = shalt.err (!%p5692_p10)
}
  0x2e   :  { %s5696_s26 = scalar_lea.vmem %s6019_s21, 28672  ;;  %p5701_p12 = scmp.lt.s32.totalorder %s6019_s21, %s6019_s21 }
  0x2f   :  { %p5697_p11 = scmp.ne.s32.totalorder %s6019_s21, %s5696_s26  ;;  %p5702_p13 = scmp.lt.s32.totalorder %s5696_s26, %s5696_s26 }
  0x31   :  { %p5703_p0 = por %p5702_p13, %p5701_p12 }
  0x33   :  { %p5704_p1 = pnand %p5703_p0, %p5697_p11 }
  0x35   :  { %5707 = shalt.err (!%p5704_p1)
}
  0x36   :  { %s6862_s30 = smov 128   ;;  %s6863_s2 = smov 8  }
  0x37   :  { %73 = dma.hbm_to_vmem [thread:$0]  %s6871_s1, 28672, %s6019_s21, [#allocation8], %s6862_s30, %s6862_s30, %s6863_s2  }
  0x38   :  { %s5900_s29 = smov [#allocation10]   ;;  %s5708_s24 = scalar_lea.hbm %s6846_s8, 384 }
  0x39   :  { %s97_s0 = sshll.u32 %s5900_s29, 4  ;;  %p5709_p2 = scmp.ne.s32.totalorder %s6846_s8, %s5708_s24  ;;  %s98_s0 = int_to_ptr.vmem [resolvable:$true] %s97_s0 }
  0x3a   :  { %p5712_p3 = scmp.lt.u32.totalorder %s5708_s24, %s6846_s8 }
  0x3c   :  { %p5714_p4 = pnand %p5712_p3, %p5709_p2 }
  0x3e   :  { %5717 = shalt.err (!%p5714_p4)
}
  0x3f   :  { %s5718_s19 = scalar_lea.vmem %s98_s0, 384  ;;  %p5723_p6 = scmp.lt.s32.totalorder %s98_s0, %s98_s0 }
  0x40   :  { %p5719_p5 = scmp.ne.s32.totalorder %s98_s0, %s5718_s19  ;;  %p5724_p7 = scmp.lt.s32.totalorder %s5718_s19, %s5718_s19 }
  0x42   :  { %p5725_p8 = por %p5724_p7, %p5723_p6 }
  0x44   :  { %p5726_p9 = pnand %p5725_p8, %p5719_p5 }
  0x46   :  { %5729 = shalt.err (!%p5726_p9)
}
  0x47   :  { %s5901_s21 = smov 192   ;;  %s5902_s1 = smov 12  }
  0x48   :  { %103 = dma.hbm_to_vmem [thread:$0]  %s6846_s8, 384, %s98_s0, [#allocation11], %s5901_s21, %s5901_s21, %s5902_s1  }
  0x49   :  { %s5903_s29 = smov [#allocation13]   ;;  %s5904_s22 = smov [#allocation2]  }
  0x4a   :  { %s125_s20 = sshll.u32 %s5903_s29, 4  ;;  %s36_s24 = sshll.u32 %s5904_s22, 4  ;;  %s126_s20 = int_to_ptr.vmem [resolvable:$true] %s125_s20  ;;  %s37_s24 = int_to_ptr.vmem [resolvable:$true] %s36_s24 }
  0x4b   :  { %s5730_s3 = scalar_lea.hbm %s6850_s12, 1600 }
  0x4c   :  { %p5731_p10 = scmp.ne.s32.totalorder %s6850_s12, %s5730_s3  ;;  %p5734_p11 = scmp.lt.u32.totalorder %s5730_s3, %s6850_s12 }
  0x4e   :  { %p5736_p12 = pnand %p5734_p11, %p5731_p10 }
  0x50   :  { %5739 = shalt.err (!%p5736_p12)
}
  0x51   :  { %s5740_s8 = scalar_lea.vmem %s126_s20, 1600  ;;  %p5745_p0 = scmp.lt.s32.totalorder %s126_s20, %s126_s20 }
  0x52   :  { %p5741_p13 = scmp.ne.s32.totalorder %s126_s20, %s5740_s8  ;;  %p5746_p1 = scmp.lt.s32.totalorder %s5740_s8, %s5740_s8 }
  0x54   :  { %p5747_p2 = por %p5746_p1, %p5745_p0 }
  0x56   :  { %p5748_p3 = pnand %p5747_p2, %p5741_p13 }
  0x58   :  { %5751 = shalt.err (!%p5748_p3)
}
  0x59   :  { %s6864_s0 = smov 64   ;;  %s5906_s21 = smov 4  }
  0x5a   :  { %131 = dma.hbm_to_vmem [thread:$0]  %s6850_s12, 1600, %s126_s20, [#allocation14], %s6864_s0, %s6864_s0, %s5906_s21  }
  0x5b   :  { %s6872_s28 = sld [smem:[#allocation24_spill]] }
  0x61   :  { %s5752_s29 = scalar_lea.hbm %s6872_s28, 128 }
  0x62   :  { %p5753_p4 = scmp.ne.s32.totalorder %s6872_s28, %s5752_s29  ;;  %p5756_p5 = scmp.lt.u32.totalorder %s5752_s29, %s6872_s28 }
  0x64   :  { %p5758_p6 = pnand %p5756_p5, %p5753_p4 }
  0x66   :  { %5761 = shalt.err (!%p5758_p6)
}
  0x67   :  { %s5762_s26 = scalar_lea.vmem %s37_s24, 128  ;;  %p5767_p8 = scmp.lt.s32.totalorder %s37_s24, %s37_s24 }
  0x68   :  { %p5763_p7 = scmp.ne.s32.totalorder %s37_s24, %s5762_s26  ;;  %p5768_p9 = scmp.lt.s32.totalorder %s5762_s26, %s5762_s26 }
  0x6a   :  { %p5769_p10 = por %p5768_p9, %p5767_p8 }
  0x6c   :  { %p5770_p11 = pnand %p5769_p10, %p5763_p7 }
  0x6e   :  { %5773 = shalt.err (!%p5770_p11)
}
  0x6f   :  { %39 = dma.hbm_to_vmem [thread:$0]  %s6872_s28, 128, %s37_s24, [#allocation3]  }
  0x70   :  { %s5907_s19 = smov [#allocation6]   ;;  %s6873_s30 = sld [smem:[#allocation26_spill]] }
  0x71   :  { %s55_s8 = sshll.u32 %s5907_s19, 4  ;;  %s56_s8 = int_to_ptr.vmem [resolvable:$true] %s55_s8 }
  0x76   :  { %s5774_s2 = scalar_lea.hbm %s6873_s30, 1024 }
  0x77   :  { %p5775_p12 = scmp.ne.s32.totalorder %s6873_s30, %s5774_s2  ;;  %p5778_p13 = scmp.lt.u32.totalorder %s5774_s2, %s6873_s30 }
  0x79   :  { %p5780_p0 = pnand %p5778_p13, %p5775_p12 }
  0x7b   :  { %5783 = shalt.err (!%p5780_p0)
}
  0x7c   :  { %s5784_s3 = scalar_lea.vmem %s56_s8, 1024  ;;  %p5789_p2 = scmp.lt.s32.totalorder %s56_s8, %s56_s8 }
  0x7d   :  { %p5785_p1 = scmp.ne.s32.totalorder %s56_s8, %s5784_s3  ;;  %p5790_p3 = scmp.lt.s32.totalorder %s5784_s3, %s5784_s3 }
  0x7f   :  { %p5791_p4 = por %p5790_p3, %p5789_p2 }
  0x81   :  { %p5792_p5 = pnand %p5791_p4, %p5785_p1 }
  0x83   :  { %5795 = shalt.err (!%p5792_p5)
}
  0x84   :  { %s5908_s24 = smov 256   ;;  %s5909_s28 = smov 16  }
  0x85   :  { %61 = dma.hbm_to_vmem [thread:$0]  %s6873_s30, 1024, %s56_s8, [#allocation5], %s5908_s24, %s5908_s24, %s5909_s28  }
  0x86   :  { %s5910_s20 = smov [#allocation9]   ;;  %s5911_s1 = smov [#allocation12]  }
  0x87   :  { %s85_s19 = sshll.u32 %s5910_s20, 4  ;;  %s113_s27 = sshll.u32 %s5911_s1, 4  ;;  %s86_s19 = int_to_ptr.vmem [resolvable:$true] %s85_s19  ;;  %s6104_s27 = int_to_ptr.vmem [resolvable:$true] %s113_s27 }
  0x88   :  { %s5796_s22 = scalar_lea.hbm %s6845_s7, 1280 }
  0x89   :  { %p5797_p6 = scmp.ne.s32.totalorder %s6845_s7, %s5796_s22  ;;  %p5800_p7 = scmp.lt.u32.totalorder %s5796_s22, %s6845_s7 }
  0x8b   :  { %p5802_p8 = pnand %p5800_p7, %p5797_p6 }
  0x8d   :  { %5805 = shalt.err (!%p5802_p8)
}
  0x8e   :  { %s5806_s8 = scalar_lea.vmem %s86_s19, 1280  ;;  %p5811_p10 = scmp.lt.s32.totalorder %s86_s19, %s86_s19 }
  0x8f   :  { %p5807_p9 = scmp.ne.s32.totalorder %s86_s19, %s5806_s8  ;;  %p5812_p11 = scmp.lt.s32.totalorder %s5806_s8, %s5806_s8 }
  0x91   :  { %p5813_p12 = por %p5812_p11, %p5811_p10 }
  0x93   :  { %p5814_p13 = pnand %p5813_p12, %p5807_p9 }
  0x95   :  { %5817 = shalt.err (!%p5814_p13)
}
  0x96   :  { %91 = dma.hbm_to_vmem [thread:$0]  %s6845_s7, 1280, %s86_s19, [#allocation8], %s5908_s24, %s5908_s24, %s5909_s28  }
  0x97   :  { %s5818_s1 = scalar_lea.hbm %s6849_s11, 128 }
  0x98   :  { %p5819_p0 = scmp.ne.s32.totalorder %s6849_s11, %s5818_s1  ;;  %p5822_p1 = scmp.lt.u32.totalorder %s5818_s1, %s6849_s11 }
  0x9a   :  { %p5824_p2 = pnand %p5822_p1, %p5819_p0 }
  0x9c   :  { %5827 = shalt.err (!%p5824_p2)
}
  0x9d   :  { %s5828_s25 = scalar_lea.vmem %s6104_s27, 128  ;;  %p5833_p4 = scmp.lt.s32.totalorder %s6104_s27, %s6104_s27 }
  0x9e   :  { %p5829_p3 = scmp.ne.s32.totalorder %s6104_s27, %s5828_s25  ;;  %p5834_p5 = scmp.lt.s32.totalorder %s5828_s25, %s5828_s25 }
  0xa0   :  { %p5835_p6 = por %p5834_p5, %p5833_p4 }
  0xa2   :  { %p5836_p7 = pnand %p5835_p6, %p5829_p3 }
  0xa4   :  { %5839 = shalt.err (!%p5836_p7)
}
  0xa5   :  { %s6874_s7 = smov 64   ;;  %s5912_s19 = smov [#allocation15]  }
  0xa6   :  { %119 = dma.hbm_to_vmem [thread:$0]  %s6849_s11, 128, %s6104_s27, [#allocation11], %s6874_s7, %s6874_s7, %s5906_s21  }
  0xa7   :  { %s143_s23 = sshll.u32 %s5912_s19, 4  ;;  %s5913_s3 = smov [#allocation16]   ;;  %s144_s23 = int_to_ptr.vmem [resolvable:$true] %s143_s23 }
  0xa8   :  { %s157_s8 = sshll.u32 %s5913_s3, 4  ;;  %s5840_s12 = scalar_lea.hbm %s6854_s16, 256  ;;  %s6138_s8 = int_to_ptr.vmem [resolvable:$true] %s157_s8 }
  0xa9   :  { %p5841_p8 = scmp.ne.s32.totalorder %s6854_s16, %s5840_s12  ;;  %p5844_p9 = scmp.lt.u32.totalorder %s5840_s12, %s6854_s16 }
  0xab   :  { %p5846_p10 = pnand %p5844_p9, %p5841_p8 }
  0xad   :  { %5849 = shalt.err (!%p5846_p10)
}
  0xae   :  { %s5850_s11 = scalar_lea.vmem %s144_s23, 256  ;;  %p5855_p12 = scmp.lt.s32.totalorder %s144_s23, %s144_s23 }
  0xaf   :  { %p5851_p11 = scmp.ne.s32.totalorder %s144_s23, %s5850_s11  ;;  %p5856_p13 = scmp.lt.s32.totalorder %s5850_s11, %s5850_s11 }
  0xb1   :  { %p5857_p0 = por %p5856_p13, %p5855_p12 }
  0xb3   :  { %p5858_p1 = pnand %p5857_p0, %p5851_p11 }
  0xb5   :  { %5861 = shalt.err (!%p5858_p1)
}
  0xb6   :  { %s6875_s21 = smov 8   ;;  %s6876_s27 = smov 128  }
  0xb7   :  { %149 = dma.hbm_to_vmem [thread:$0]  %s6854_s16, 256, %s144_s23, [#allocation14], %s6876_s27, %s6876_s27, %s6875_s21  }
  0xb8   :  { %s5862_s24 = scalar_lea.hbm %s6856_s18, 1536 }
  0xb9   :  { %p5863_p2 = scmp.ne.s32.totalorder %s6856_s18, %s5862_s24  ;;  %p5866_p3 = scmp.lt.u32.totalorder %s5862_s24, %s6856_s18 }
  0xbb   :  { %p5868_p4 = pnand %p5866_p3, %p5863_p2 }
  0xbd   :  { %5871 = shalt.err (!%p5868_p4)
}
  0xbe   :  { %s5872_s26 = scalar_lea.vmem %s6138_s8, 1536  ;;  %p5877_p6 = scmp.lt.s32.totalorder %s6138_s8, %s6138_s8 }
  0xbf   :  { %p5873_p5 = scmp.ne.s32.totalorder %s6138_s8, %s5872_s26  ;;  %p5878_p7 = scmp.lt.s32.totalorder %s5872_s26, %s5872_s26 }
  0xc1   :  { %p5879_p8 = por %p5878_p7, %p5877_p6 }
  0xc3   :  { %p5880_p9 = pnand %p5879_p8, %p5873_p5 }
  0xc5   :  { %5883 = shalt.err (!%p5880_p9)
}
  0xc6   :  { %s5914_s16 = smov 512   ;;  %s5915_s23 = smov 32  }
  0xc7   :  { %163 = dma.hbm_to_vmem [thread:$0]  %s6856_s18, 1536, %s6138_s8, [#allocation17], %s5914_s16, %s5914_s16, %s5915_s23  }
  0xc8   :  { %5884 = dma.done.wait [#allocation3], 128  }
  0xc9   :  { %5885 = vsyncadd [#allocation3], 4294967168 }
  0xca   :  { %5886 = dma.done.wait [#allocation5], 1152  }
  0xcb   :  { %5887 = vsyncadd [#allocation5], 4294966144 }
  0xcc   :  { %5888 = dma.done.wait [#allocation8], 29952  }
  0xcd   :  { %5889 = vsyncadd [#allocation8], 4294937344 }
  0xce   :  { %5890 = dma.done.wait [#allocation11], 512  }
  0xcf   :  { %5891 = vsyncadd [#allocation11], 4294966784 }
  0xd0   :  { %5892 = dma.done.wait [#allocation14], 1856  }
  0xd1   :  { %5893 = vsyncadd [#allocation14], 4294965440 }
  0xd2   :  { %5894 = dma.done.wait [#allocation17], 1536  }
  0xd3   :  { %5895 = vsyncadd [#allocation17], 4294965760  ;;  %v5916_v0 = vmov 0   ;;  %v5066_v1 = vld [vmem:[#allocation6 + $0x4] ss:$16 sps:$4 sm:$0xff]   ;;  %vm268_vm0 = vcmask 261120  }
  0xd4   :  { %304 = vmatprep.mubr.bf16.mxu0 %v5916_v0  ;;  %345 = vmatprep.mubr.bf16.mxu1 %v5916_v0  ;;  %v5068_v2 = vld [vmem:[#allocation6] ss:$16 sps:$4 sm:$0xff]   ;;  %v5069_v3 = vld [vmem:[#allocation6 + $0x24] ss:$16 sps:$4 sm:$0xff]   ;;  %v5072_v6 = vld [vmem:[#allocation6 + $0xc] ss:$16 sps:$4 sm:$0xff]  }
  0xd5   :  { %272 = vmatprep.subr.bf16.mxu0 %v5066_v1  ;;  %v5071_v4 = vld [vmem:[#allocation6 + $0x20] ss:$16 sps:$4 sm:$0xff]   ;;  %v5074_v7 = vld [vmem:[#allocation6 + $0x8] ss:$16 sps:$4 sm:$0xff]   ;;  %313 = vmatprep.subr.bf16.mxu1 %v5072_v6  ;;  %v5075_v8 = vld [vmem:[#allocation6 + $0x2c] ss:$16 sps:$4 sm:$0xff]  }
  0xd6   :  { %v195_v5 = vld [vmem:[#allocation2] sm:$0xff]  ;;  %273 = vmatpush1.bf16.msra.mxu0 %v5068_v2  ;;  %314 = vmatpush1.bf16.msra.mxu1 %v5074_v7  ;;  %v5077_v10 = vld [vmem:[#allocation6 + $0x28] ss:$16 sps:$4 sm:$0xff]   ;;  %v5080_v11 = vld [vmem:[#allocation7 + $0x4] ss:$8 sps:$4 sm:$0xff]   ;;  %vm5918_vm1 = vmmov 0  }
  0xd7   :  { %274 = vmatprep.subr.bf16.mxu0 %v5069_v3  ;;  %v196_v9 = vpack.c.bf16 %v195_v5, %v195_v5  ;;  %315 = vmatprep.subr.bf16.mxu1 %v5075_v8  ;;  %v5078_v12 = vld [vmem:[#allocation7] ss:$8 sps:$4 sm:$0xff]   ;;  %v5083_v13 = vld [vmem:[#allocation7 + $0x14] ss:$8 sps:$4 sm:$0xff]   ;;  %v5081_v14 = vld [vmem:[#allocation7 + $0x10] ss:$8 sps:$4 sm:$0xff]  }
  0xd8   :  { %v5086_v15 = vld [vmem:[#allocation7 + $0x24] ss:$8 sps:$4 sm:$0xff]   ;;  %v5084_v16 = vld [vmem:[#allocation7 + $0x20] ss:$8 sps:$4 sm:$0xff]   ;;  %v5089_v17 = vld [vmem:[#allocation7 + $0x34] ss:$8 sps:$4 sm:$0xff]  }
  0xd9   :  { %v5087_v18 = vld [vmem:[#allocation7 + $0x30] ss:$8 sps:$4 sm:$0xff]   ;;  %v5092_v19 = vld [vmem:[#allocation7 + $0x44] ss:$8 sps:$4 sm:$0xff]   ;;  %v5090_v20 = vld [vmem:[#allocation7 + $0x40] ss:$8 sps:$4 sm:$0xff]  }
  0xda   :  { %275 = vmatpush1.bf16.msra.mxu0 %v5071_v4  ;;  %316 = vmatpush1.bf16.msra.mxu1 %v5077_v10  ;;  %v5095_v21 = vld [vmem:[#allocation7 + $0x54] ss:$8 sps:$4 sm:$0xff]   ;;  %v5093_v22 = vld [vmem:[#allocation7 + $0x50] ss:$8 sps:$4 sm:$0xff]   ;;  %v5098_v23 = vld [vmem:[#allocation7 + $0x64] ss:$8 sps:$4 sm:$0xff]   ;;  %v208_v4 = vlaneseq }
  0xdb   :  { %759 = vmatprep.subr.bf16.mxu0 %v5080_v11  ;;  %v5096_v24 = vld [vmem:[#allocation7 + $0x60] ss:$8 sps:$4 sm:$0xff]   ;;  %v5101_v25 = vld [vmem:[#allocation7 + $0x74] ss:$8 sps:$4 sm:$0xff]   ;;  %v5099_v26 = vld [vmem:[#allocation7 + $0x70] ss:$8 sps:$4 sm:$0xff]  }
  0xdc   :  { %v5104_v27 = vld [vmem:[#allocation7 + $0x84] ss:$8 sps:$4 sm:$0xff]   ;;  %v5102_v28 = vld [vmem:[#allocation7 + $0x80] ss:$8 sps:$4 sm:$0xff]   ;;  %v5107_v29 = vld [vmem:[#allocation7 + $0x94] ss:$8 sps:$4 sm:$0xff]  }
  0xdd   :  { %4415 = vmatmul.mubr.msk.bf16.vlgmr.msra.gmra.mrb[0].mxu0 %vm268_vm0, %v196_v9  ;;  %4416 = vmatmul.mubr.msk.bf16.vlgmr.msra.gmra.mrb[0].mxu1 %vm268_vm0, %v196_v9  ;;  %v5105_v30 = vld [vmem:[#allocation7 + $0x90] ss:$8 sps:$4 sm:$0xff]   ;;  %v5110_v31 = vld [vmem:[#allocation7 + $0xa4] ss:$8 sps:$4 sm:$0xff]   ;;  %v5108_v32 = vld [vmem:[#allocation7 + $0xa0] ss:$8 sps:$4 sm:$0xff]  }
  0xde   :  { %760 = vmatpush1.bf16.msra.mxu0 %v5078_v12  ;;  %v5113_v33 = vld [vmem:[#allocation7 + $0xb4] ss:$8 sps:$4 sm:$0xff]   ;;  %v5111_v34 = vld [vmem:[#allocation7 + $0xb0] ss:$8 sps:$4 sm:$0xff]   ;;  %v5116_v35 = vld [vmem:[#allocation7 + $0xc4] ss:$8 sps:$4 sm:$0xff]  }
  0xdf   :  { %761 = vmatprep.subr.bf16.mxu0 %v5083_v13  ;;  %v5114_v36 = vld [vmem:[#allocation7 + $0xc0] ss:$8 sps:$4 sm:$0xff]   ;;  %v5119_v37 = vld [vmem:[#allocation7 + $0xd4] ss:$8 sps:$4 sm:$0xff]   ;;  %v5117_v38 = vld [vmem:[#allocation7 + $0xd0] ss:$8 sps:$4 sm:$0xff]  }
  0xe0   :  { %v5122_v39 = vld [vmem:[#allocation7 + $0xe4] ss:$8 sps:$4 sm:$0xff]   ;;  %v5120_v40 = vld [vmem:[#allocation7 + $0xe0] ss:$8 sps:$4 sm:$0xff]   ;;  %v5125_v41 = vld [vmem:[#allocation7 + $0xf4] ss:$8 sps:$4 sm:$0xff]  }
  0xe1   :  { %v5123_v42 = vld [vmem:[#allocation7 + $0xf0] ss:$8 sps:$4 sm:$0xff]   ;;  %v5128_v43 = vld [vmem:[#allocation7 + $0x104] ss:$8 sps:$4 sm:$0xff]   ;;  %v5174_v44 = vld [vmem:[#allocation7 + $0x200] ss:$8 sps:$4 sm:$0xff]  }
  0xe2   :  { %762 = vmatpush1.bf16.msra.mxu0 %v5081_v14  ;;  %v5176_v45 = vld [vmem:[#allocation7 + $0x204] ss:$8 sps:$4 sm:$0xff]   ;;  %v5179_v46 = vld [vmem:[#allocation7 + $0x214] ss:$8 sps:$4 sm:$0xff]   ;;  %v5177_v47 = vld [vmem:[#allocation7 + $0x210] ss:$8 sps:$4 sm:$0xff]  }
  0xe3   :  { %763 = vmatprep.subr.bf16.mxu0 %v5086_v15  ;;  %1050 = vmatprep.subr.bf16.mxu1 %v5176_v45  ;;  %v5182_v48 = vld [vmem:[#allocation7 + $0x224] ss:$8 sps:$4 sm:$0xff]   ;;  %v5180_v49 = vld [vmem:[#allocation7 + $0x220] ss:$8 sps:$4 sm:$0xff]   ;;  %v5185_v50 = vld [vmem:[#allocation7 + $0x234] ss:$8 sps:$4 sm:$0xff]  }
  0xe4   :  { %1051 = vmatpush1.bf16.msra.mxu1 %v5174_v44  ;;  %v5183_v51 = vld [vmem:[#allocation7 + $0x230] ss:$8 sps:$4 sm:$0xff]   ;;  %v5188_v52 = vld [vmem:[#allocation7 + $0x244] ss:$8 sps:$4 sm:$0xff]   ;;  %v5186_v53 = vld [vmem:[#allocation7 + $0x240] ss:$8 sps:$4 sm:$0xff]  }
  0xe5   :  { %1052 = vmatprep.subr.bf16.mxu1 %v5179_v46  ;;  %v5191_v54 = vld [vmem:[#allocation7 + $0x254] ss:$8 sps:$4 sm:$0xff]   ;;  %v5189_v55 = vld [vmem:[#allocation7 + $0x250] ss:$8 sps:$4 sm:$0xff]   ;;  %v5194_v56 = vld [vmem:[#allocation7 + $0x264] ss:$8 sps:$4 sm:$0xff]  }
  0xe6   :  { %764 = vmatpush1.bf16.msra.mxu0 %v5084_v16  ;;  %v5192_v57 = vld [vmem:[#allocation7 + $0x260] ss:$8 sps:$4 sm:$0xff]   ;;  %v5197_v58 = vld [vmem:[#allocation7 + $0x274] ss:$8 sps:$4 sm:$0xff]   ;;  %v5195_v59 = vld [vmem:[#allocation7 + $0x270] ss:$8 sps:$4 sm:$0xff]  }
  0xe7   :  { %765 = vmatprep.subr.bf16.mxu0 %v5089_v17  ;;  %v5200_v60 = vld [vmem:[#allocation7 + $0x284] ss:$8 sps:$4 sm:$0xff]   ;;  %v5198_v61 = vld [vmem:[#allocation7 + $0x280] ss:$8 sps:$4 sm:$0xff]   ;;  %v5203_v62 = vld [vmem:[#allocation7 + $0x294] ss:$8 sps:$4 sm:$0xff]  }
  0xe8   :  { %1053 = vmatpush1.bf16.msra.mxu1 %v5177_v47  ;;  %v5201_v63 = vld [vmem:[#allocation7 + $0x290] ss:$8 sps:$4 sm:$0xff]   ;;  %v5206_v1 = vld [vmem:[#allocation7 + $0x2a4] ss:$8 sps:$4 sm:$0xff]   ;;  %v5204_v2 = vld [vmem:[#allocation7 + $0x2a0] ss:$8 sps:$4 sm:$0xff]  }
  0xe9   :  { %1054 = vmatprep.subr.bf16.mxu1 %v5182_v48  ;;  %v5209_v3 = vld [vmem:[#allocation7 + $0x2b4] ss:$8 sps:$4 sm:$0xff]   ;;  %v5207_v5 = vld [vmem:[#allocation7 + $0x2b0] ss:$8 sps:$4 sm:$0xff]   ;;  %v6176_v6 = vshrl.u32 %v208_v4, 7  ;;  %vm1654_vm2 = vcmask 523264  }
  0xea   :  { %766 = vmatpush1.bf16.msra.mxu0 %v5087_v18  ;;  %v5212_v7 = vld [vmem:[#allocation7 + $0x2c4] ss:$8 sps:$4 sm:$0xff]   ;;  %v5210_v8 = vld [vmem:[#allocation7 + $0x2c0] ss:$8 sps:$4 sm:$0xff]   ;;  %v5215_v10 = vld [vmem:[#allocation7 + $0x2d4] ss:$8 sps:$4 sm:$0xff]  }
  0xeb   :  { %767 = vmatprep.subr.bf16.mxu0 %v5092_v19  ;;  %v6179_v9 = vsub.s32 0, %v6176_v6  ;;  %v6181_v11 = vld [vmem:[#allocation16] ss:$8 sm:$0xf]  ;;  %v6184_v12 = vsub.s32 1, %v6176_v6  ;;  %v222_v15 = vsub.s32 3, %v6176_v6 }
  0xec   :  { %1055 = vmatpush1.bf16.msra.mxu1 %v5180_v49  ;;  %v5213_v13 = vld [vmem:[#allocation7 + $0x2d0] ss:$8 sps:$4 sm:$0xff]   ;;  %v5143_v44 = vld [vmem:[#allocation7 + $0x154] ss:$8 sps:$4 sm:$0xff]   ;;  %v5146_v46 = vld [vmem:[#allocation7 + $0x164] ss:$8 sps:$4 sm:$0xff]  }
  0xed   :  { %1056 = vmatprep.subr.bf16.mxu1 %v5185_v50  ;;  %v211_v14 = vrot.slane %v6181_v11, %v6179_v9  ;;  %v215_v16 = vrot.slane %v6181_v11, %v6184_v12  ;;  %v5141_v45 = vld [vmem:[#allocation7 + $0x150] ss:$8 sps:$4 sm:$0xff]   ;;  %v5144_v47 = vld [vmem:[#allocation7 + $0x160] ss:$8 sps:$4 sm:$0xff]   ;;  %v5149_v48 = vld [vmem:[#allocation7 + $0x174] ss:$8 sps:$4 sm:$0xff]  }
  0xee   :  { %768 = vmatpush1.bf16.msra.mxu0 %v5090_v20  ;;  %v223_v20 = vrot.slane %v6181_v11, %v222_v15  ;;  %v5147_v49 = vld [vmem:[#allocation7 + $0x170] ss:$8 sps:$4 sm:$0xff]   ;;  %v5152_v50 = vld [vmem:[#allocation7 + $0x184] ss:$8 sps:$4 sm:$0xff]   ;;  %v5173_v4 = vld [vmem:[#allocation7 + $0x1f4] ss:$8 sps:$4 sm:$0xff]  }
  0xef   :  { %769 = vmatprep.subr.bf16.mxu0 %v5095_v21  ;;  %vm2457_vm3 = vcmask 130048   ;;  %vm2764_vm4 = vcmask 1043456   ;;  %vm2760_vm5 = vcmask 326656   ;;  %vm3906_vm6 = vcmask 1045504   ;;  %s6877_s11 = sld [smem:[#allocation28_spill]] }
  0xf0   :  { %1057 = vmatpush1.bf16.msra.mxu1 %v5183_v51  ;;  %v5150_v51 = vld [vmem:[#allocation7 + $0x180] ss:$8 sps:$4 sm:$0xff]   ;;  %vm3902_vm7 = vcmask 359424   ;;  %vm4101_vm8 = vcmask 588800   ;;  %vm4395_vm9 = vcmask 7168  }
  0xf1   :  { %1058 = vmatprep.subr.bf16.mxu1 %v5188_v52  ;;  %v5155_v52 = vld [vmem:[#allocation7 + $0x194] ss:$8 sps:$4 sm:$0xff]  }
  0xf2   :  { %770 = vmatpush1.bf16.msra.mxu0 %v5093_v22 }
  0xf3   :  { %771 = vmatprep.subr.bf16.mxu0 %v5098_v23 }
  0xf4   :  { %1059 = vmatpush1.bf16.msra.mxu1 %v5186_v53  ;;  %v5153_v53 = vld [vmem:[#allocation7 + $0x190] ss:$8 sps:$4 sm:$0xff]  }
  0xf5   :  { %1060 = vmatprep.subr.bf16.mxu1 %v5191_v54  ;;  %v5158_v54 = vld [vmem:[#allocation7 + $0x1a4] ss:$8 sps:$4 sm:$0xff]  }
  0xf6   :  { %772 = vmatpush1.bf16.msra.mxu0 %v5096_v24 }
  0xf7   :  { %773 = vmatprep.subr.bf16.mxu0 %v5101_v25 }
  0xf8   :  { %1061 = vmatpush1.bf16.msra.mxu1 %v5189_v55  ;;  %v5156_v55 = vld [vmem:[#allocation7 + $0x1a0] ss:$8 sps:$4 sm:$0xff]  }
  0xf9   :  { %1062 = vmatprep.subr.bf16.mxu1 %v5194_v56  ;;  %v5161_v56 = vld [vmem:[#allocation7 + $0x1b4] ss:$8 sps:$4 sm:$0xff]  }
  0xfa   :  { %774 = vmatpush1.bf16.msra.mxu0 %v5099_v26 }
  0xfb   :  { %775 = vmatprep.subr.bf16.mxu0 %v5104_v27 }
  0xfc   :  { %1063 = vmatpush1.bf16.msra.mxu1 %v5192_v57  ;;  %v5159_v57 = vld [vmem:[#allocation7 + $0x1b0] ss:$8 sps:$4 sm:$0xff]  }
  0xfd   :  { %1064 = vmatprep.subr.bf16.mxu1 %v5197_v58  ;;  %v5164_v58 = vld [vmem:[#allocation7 + $0x1c4] ss:$8 sps:$4 sm:$0xff]  }
  0xfe   :  { %776 = vmatpush1.bf16.msra.mxu0 %v5102_v28 }
  0xff   :  { %777 = vmatprep.subr.bf16.mxu0 %v5107_v29 }
 0x100   :  { %1065 = vmatpush1.bf16.msra.mxu1 %v5195_v59  ;;  %v5162_v59 = vld [vmem:[#allocation7 + $0x1c0] ss:$8 sps:$4 sm:$0xff]  }
 0x101   :  { %1066 = vmatprep.subr.bf16.mxu1 %v5200_v60  ;;  %v6197_v60 = vsub.s32 2, %v6176_v6  ;;  %v5553_v6 = vld [vmem:[%s6847_s9 + $0x8] ss:$12 sps:$4 sm:$0xff]  }
 0x102   :  { %778 = vmatpush1.bf16.msra.mxu0 %v5105_v30 }
 0x103   :  { %779 = vmatprep.subr.bf16.mxu0 %v5110_v31  ;;  %v5126_v31 = vld [vmem:[#allocation7 + $0x100] ss:$8 sps:$4 sm:$0xff]  }
 0x104   :  { %1067 = vmatpush1.bf16.msra.mxu1 %v5198_v61  ;;  %v5167_v61 = vld [vmem:[#allocation7 + $0x1d4] ss:$8 sps:$4 sm:$0xff]  }
 0x105   :  { %1068 = vmatprep.subr.bf16.mxu1 %v5203_v62  ;;  %v5165_v62 = vld [vmem:[#allocation7 + $0x1d0] ss:$8 sps:$4 sm:$0xff]  }
 0x106   :  { %780 = vmatpush1.bf16.msra.mxu0 %v5108_v32 }
 0x107   :  { %781 = vmatprep.subr.bf16.mxu0 %v5113_v33 }
 0x108   :  { %1069 = vmatpush1.bf16.msra.mxu1 %v5201_v63  ;;  %v219_v63 = vrot.slane %v6181_v11, %v6197_v60  ;;  %v5221_v11 = vld [vmem:[#allocation7 + $0x2f4] ss:$8 sps:$4 sm:$0xff]  }
 0x109   :  { %1070 = vmatprep.subr.bf16.mxu1 %v5206_v1  ;;  %v5170_v1 = vld [vmem:[#allocation7 + $0x1e4] ss:$8 sps:$4 sm:$0xff]  }
 0x10a   :  { %782 = vmatpush1.bf16.msra.mxu0 %v5111_v34  ;;  %v5131_v34 = vld [vmem:[#allocation7 + $0x114] ss:$8 sps:$4 sm:$0xff]  }
 0x10b   :  { %783 = vmatprep.subr.bf16.mxu0 %v5116_v35 }
 0x10c   :  { %1071 = vmatpush1.bf16.msra.mxu1 %v5204_v2  ;;  %v5168_v2 = vld [vmem:[#allocation7 + $0x1e0] ss:$8 sps:$4 sm:$0xff]  }
 0x10d   :  { %1072 = vmatprep.subr.bf16.mxu1 %v5209_v3 }
 0x10e   :  { %784 = vmatpush1.bf16.msra.mxu0 %v5114_v36 }
 0x10f   :  { %785 = vmatprep.subr.bf16.mxu0 %v5119_v37  ;;  %v5129_v37 = vld [vmem:[#allocation7 + $0x110] ss:$8 sps:$4 sm:$0xff]  }
 0x110   :  { %1073 = vmatpush1.bf16.msra.mxu1 %v5207_v5  ;;  %v5171_v5 = vld [vmem:[#allocation7 + $0x1f0] ss:$8 sps:$4 sm:$0xff]  }
 0x111   :  { %1074 = vmatprep.subr.bf16.mxu1 %v5212_v7 }
 0x112   :  { %786 = vmatpush1.bf16.msra.mxu0 %v5117_v38  ;;  %v5134_v38 = vld [vmem:[#allocation7 + $0x124] ss:$8 sps:$4 sm:$0xff]  }
 0x113   :  { %787 = vmatprep.subr.bf16.mxu0 %v5122_v39  ;;  %v5132_v39 = vld [vmem:[#allocation7 + $0x120] ss:$8 sps:$4 sm:$0xff]  }
 0x114   :  { %1075 = vmatpush1.bf16.msra.mxu1 %v5210_v8 }
 0x115   :  { %1076 = vmatprep.subr.bf16.mxu1 %v5215_v10  ;;  %v5218_v10 = vld [vmem:[#allocation7 + $0x2e4] ss:$8 sps:$4 sm:$0xff]  }
 0x116   :  { %788 = vmatpush1.bf16.msra.mxu0 %v5120_v40  ;;  %v5137_v40 = vld [vmem:[#allocation7 + $0x134] ss:$8 sps:$4 sm:$0xff]  }
 0x117   :  { %789 = vmatprep.subr.bf16.mxu0 %v5125_v41  ;;  %v5135_v41 = vld [vmem:[#allocation7 + $0x130] ss:$8 sps:$4 sm:$0xff]  }
 0x118   :  { %1077 = vmatpush1.bf16.msra.mxu1 %v5213_v13  ;;  %v5216_v13 = vld [vmem:[#allocation7 + $0x2e0] ss:$8 sps:$4 sm:$0xff]  }
 0x119   :  { %1078 = vmatprep.subr.bf16.mxu1 %v5218_v10  ;;  %v5279_v10 = vld [vmem:[%s6842_s4 + $0x20] sm:$0xff]  }
 0x11a   :  { %790 = vmatpush1.bf16.msra.mxu0 %v5123_v42  ;;  %v5140_v42 = vld [vmem:[#allocation7 + $0x144] ss:$8 sps:$4 sm:$0xff]  }
 0x11b   :  { %800 = vmatprep.subr.bf16.mxu0 %v5128_v43  ;;  %v5138_v43 = vld [vmem:[#allocation7 + $0x140] ss:$8 sps:$4 sm:$0xff]  }
 0x11c   :  { %1079 = vmatpush1.bf16.msra.mxu1 %v5216_v13  ;;  %v5280_v13 = vld [vmem:[%s6842_s4 + $0x68] sm:$0xff]  }
 0x11d   :  { %1080 = vmatprep.subr.bf16.mxu1 %v5221_v11  ;;  %v5281_v11 = vld [vmem:[%s6842_s4 + $0x28] sm:$0xff]  }
 0x1b0   :  { %v306_v17 = vpop.f32.mrb[0].mxu0  ;;  %v6194_v25 = vpop.f32.mrb[0].mxu1 }
 0x1b1   :  { %v307_v18 = vadd.f32 %v306_v17, %v211_v14  ;;  %v308_v19 = vpop.f32.mrb[1].mxu0  ;;  %v349_v27 = vpop.f32.mrb[1].mxu1  ;;  %v348_v3 = vadd.f32 %v6194_v25, %v219_v63  ;;  %v5219_v14 = vld [vmem:[#allocation7 + $0x2f0] ss:$8 sps:$4 sm:$0xff]  }
 0x1b2   :  { %v309_v21 = vadd.f32 %v308_v19, %v215_v16  ;;  %v310_v22 = vpop.f32.mrb[2].mxu0  ;;  %v350_v28 = vadd.f32 %v349_v27, %v223_v20  ;;  %v351_v29 = vpop.f32.mrb[2].mxu1  ;;  %1081 = vmatpush1.bf16.msra.mxu1 %v5219_v14  ;;  %v5224_v16 = vld [vmem:[#allocation7 + $0x304] ss:$8 sps:$4 sm:$0xff]   ;;  %v5271_v63 = vld [vmem:[%s6842_s4] sm:$0xff]  }
 0x1b3   :  { %v354_v23 = vmax.f32 %v307_v18, 0.0  ;;  %v311_v24 = vpop.f32.mrb[3].mxu0  ;;  %v352_v32 = vpop.f32.mrb[3].mxu1  ;;  %v356_v7 = vmax.f32 %v348_v3, 0.0  ;;  %1300 = vmatprep.subr.bf16.mxu1 %v5224_v16  ;;  %v5222_v29 = vld [vmem:[#allocation7 + $0x300] ss:$8 sps:$4 sm:$0xff]  }
 0x1b4   :  { %v355_v26 = vmax.f32 %v309_v21, 0.0  ;;  %v357_v35 = vmax.f32 %v350_v28, 0.0  ;;  %v427_v17 = vld [vmem:[#allocation16 + $0x1] ss:$8 sm:$0x3] }
 0x1b5   :  { %v358_v33 = vpack.c.bf16 %v354_v23, %v354_v23  ;;  %v360_v8 = vpack.c.bf16 %v356_v7, %v356_v7  ;;  %v432_v18 = vrot.slane %v427_v17, %v6179_v9  ;;  %v436_v19 = vrot.slane %v427_v17, %v6184_v12  ;;  %v5225_v32 = vld [vmem:[#allocation7 + $0x310] ss:$8 sps:$4 sm:$0xff]   ;;  %v5274_v3 = vld [vmem:[%s6842_s4 + $0x50] sm:$0xff]   ;;  %v5277_v7 = vld [vmem:[%s6842_s4 + $0x18] sm:$0xff]  }
 0x1b6   :  { %v359_v30 = vpack.c.bf16 %v355_v26, %v355_v26  ;;  %v361_v36 = vpack.c.bf16 %v357_v35, %v357_v35  ;;  %v5233_v35 = vld [vmem:[#allocation7 + $0x334] ss:$8 sps:$4 sm:$0xff]   ;;  %v5282_v14 = vld [vmem:[%s6842_s4 + $0x70] sm:$0xff]  }
 0x1b7   :  { %v878_v16 = vld [vmem:[#allocation16 + $0x2] ss:$8 sm:$0x3] }
 0x1b8   :  { %791 = vmatprep.mubr.bf16.mxu0 %v359_v30  ;;  %v883_v17 = vrot.slane %v878_v16, %v6179_v9 }
 0x1b9   :  { %792 = vmatmul.mubr.bf16.vlgmr.msra.gmra.mrb[4].mxu0 %v358_v33  ;;  %v5230_v33 = vld [vmem:[#allocation7 + $0x324] ss:$8 sps:$4 sm:$0xff]  }
 0x1ba   :  { %801 = vmatpush1.bf16.msra.mxu0 %v5126_v31  ;;  %832 = vmatprep.mubr.bf16.mxu0 %v361_v36  ;;  %v5227_v31 = vld [vmem:[#allocation7 + $0x314] ss:$8 sps:$4 sm:$0xff]   ;;  %v5231_v36 = vld [vmem:[#allocation7 + $0x330] ss:$8 sps:$4 sm:$0xff]  }
 0x1bb   :  { %802 = vmatprep.subr.bf16.mxu0 %v5131_v34  ;;  %v5228_v34 = vld [vmem:[#allocation7 + $0x320] ss:$8 sps:$4 sm:$0xff]  }
 0x1be   :  { %803 = vmatpush1.bf16.msra.mxu0 %v5129_v37  ;;  %v5236_v37 = vld [vmem:[#allocation7 + $0x344] ss:$8 sps:$4 sm:$0xff]  }
 0x1bf   :  { %804 = vmatprep.subr.bf16.mxu0 %v5134_v38  ;;  %v5234_v38 = vld [vmem:[#allocation7 + $0x340] ss:$8 sps:$4 sm:$0xff]  }
 0x1c2   :  { %805 = vmatpush1.bf16.msra.mxu0 %v5132_v39  ;;  %v5239_v39 = vld [vmem:[#allocation7 + $0x354] ss:$8 sps:$4 sm:$0xff]  }
 0x1c3   :  { %806 = vmatprep.subr.bf16.mxu0 %v5137_v40  ;;  %v5237_v40 = vld [vmem:[#allocation7 + $0x350] ss:$8 sps:$4 sm:$0xff]  }
 0x1c6   :  { %807 = vmatpush1.bf16.msra.mxu0 %v5135_v41  ;;  %v5242_v41 = vld [vmem:[#allocation7 + $0x364] ss:$8 sps:$4 sm:$0xff]  }
 0x1c7   :  { %808 = vmatprep.subr.bf16.mxu0 %v5140_v42  ;;  %v5240_v42 = vld [vmem:[#allocation7 + $0x360] ss:$8 sps:$4 sm:$0xff]  }
 0x1ca   :  { %809 = vmatpush1.bf16.msra.mxu0 %v5138_v43  ;;  %v5245_v43 = vld [vmem:[#allocation7 + $0x374] ss:$8 sps:$4 sm:$0xff]  }
 0x1cb   :  { %810 = vmatprep.subr.bf16.mxu0 %v5143_v44  ;;  %v5243_v44 = vld [vmem:[#allocation7 + $0x370] ss:$8 sps:$4 sm:$0xff]  }
 0x1ce   :  { %811 = vmatpush1.bf16.msra.mxu0 %v5141_v45  ;;  %v5248_v45 = vld [vmem:[#allocation7 + $0x384] ss:$8 sps:$4 sm:$0xff]  }
 0x1cf   :  { %812 = vmatprep.subr.bf16.mxu0 %v5146_v46  ;;  %v5246_v46 = vld [vmem:[#allocation7 + $0x380] ss:$8 sps:$4 sm:$0xff]  }
 0x1d2   :  { %813 = vmatpush1.bf16.msra.mxu0 %v5144_v47  ;;  %v5251_v47 = vld [vmem:[#allocation7 + $0x394] ss:$8 sps:$4 sm:$0xff]  }
 0x1d3   :  { %814 = vmatprep.subr.bf16.mxu0 %v5149_v48  ;;  %v5249_v48 = vld [vmem:[#allocation7 + $0x390] ss:$8 sps:$4 sm:$0xff]  }
 0x1d6   :  { %815 = vmatpush1.bf16.msra.mxu0 %v5147_v49  ;;  %v5254_v49 = vld [vmem:[#allocation7 + $0x3a4] ss:$8 sps:$4 sm:$0xff]  }
 0x1d7   :  { %816 = vmatprep.subr.bf16.mxu0 %v5152_v50  ;;  %v5252_v50 = vld [vmem:[#allocation7 + $0x3a0] ss:$8 sps:$4 sm:$0xff]  }
 0x1da   :  { %817 = vmatpush1.bf16.msra.mxu0 %v5150_v51  ;;  %v5257_v51 = vld [vmem:[#allocation7 + $0x3b4] ss:$8 sps:$4 sm:$0xff]  }
 0x1db   :  { %818 = vmatprep.subr.bf16.mxu0 %v5155_v52  ;;  %v5255_v52 = vld [vmem:[#allocation7 + $0x3b0] ss:$8 sps:$4 sm:$0xff]  }
 0x1de   :  { %819 = vmatpush1.bf16.msra.mxu0 %v5153_v53  ;;  %v5260_v53 = vld [vmem:[#allocation7 + $0x3c4] ss:$8 sps:$4 sm:$0xff]  }
 0x1df   :  { %820 = vmatprep.subr.bf16.mxu0 %v5158_v54  ;;  %v5258_v54 = vld [vmem:[#allocation7 + $0x3c0] ss:$8 sps:$4 sm:$0xff]  }
 0x1e2   :  { %821 = vmatpush1.bf16.msra.mxu0 %v5156_v55  ;;  %v5263_v55 = vld [vmem:[#allocation7 + $0x3d4] ss:$8 sps:$4 sm:$0xff]  }
 0x1e3   :  { %822 = vmatprep.subr.bf16.mxu0 %v5161_v56  ;;  %v5261_v56 = vld [vmem:[#allocation7 + $0x3d0] ss:$8 sps:$4 sm:$0xff]  }
 0x1e6   :  { %823 = vmatpush1.bf16.msra.mxu0 %v5159_v57  ;;  %v5266_v57 = vld [vmem:[#allocation7 + $0x3e4] ss:$8 sps:$4 sm:$0xff]  }
 0x1e7   :  { %824 = vmatprep.subr.bf16.mxu0 %v5164_v58  ;;  %v5264_v58 = vld [vmem:[#allocation7 + $0x3e0] ss:$8 sps:$4 sm:$0xff]  }
 0x1ea   :  { %825 = vmatpush1.bf16.msra.mxu0 %v5162_v59  ;;  %v5269_v59 = vld [vmem:[#allocation7 + $0x3f4] ss:$8 sps:$4 sm:$0xff]  }
 0x1eb   :  { %826 = vmatprep.subr.bf16.mxu0 %v5167_v61  ;;  %v5267_v61 = vld [vmem:[#allocation7 + $0x3f0] ss:$8 sps:$4 sm:$0xff]  }
 0x1ee   :  { %827 = vmatpush1.bf16.msra.mxu0 %v5165_v62  ;;  %v5270_v62 = vld [vmem:[%s6842_s4 + $0x40] sm:$0xff]  }
 0x1ef   :  { %828 = vmatprep.subr.bf16.mxu0 %v5170_v1  ;;  %v5272_v1 = vld [vmem:[%s6842_s4 + $0x48] sm:$0xff]  }
 0x1f2   :  { %829 = vmatpush1.bf16.msra.mxu0 %v5168_v2  ;;  %v5273_v2 = vld [vmem:[%s6842_s4 + $0x8] sm:$0xff]  }
 0x1f3   :  { %830 = vmatprep.subr.bf16.mxu0 %v5173_v4  ;;  %v5275_v4 = vld [vmem:[%s6842_s4 + $0x10] sm:$0xff]  }
 0x1f6   :  { %831 = vmatpush1.bf16.msra.mxu0 %v5171_v5  ;;  %v5276_v5 = vld [vmem:[%s6842_s4 + $0x58] sm:$0xff]  }
 0x1f7   :  { %4857 = vmatprep.subr.bf16.mxu0 %v5270_v62 }
 0x1f9   :  { %833 = vmatmul.mubr.bf16.vlgmr.msra.gmra.mrb[4].mxu0 %v360_v8  ;;  %v5278_v8 = vld [vmem:[%s6842_s4 + $0x60] sm:$0xff]  }
 0x1fa   :  { %4858 = vmatpush3.bf16.msra.mxu0 %v5271_v63 }
 0x1fb   :  { %4859 = vmatprep.subr.bf16.mxu0 %v5272_v1  ;;  %v5294_v1 = vld [vmem:[#allocation7 + $0x400] ss:$8 sps:$4 sm:$0xff]  }
 0x1fe   :  { %4860 = vmatpush3.bf16.msra.mxu0 %v5273_v2 }
 0x1ff   :  { %4861 = vmatprep.subr.bf16.mxu0 %v5274_v3  ;;  %v5299_v3 = vld [vmem:[#allocation7 + $0x414] ss:$8 sps:$4 sm:$0xff]  }
 0x202   :  { %4862 = vmatpush3.bf16.msra.mxu0 %v5275_v4  ;;  %v5297_v4 = vld [vmem:[#allocation7 + $0x410] ss:$8 sps:$4 sm:$0xff]  }
 0x203   :  { %4863 = vmatprep.subr.bf16.mxu0 %v5276_v5  ;;  %v5302_v5 = vld [vmem:[#allocation7 + $0x424] ss:$8 sps:$4 sm:$0xff]  }
 0x206   :  { %4864 = vmatpush3.bf16.msra.mxu0 %v5277_v7  ;;  %v5300_v7 = vld [vmem:[#allocation7 + $0x420] ss:$8 sps:$4 sm:$0xff]  }
 0x207   :  { %4865 = vmatprep.subr.bf16.mxu0 %v5278_v8  ;;  %v5305_v8 = vld [vmem:[#allocation7 + $0x434] ss:$8 sps:$4 sm:$0xff]  }
 0x20a   :  { %4866 = vmatpush3.bf16.msra.mxu0 %v5279_v10  ;;  %v5303_v10 = vld [vmem:[#allocation7 + $0x430] ss:$8 sps:$4 sm:$0xff]  }
 0x20b   :  { %4867 = vmatprep.subr.bf16.mxu0 %v5280_v13  ;;  %v5308_v13 = vld [vmem:[#allocation7 + $0x444] ss:$8 sps:$4 sm:$0xff]  }
 0x20e   :  { %4868 = vmatpush3.bf16.msra.mxu0 %v5281_v11  ;;  %v5306_v11 = vld [vmem:[#allocation7 + $0x440] ss:$8 sps:$4 sm:$0xff]  }
 0x20f   :  { %4869 = vmatprep.subr.bf16.mxu0 %v5282_v14  ;;  %v5311_v14 = vld [vmem:[#allocation7 + $0x454] ss:$8 sps:$4 sm:$0xff]  }
 0x2cc   :  { %v834_v20 = vpop.f32.mrb[4].mxu0 }
 0x2cd   :  { %v5031_v21 = vadd.f32 %v834_v20, %v432_v18  ;;  %v836_v22 = vpop.f32.mrb[5].mxu0  ;;  %v887_v18 = vrot.slane %v878_v16, %v6184_v12  ;;  %v5309_v16 = vld [vmem:[#allocation7 + $0x450] ss:$8 sps:$4 sm:$0xff]  }
 0x2ce   :  { %v5032_v23 = vadd.f32 %v836_v22, %v436_v19  ;;  %v838_v24 = vpop.f32.mrb[6].mxu0 }
 0x2cf   :  { %v841_v25 = vmax.f32 %v5031_v21, 0.0  ;;  %v839_v26 = vpop.f32.mrb[7].mxu0 }
 0x2d0   :  { %v842_v27 = vmax.f32 %v5032_v23, 0.0 }
 0x2d1   :  { %v843_v30 = vpack.c.bf16 %v841_v25, %v841_v25 }
 0x2d2   :  { %v844_v28 = vpack.c.bf16 %v842_v27, %v842_v27 }
 0x2d4   :  { %1082 = vmatprep.mubr.bf16.mxu1 %v844_v28 }
 0x2d5   :  { %1083 = vmatmul.mubr.bf16.vlgmr.msra.gmra.mrb[4].mxu1 %v843_v30  ;;  %v5284_v30 = vld [vmem:[%s6842_s4 + $0x78] sm:$0xff]  }
 0x2d6   :  { %1301 = vmatpush1.bf16.msra.mxu1 %v5222_v29  ;;  %v5283_v29 = vld [vmem:[%s6842_s4 + $0x30] sm:$0xff]  }
 0x2d7   :  { %1302 = vmatprep.subr.bf16.mxu1 %v5227_v31  ;;  %4870 = vmatpush3.bf16.msra.mxu0 %v5283_v29  ;;  %v5285_v31 = vld [vmem:[%s6842_s4 + $0x38] sm:$0xff]  }
 0x2d8   :  { %4871 = vmatprep.subr.bf16.mxu0 %v5284_v30  ;;  %v5332_v29 = vld [vmem:[#allocation7 + $0x4c4] ss:$8 sps:$4 sm:$0xff]   ;;  %v5330_v30 = vld [vmem:[#allocation7 + $0x4c0] ss:$8 sps:$4 sm:$0xff]  }
 0x2da   :  { %1303 = vmatpush1.bf16.msra.mxu1 %v5225_v32  ;;  %v5286_v32 = vld [vmem:[%s6843_s5] sm:$0xff]  }
 0x2db   :  { %1304 = vmatprep.subr.bf16.mxu1 %v5230_v33  ;;  %4872 = vmatpush3.bf16.msra.mxu0 %v5285_v31  ;;  %v5917_v33 = vmov 0.0   ;;  %v5335_v31 = vld [vmem:[#allocation7 + $0x4d4] ss:$8 sps:$4 sm:$0xff]  }
 0x2dc   :  { %4975 = vmatprep.subr.bf16.mxu0 %v5917_v33 }
 0x2de   :  { %1305 = vmatpush1.bf16.msra.mxu1 %v5228_v34  ;;  %v5287_v34 = vld [vmem:[%s6843_s5 + $0x8] sm:$0xff]  }
 0x2df   :  { %1306 = vmatprep.subr.bf16.mxu1 %v5233_v35  ;;  %v5288_v35 = vld [vmem:[%s6843_s5 + $0x10] sm:$0xff]  }
 0x2e2   :  { %1307 = vmatpush1.bf16.msra.mxu1 %v5231_v36  ;;  %v5289_v36 = vld [vmem:[%s6843_s5 + $0x18] sm:$0xff]  }
 0x2e3   :  { %1308 = vmatprep.subr.bf16.mxu1 %v5236_v37  ;;  %v5290_v37 = vld [vmem:[%s6843_s5 + $0x20] sm:$0xff]  }
 0x2e6   :  { %1309 = vmatpush1.bf16.msra.mxu1 %v5234_v38  ;;  %v5291_v38 = vld [vmem:[%s6843_s5 + $0x28] sm:$0xff]  }
 0x2e7   :  { %1310 = vmatprep.subr.bf16.mxu1 %v5239_v39  ;;  %v1128_v39 = vld [vmem:[#allocation16 + $0x3] ss:$8 sm:$0x3] }
 0x2ea   :  { %1311 = vmatpush1.bf16.msra.mxu1 %v5237_v40  ;;  %v1133_v40 = vrot.slane %v1128_v39, %v6179_v9 }
 0x2eb   :  { %1312 = vmatprep.subr.bf16.mxu1 %v5242_v41  ;;  %v1137_v41 = vrot.slane %v1128_v39, %v6184_v12  ;;  %v5345_v39 = vld [vmem:[%s6844_s6 + $0x18] sm:$0xff]  }
 0x2ee   :  { %1313 = vmatpush1.bf16.msra.mxu1 %v5240_v42 }
 0x2ef   :  { %1314 = vmatprep.subr.bf16.mxu1 %v5245_v43 }
 0x2f2   :  { %1315 = vmatpush1.bf16.msra.mxu1 %v5243_v44 }
 0x2f3   :  { %1316 = vmatprep.subr.bf16.mxu1 %v5248_v45 }
 0x2f6   :  { %1317 = vmatpush1.bf16.msra.mxu1 %v5246_v46 }
 0x2f7   :  { %1318 = vmatprep.subr.bf16.mxu1 %v5251_v47 }
 0x2fa   :  { %1319 = vmatpush1.bf16.msra.mxu1 %v5249_v48 }
 0x2fb   :  { %1320 = vmatprep.subr.bf16.mxu1 %v5254_v49 }
 0x2fe   :  { %1321 = vmatpush1.bf16.msra.mxu1 %v5252_v50  ;;  %v5292_v50 = vld [vmem:[%s6843_s5 + $0x30] sm:$0xff]  }
 0x2ff   :  { %1322 = vmatprep.subr.bf16.mxu1 %v5257_v51  ;;  %v5293_v51 = vld [vmem:[%s6843_s5 + $0x38] sm:$0xff]  }
 0x302   :  { %1323 = vmatpush1.bf16.msra.mxu1 %v5255_v52  ;;  %v5296_v52 = vld [vmem:[#allocation7 + $0x404] ss:$8 sps:$4 sm:$0xff]  }
 0x303   :  { %1324 = vmatprep.subr.bf16.mxu1 %v5260_v53  ;;  %v5342_v53 = vld [vmem:[%s6844_s6] sm:$0xff]  }
 0x306   :  { %1325 = vmatpush1.bf16.msra.mxu1 %v5258_v54  ;;  %v5343_v54 = vld [vmem:[%s6844_s6 + $0x8] sm:$0xff]  }
 0x307   :  { %1326 = vmatprep.subr.bf16.mxu1 %v5263_v55 }
 0x30a   :  { %1327 = vmatpush1.bf16.msra.mxu1 %v5261_v56  ;;  %v1375_v56 = vld [vmem:[#allocation16 + $0x4] ss:$0 sm:$0xff] }
 0x30b   :  { %1328 = vmatprep.subr.bf16.mxu1 %v5266_v57 }
 0x30e   :  { %1329 = vmatpush1.bf16.msra.mxu1 %v5264_v58 }
 0x30f   :  { %1330 = vmatprep.subr.bf16.mxu1 %v5269_v59 }
 0x312   :  { %1331 = vmatpush1.bf16.msra.mxu1 %v5267_v61 }
 0x313   :  { %4955 = vmatprep.subr.bf16.mxu1 %v5917_v33 }
 0x3a8   :  { %v1084_v19 = vpop.f32.mrb[4].mxu1 }
 0x3a9   :  { %v1085_v20 = vadd.f32 %v1084_v19, %v883_v17  ;;  %v1086_v21 = vpop.f32.mrb[5].mxu1  ;;  %v5314_v17 = vld [vmem:[#allocation7 + $0x464] ss:$8 sps:$4 sm:$0xff]   ;;  %v5317_v19 = vld [vmem:[#allocation7 + $0x474] ss:$8 sps:$4 sm:$0xff]  }
 0x3aa   :  { %v1087_v22 = vadd.f32 %v1086_v21, %v887_v18  ;;  %v1088_v23 = vpop.f32.mrb[6].mxu1  ;;  %v5312_v18 = vld [vmem:[#allocation7 + $0x460] ss:$8 sps:$4 sm:$0xff]   ;;  %v5320_v21 = vld [vmem:[#allocation7 + $0x484] ss:$8 sps:$4 sm:$0xff]  }
 0x3ab   :  { %v1091_v24 = vmax.f32 %v1085_v20, 0.0  ;;  %v1089_v25 = vpop.f32.mrb[7].mxu1  ;;  %v5315_v20 = vld [vmem:[#allocation7 + $0x470] ss:$8 sps:$4 sm:$0xff]   ;;  %v5323_v23 = vld [vmem:[#allocation7 + $0x494] ss:$8 sps:$4 sm:$0xff]  }
 0x3ac   :  { %v1092_v26 = vmax.f32 %v1087_v22, 0.0  ;;  %v5318_v22 = vld [vmem:[#allocation7 + $0x480] ss:$8 sps:$4 sm:$0xff]   ;;  %v5326_v25 = vld [vmem:[#allocation7 + $0x4a4] ss:$8 sps:$4 sm:$0xff]  }
 0x3ad   :  { %v1093_v28 = vpack.c.bf16 %v1091_v24, %v1091_v24  ;;  %v5321_v24 = vld [vmem:[#allocation7 + $0x490] ss:$8 sps:$4 sm:$0xff]  }
 0x3ae   :  { %v1094_v27 = vpack.c.bf16 %v1092_v26, %v1092_v26  ;;  %v5324_v26 = vld [vmem:[#allocation7 + $0x4a0] ss:$8 sps:$4 sm:$0xff]  }
 0x3b0   :  { %1332 = vmatprep.mubr.bf16.mxu1 %v1094_v27  ;;  %v5329_v27 = vld [vmem:[#allocation7 + $0x4b4] ss:$8 sps:$4 sm:$0xff]  }
 0x3b1   :  { %1333 = vmatmul.mubr.bf16.vlgmr.msra.gmra.mrb[8].mxu1 %v1093_v28  ;;  %v5327_v28 = vld [vmem:[#allocation7 + $0x4b0] ss:$8 sps:$4 sm:$0xff]  }
 0x3b2   :  { %4956 = vmatpush3.bf16.msra.mxu1 %v5286_v32  ;;  %4971 = vmatprep.mubr.msk.bf16.mxu1 %vm5918_vm1, %v5917_v33  ;;  %v5333_v32 = vld [vmem:[#allocation7 + $0x4d0] ss:$8 sps:$4 sm:$0xff]  }
 0x3b3   :  { %4957 = vmatprep.subr.bf16.mxu1 %v5917_v33 }
 0x3b6   :  { %4958 = vmatpush3.bf16.msra.mxu1 %v5287_v34  ;;  %v5338_v34 = vld [vmem:[#allocation7 + $0x4e4] ss:$8 sps:$4 sm:$0xff]  }
 0x3b7   :  { %4959 = vmatprep.subr.bf16.mxu1 %v5917_v33 }
 0x3ba   :  { %4960 = vmatpush3.bf16.msra.mxu1 %v5288_v35  ;;  %v5336_v35 = vld [vmem:[#allocation7 + $0x4e0] ss:$8 sps:$4 sm:$0xff]  }
 0x3bb   :  { %4961 = vmatprep.subr.bf16.mxu1 %v5917_v33 }
 0x3be   :  { %4962 = vmatpush3.bf16.msra.mxu1 %v5289_v36  ;;  %v5341_v36 = vld [vmem:[#allocation7 + $0x4f4] ss:$8 sps:$4 sm:$0xff]  }
 0x3bf   :  { %4963 = vmatprep.subr.bf16.mxu1 %v5917_v33 }
 0x3c2   :  { %4964 = vmatpush3.bf16.msra.mxu1 %v5290_v37  ;;  %v5339_v37 = vld [vmem:[#allocation7 + $0x4f0] ss:$8 sps:$4 sm:$0xff]  }
 0x3c3   :  { %4965 = vmatprep.subr.bf16.mxu1 %v5917_v33 }
 0x3c6   :  { %4966 = vmatpush3.bf16.msra.mxu1 %v5291_v38  ;;  %v5344_v38 = vld [vmem:[%s6844_s6 + $0x10] sm:$0xff]  }
 0x3c7   :  { %4967 = vmatprep.subr.bf16.mxu1 %v5917_v33 }
 0x3ca   :  { %4968 = vmatpush3.bf16.msra.mxu1 %v5292_v50  ;;  %v5351_v50 = vld [vmem:[#allocation7 + $0x514] ss:$8 sps:$4 sm:$0xff]  }
 0x3cb   :  { %4969 = vmatprep.subr.bf16.mxu1 %v5917_v33 }
 0x3ce   :  { %4970 = vmatpush3.bf16.msra.mxu1 %v5293_v51  ;;  %v5349_v51 = vld [vmem:[#allocation7 + $0x510] ss:$8 sps:$4 sm:$0xff]  }
 0x3cf   :  { %1903 = vmatprep.subr.bf16.mxu1 %v5296_v52  ;;  %v5354_v52 = vld [vmem:[#allocation7 + $0x524] ss:$8 sps:$4 sm:$0xff]  }
 0x484   :  { %v1334_v42 = vpop.f32.mrb[8].mxu1 }
 0x485   :  { %v1335_v43 = vadd.f32 %v1334_v42, %v1133_v40  ;;  %v1336_v44 = vpop.f32.mrb[9].mxu1  ;;  %v5348_v40 = vld [vmem:[#allocation7 + $0x504] ss:$8 sps:$4 sm:$0xff]  }
 0x486   :  { %v1337_v45 = vadd.f32 %v1336_v44, %v1137_v41  ;;  %v1338_v46 = vpop.f32.mrb[10].mxu1  ;;  %v1530_v41 = vld [vmem:[#allocation16 + $0x5] ss:$0 sm:$0xff] }
 0x487   :  { %v1339_v47 = vpop.f32.mrb[11].mxu1  ;;  %v6282_v49 = vpack.c.bf16 %v1335_v43, %v1335_v43 }
 0x488   :  { %v1342_v48 = vpack.c.bf16 %v1337_v45, %v1337_v45 }
 0x48a   :  { %1504 = vmatprep.mubr.bf16.mxu0 %v1342_v48 }
 0x48b   :  { %1505 = vmatmul.mubr.bf16.vlgmr.msra.gmra.mrb[8].mxu0 %v6282_v49 }
 0x48c   :  { %4983 = vmatprep.mubr.msk.bf16.mxu0 %vm5918_vm1, %v5917_v33  ;;  %4976 = vmatpush3.bf16.msra.mxu0 %v5342_v53  ;;  %v5352_v53 = vld [vmem:[#allocation7 + $0x520] ss:$8 sps:$4 sm:$0xff]  }
 0x48d   :  { %4977 = vmatprep.subr.bf16.mxu0 %v5917_v33 }
 0x490   :  { %4978 = vmatpush3.bf16.msra.mxu0 %v5343_v54  ;;  %v5357_v54 = vld [vmem:[#allocation7 + $0x534] ss:$8 sps:$4 sm:$0xff]  }
 0x491   :  { %4979 = vmatprep.subr.bf16.mxu0 %v5917_v33 }
 0x494   :  { %4980 = vmatpush3.bf16.msra.mxu0 %v5344_v38  ;;  %v5397_v38 = vld [vmem:[#allocation7 + $0x600] ss:$8 sps:$4 sm:$0xff]  }
 0x495   :  { %4981 = vmatprep.subr.bf16.mxu0 %v5917_v33 }
 0x498   :  { %4982 = vmatpush3.bf16.msra.mxu0 %v5345_v39  ;;  %v5399_v39 = vld [vmem:[#allocation7 + $0x604] ss:$8 sps:$4 sm:$0xff]  }
 0x499   :  { %2153 = vmatprep.subr.bf16.mxu0 %v5348_v40  ;;  %v5402_v40 = vld [vmem:[#allocation7 + $0x614] ss:$8 sps:$4 sm:$0xff]  }
 0x55e   :  { %v4873_v55 = vpop.f32.mrb[8].mxu0 }
 0x55f   :  { %v4874_v57 = vpop.f32.mrb[9].mxu0 }
 0x560   :  { %v4875_v58 = vadd.f32 %v4874_v57, %v4873_v55  ;;  %v4876_v59 = vpop.f32.mrb[10].mxu0  ;;  %v5355_v55 = vld [vmem:[#allocation7 + $0x530] ss:$8 sps:$4 sm:$0xff]   ;;  %v5358_v57 = vld [vmem:[#allocation7 + $0x540] ss:$8 sps:$4 sm:$0xff]  }
 0x561   :  { %v4877_v61 = vpop.f32.mrb[11].mxu0  ;;  %v5361_v59 = vld [vmem:[#allocation7 + $0x550] ss:$8 sps:$4 sm:$0xff]  }
 0x562   :  { %v1507_v62 = vadd.f32 %v4875_v58, %v1375_v56  ;;  %v5360_v56 = vld [vmem:[#allocation7 + $0x544] ss:$8 sps:$4 sm:$0xff]   ;;  %v5363_v58 = vld [vmem:[#allocation7 + $0x554] ss:$8 sps:$4 sm:$0xff]  }
 0x563   :  { %v5366_v61 = vld [vmem:[#allocation7 + $0x564] ss:$8 sps:$4 sm:$0xff]  }
 0x564   :  { %v1512_v63 = vmax.f32 %v1507_v62, 0.0  ;;  %v5364_v62 = vld [vmem:[#allocation7 + $0x560] ss:$8 sps:$4 sm:$0xff]  }
 0x566   :  { %v1513_v2 = vpack.c.bf16 %v1512_v63, %v1512_v63  ;;  %v5369_v63 = vld [vmem:[#allocation7 + $0x574] ss:$8 sps:$4 sm:$0xff]  }
 0x568   :  { %4972 = vmatmul.mubr.bf16.vlgmr.msra.gmra.mrb[12].mxu1 %v1513_v2  ;;  %v5372_v2 = vld [vmem:[#allocation7 + $0x584] ss:$8 sps:$4 sm:$0xff]  }
 0x569   :  { %1904 = vmatpush1.bf16.msra.mxu1 %v5294_v1  ;;  %1935 = vmatprep.mubr.bf16.mxu1 %v1342_v48  ;;  %v5346_v48 = vld [vmem:[#allocation7 + $0x500] ss:$8 sps:$4 sm:$0xff]   ;;  %v5367_v1 = vld [vmem:[#allocation7 + $0x570] ss:$8 sps:$4 sm:$0xff]  }
 0x56a   :  { %1905 = vmatprep.subr.bf16.mxu1 %v5299_v3  ;;  %v5370_v3 = vld [vmem:[#allocation7 + $0x580] ss:$8 sps:$4 sm:$0xff]  }
 0x56d   :  { %1906 = vmatpush1.bf16.msra.mxu1 %v5297_v4  ;;  %v5375_v4 = vld [vmem:[#allocation7 + $0x594] ss:$8 sps:$4 sm:$0xff]  }
 0x56e   :  { %1907 = vmatprep.subr.bf16.mxu1 %v5302_v5  ;;  %v5373_v5 = vld [vmem:[#allocation7 + $0x590] ss:$8 sps:$4 sm:$0xff]  }
 0x571   :  { %1908 = vmatpush1.bf16.msra.mxu1 %v5300_v7  ;;  %v5378_v7 = vld [vmem:[#allocation7 + $0x5a4] ss:$8 sps:$4 sm:$0xff]  }
 0x572   :  { %1909 = vmatprep.subr.bf16.mxu1 %v5305_v8  ;;  %v5376_v8 = vld [vmem:[#allocation7 + $0x5a0] ss:$8 sps:$4 sm:$0xff]  }
 0x575   :  { %1910 = vmatpush1.bf16.msra.mxu1 %v5303_v10  ;;  %v5381_v10 = vld [vmem:[#allocation7 + $0x5b4] ss:$8 sps:$4 sm:$0xff]  }
 0x576   :  { %1911 = vmatprep.subr.bf16.mxu1 %v5308_v13  ;;  %v5379_v13 = vld [vmem:[#allocation7 + $0x5b0] ss:$8 sps:$4 sm:$0xff]  }
 0x579   :  { %1912 = vmatpush1.bf16.msra.mxu1 %v5306_v11  ;;  %v5384_v11 = vld [vmem:[#allocation7 + $0x5c4] ss:$8 sps:$4 sm:$0xff]  }
 0x57a   :  { %1913 = vmatprep.subr.bf16.mxu1 %v5311_v14  ;;  %v5382_v14 = vld [vmem:[#allocation7 + $0x5c0] ss:$8 sps:$4 sm:$0xff]  }
 0x57d   :  { %1914 = vmatpush1.bf16.msra.mxu1 %v5309_v16  ;;  %v5387_v16 = vld [vmem:[#allocation7 + $0x5d4] ss:$8 sps:$4 sm:$0xff]  }
 0x57e   :  { %1915 = vmatprep.subr.bf16.mxu1 %v5314_v17  ;;  %v5385_v17 = vld [vmem:[#allocation7 + $0x5d0] ss:$8 sps:$4 sm:$0xff]  }
 0x581   :  { %1916 = vmatpush1.bf16.msra.mxu1 %v5312_v18  ;;  %v5390_v18 = vld [vmem:[#allocation7 + $0x5e4] ss:$8 sps:$4 sm:$0xff]  }
 0x582   :  { %1917 = vmatprep.subr.bf16.mxu1 %v5317_v19  ;;  %v1731_v19 = vld [vmem:[#allocation16 + $0x7] ss:$8 sm:$0x3] }
 0x585   :  { %1918 = vmatpush1.bf16.msra.mxu1 %v5315_v20  ;;  %v5388_v20 = vld [vmem:[#allocation7 + $0x5e0] ss:$8 sps:$4 sm:$0xff]  }
 0x586   :  { %1919 = vmatprep.subr.bf16.mxu1 %v5320_v21  ;;  %v1736_v21 = vrot.slane %v1731_v19, %v6179_v9 }
 0x589   :  { %1920 = vmatpush1.bf16.msra.mxu1 %v5318_v22  ;;  %v5393_v22 = vld [vmem:[#allocation7 + $0x5f4] ss:$8 sps:$4 sm:$0xff]  }
 0x58a   :  { %1921 = vmatprep.subr.bf16.mxu1 %v5323_v23  ;;  %v1740_v23 = vrot.slane %v1731_v19, %v6184_v12  ;;  %v1981_v19 = vld [vmem:[#allocation16 + $0x20] ss:$8 sm:$0x3] }
 0x58d   :  { %1922 = vmatpush1.bf16.msra.mxu1 %v5321_v24 }
 0x58e   :  { %1923 = vmatprep.subr.bf16.mxu1 %v5326_v25  ;;  %v5391_v25 = vld [vmem:[#allocation7 + $0x5f0] ss:$8 sps:$4 sm:$0xff]  }
 0x591   :  { %1924 = vmatpush1.bf16.msra.mxu1 %v5324_v26 }
 0x592   :  { %1925 = vmatprep.subr.bf16.mxu1 %v5329_v27 }
 0x595   :  { %1926 = vmatpush1.bf16.msra.mxu1 %v5327_v28 }
 0x596   :  { %1927 = vmatprep.subr.bf16.mxu1 %v5332_v29 }
 0x599   :  { %1928 = vmatpush1.bf16.msra.mxu1 %v5330_v30 }
 0x59a   :  { %1929 = vmatprep.subr.bf16.mxu1 %v5335_v31 }
 0x59d   :  { %1930 = vmatpush1.bf16.msra.mxu1 %v5333_v32 }
 0x59e   :  { %1931 = vmatprep.subr.bf16.mxu1 %v5338_v34 }
 0x5a1   :  { %1932 = vmatpush1.bf16.msra.mxu1 %v5336_v35 }
 0x5a2   :  { %1933 = vmatprep.subr.bf16.mxu1 %v5341_v36  ;;  %v5396_v36 = vld [vmem:[#allocation15 + $0x4] ss:$8 sps:$4 sm:$0xff]  }
 0x5a5   :  { %1934 = vmatpush1.bf16.msra.mxu1 %v5339_v37  ;;  %v5394_v37 = vld [vmem:[#allocation15] ss:$8 sps:$4 sm:$0xff]  }
 0x5a6   :  { %2403 = vmatprep.subr.bf16.mxu1 %v5399_v39  ;;  %v5451_v39 = vld [vmem:[%s6855_s17 + $0x58] sm:$0xff]  }
 0x5a8   :  { %1936 = vmatmul.mubr.bf16.vlgmr.msra.gmra.mrb[16].mxu1 %v6282_v49 }
 0x5a9   :  { %2404 = vmatpush1.bf16.msra.mxu1 %v5397_v38  ;;  %v5450_v38 = vld [vmem:[%s6855_s17 + $0x10] sm:$0xff]  }
 0x5aa   :  { %2405 = vmatprep.subr.bf16.mxu1 %v5402_v40  ;;  %v5452_v40 = vld [vmem:[%s6855_s17 + $0x18] sm:$0xff]  }
 0x63b   :  { %v1613_v42 = vpop.f32.mrb[12].mxu1 }
 0x63c   :  { %v1614_v43 = vadd.f32 %v1613_v42, %v1530_v41  ;;  %v4973_v44 = vpop.f32.mrb[13].mxu1  ;;  %v5400_v41 = vld [vmem:[#allocation7 + $0x610] ss:$8 sps:$4 sm:$0xff]   ;;  %v5405_v42 = vld [vmem:[#allocation7 + $0x624] ss:$8 sps:$4 sm:$0xff]  }
 0x63d   :  { %v1616_v45 = vpop.f32.mrb[14].mxu1  ;;  %2406 = vmatpush1.bf16.msra.mxu1 %v5400_v41  ;;  %v5408_v44 = vld [vmem:[#allocation7 + $0x634] ss:$8 sps:$4 sm:$0xff]  }
 0x63e   :  { %v1619_v46 = vmax.f32 %v1614_v43, 0.0  ;;  %v4974_v47 = vpop.f32.mrb[15].mxu1  ;;  %v5403_v43 = vld [vmem:[#allocation7 + $0x620] ss:$8 sps:$4 sm:$0xff]   ;;  %2407 = vmatprep.subr.bf16.mxu1 %v5405_v42  ;;  %v5406_v45 = vld [vmem:[#allocation7 + $0x630] ss:$8 sps:$4 sm:$0xff]  }
 0x63f   :  { %v5409_v47 = vld [vmem:[#allocation7 + $0x640] ss:$8 sps:$4 sm:$0xff]   ;;  %v5453_v41 = vld [vmem:[%s6855_s17 + $0x60] sm:$0xff]  }
 0x640   :  { %v1620_v49 = vpack.c.bf16 %v1619_v46, %v1619_v46  ;;  %v5411_v46 = vld [vmem:[#allocation7 + $0x644] ss:$8 sps:$4 sm:$0xff]   ;;  %v5454_v42 = vld [vmem:[%s6855_s17 + $0x20] sm:$0xff]  }
 0x641   :  { %2408 = vmatpush1.bf16.msra.mxu1 %v5403_v43  ;;  %v5455_v43 = vld [vmem:[%s6855_s17 + $0x68] sm:$0xff]  }
 0x642   :  { %4984 = vmatmul.mubr.msk.bf16.vlgmr.msra.gmra.mrb[12].mxu0 %vm1654_vm2, %v1620_v49  ;;  %2409 = vmatprep.subr.bf16.mxu1 %v5408_v44  ;;  %v5412_v49 = vld [vmem:[#allocation7 + $0x650] ss:$8 sps:$4 sm:$0xff]  }
 0x643   :  { %2154 = vmatpush1.bf16.msra.mxu0 %v5346_v48  ;;  %v5414_v48 = vld [vmem:[#allocation7 + $0x654] ss:$8 sps:$4 sm:$0xff]  }
 0x644   :  { %2155 = vmatprep.subr.bf16.mxu0 %v5351_v50  ;;  %v5417_v50 = vld [vmem:[#allocation7 + $0x664] ss:$8 sps:$4 sm:$0xff]   ;;  %v5456_v44 = vld [vmem:[%s6855_s17 + $0x28] sm:$0xff]  }
 0x645   :  { %2410 = vmatpush1.bf16.msra.mxu1 %v5406_v45  ;;  %v5457_v45 = vld [vmem:[%s6855_s17 + $0x70] sm:$0xff]  }
 0x646   :  { %2411 = vmatprep.subr.bf16.mxu1 %v5411_v46  ;;  %v5458_v46 = vld [vmem:[%s6855_s17 + $0x30] sm:$0xff]  }
 0x647   :  { %2156 = vmatpush1.bf16.msra.mxu0 %v5349_v51  ;;  %v5415_v51 = vld [vmem:[#allocation7 + $0x660] ss:$8 sps:$4 sm:$0xff]  }
 0x648   :  { %2157 = vmatprep.subr.bf16.mxu0 %v5354_v52  ;;  %v5420_v52 = vld [vmem:[#allocation7 + $0x674] ss:$8 sps:$4 sm:$0xff]  }
 0x649   :  { %2412 = vmatpush1.bf16.msra.mxu1 %v5409_v47  ;;  %v5459_v47 = vld [vmem:[%s6855_s17 + $0x78] sm:$0xff]  }
 0x64a   :  { %2413 = vmatprep.subr.bf16.mxu1 %v5414_v48  ;;  %v5460_v48 = vld [vmem:[%s6855_s17 + $0x38] sm:$0xff]  }
 0x64b   :  { %2158 = vmatpush1.bf16.msra.mxu0 %v5352_v53  ;;  %v5418_v53 = vld [vmem:[#allocation7 + $0x670] ss:$8 sps:$4 sm:$0xff]  }
 0x64c   :  { %2159 = vmatprep.subr.bf16.mxu0 %v5357_v54  ;;  %v5423_v54 = vld [vmem:[#allocation7 + $0x684] ss:$8 sps:$4 sm:$0xff]  }
 0x64d   :  { %2414 = vmatpush1.bf16.msra.mxu1 %v5412_v49  ;;  %v5463_v49 = vld [vmem:[#allocation9 + $0x4] ss:$16 sps:$4 sm:$0xff]  }
 0x64e   :  { %2415 = vmatprep.subr.bf16.mxu1 %v5417_v50  ;;  %v5464_v50 = vld [vmem:[#allocation9 + $0x8] ss:$16 sps:$4 sm:$0xff]  }
 0x64f   :  { %2160 = vmatpush1.bf16.msra.mxu0 %v5355_v55  ;;  %v5421_v55 = vld [vmem:[#allocation7 + $0x680] ss:$8 sps:$4 sm:$0xff]  }
 0x650   :  { %2161 = vmatprep.subr.bf16.mxu0 %v5360_v56  ;;  %v5426_v56 = vld [vmem:[#allocation7 + $0x694] ss:$8 sps:$4 sm:$0xff]  }
 0x651   :  { %2416 = vmatpush1.bf16.msra.mxu1 %v5415_v51  ;;  %v5466_v51 = vld [vmem:[#allocation9 + $0xc] ss:$16 sps:$4 sm:$0xff]  }
 0x652   :  { %2417 = vmatprep.subr.bf16.mxu1 %v5420_v52 }
 0x653   :  { %2162 = vmatpush1.bf16.msra.mxu0 %v5358_v57  ;;  %v5424_v57 = vld [vmem:[#allocation7 + $0x690] ss:$8 sps:$4 sm:$0xff]  }
 0x654   :  { %2163 = vmatprep.subr.bf16.mxu0 %v5363_v58  ;;  %v5429_v58 = vld [vmem:[#allocation7 + $0x6a4] ss:$8 sps:$4 sm:$0xff]  }
 0x655   :  { %2418 = vmatpush1.bf16.msra.mxu1 %v5418_v53 }
 0x656   :  { %2419 = vmatprep.subr.bf16.mxu1 %v5423_v54 }
 0x657   :  { %2164 = vmatpush1.bf16.msra.mxu0 %v5361_v59  ;;  %v5427_v59 = vld [vmem:[#allocation7 + $0x6a0] ss:$8 sps:$4 sm:$0xff]  }
 0x658   :  { %2165 = vmatprep.subr.bf16.mxu0 %v5366_v61  ;;  %v5432_v61 = vld [vmem:[#allocation7 + $0x6b4] ss:$8 sps:$4 sm:$0xff]  }
 0x659   :  { %2420 = vmatpush1.bf16.msra.mxu1 %v5421_v55 }
 0x65a   :  { %2421 = vmatprep.subr.bf16.mxu1 %v5426_v56  ;;  %v2231_v56 = vld [vmem:[#allocation16 + $0x21] ss:$8 sm:$0x3] }
 0x65b   :  { %2166 = vmatpush1.bf16.msra.mxu0 %v5364_v62  ;;  %v5430_v62 = vld [vmem:[#allocation7 + $0x6b0] ss:$8 sps:$4 sm:$0xff]  }
 0x65c   :  { %2167 = vmatprep.subr.bf16.mxu0 %v5369_v63  ;;  %v5435_v63 = vld [vmem:[#allocation7 + $0x6c4] ss:$8 sps:$4 sm:$0xff]  }
 0x65d   :  { %2422 = vmatpush1.bf16.msra.mxu1 %v5424_v57  ;;  %v2236_v57 = vrot.slane %v2231_v56, %v6179_v9 }
 0x65e   :  { %2423 = vmatprep.subr.bf16.mxu1 %v5429_v58  ;;  %v2240_v58 = vrot.slane %v2231_v56, %v6184_v12  ;;  %v5531_v56 = vld [vmem:[%s6847_s9 + $0x1f8] ss:$12 sps:$4 sm:$0xff]  }
 0x65f   :  { %2168 = vmatpush1.bf16.msra.mxu0 %v5367_v1  ;;  %v5433_v1 = vld [vmem:[#allocation7 + $0x6c0] ss:$8 sps:$4 sm:$0xff]  }
 0x660   :  { %2169 = vmatprep.subr.bf16.mxu0 %v5372_v2  ;;  %v5438_v2 = vld [vmem:[#allocation7 + $0x6d4] ss:$8 sps:$4 sm:$0xff]  }
 0x661   :  { %2424 = vmatpush1.bf16.msra.mxu1 %v5427_v59 }
 0x662   :  { %2425 = vmatprep.subr.bf16.mxu1 %v5432_v61 }
 0x663   :  { %2170 = vmatpush1.bf16.msra.mxu0 %v5370_v3  ;;  %v5436_v3 = vld [vmem:[#allocation7 + $0x6d0] ss:$8 sps:$4 sm:$0xff]  }
 0x664   :  { %2171 = vmatprep.subr.bf16.mxu0 %v5375_v4  ;;  %v5441_v4 = vld [vmem:[#allocation7 + $0x6e4] ss:$8 sps:$4 sm:$0xff]  }
 0x665   :  { %2426 = vmatpush1.bf16.msra.mxu1 %v5430_v62 }
 0x666   :  { %2427 = vmatprep.subr.bf16.mxu1 %v5435_v63 }
 0x667   :  { %2172 = vmatpush1.bf16.msra.mxu0 %v5373_v5  ;;  %v5439_v5 = vld [vmem:[#allocation7 + $0x6e0] ss:$8 sps:$4 sm:$0xff]  }
 0x668   :  { %2173 = vmatprep.subr.bf16.mxu0 %v5378_v7  ;;  %v5444_v7 = vld [vmem:[#allocation7 + $0x6f4] ss:$8 sps:$4 sm:$0xff]  }
 0x669   :  { %2428 = vmatpush1.bf16.msra.mxu1 %v5433_v1 }
 0x66a   :  { %2429 = vmatprep.subr.bf16.mxu1 %v5438_v2 }
 0x66b   :  { %2174 = vmatpush1.bf16.msra.mxu0 %v5376_v8  ;;  %v5442_v8 = vld [vmem:[#allocation7 + $0x6f0] ss:$8 sps:$4 sm:$0xff]  }
 0x66c   :  { %2175 = vmatprep.subr.bf16.mxu0 %v5381_v10  ;;  %v1629_v10 = vld [vmem:[#allocation16 + $0x6] ss:$0 sm:$0xff] }
 0x66d   :  { %2430 = vmatpush1.bf16.msra.mxu1 %v5436_v3 }
 0x66e   :  { %2431 = vmatprep.subr.bf16.mxu1 %v5441_v4 }
 0x66f   :  { %2176 = vmatpush1.bf16.msra.mxu0 %v5379_v13 }
 0x670   :  { %2177 = vmatprep.subr.bf16.mxu0 %v5384_v11 }
 0x671   :  { %2432 = vmatpush1.bf16.msra.mxu1 %v5439_v5 }
 0x672   :  { %2433 = vmatprep.subr.bf16.mxu1 %v5444_v7  ;;  %v5461_v7 = vld [vmem:[#allocation9] ss:$16 sps:$4 sm:$0xff]  }
 0x673   :  { %2178 = vmatpush1.bf16.msra.mxu0 %v5382_v14 }
 0x674   :  { %2179 = vmatprep.subr.bf16.mxu0 %v5387_v16 }
 0x675   :  { %2434 = vmatpush1.bf16.msra.mxu1 %v5442_v8 }
 0x676   :  { %2818 = vmatprep.subr.bf16.mxu1 %v5466_v51  ;;  %v5489_v51 = vld [vmem:[%s6847_s9 + $0x60] ss:$12 sps:$4 sm:$0xff]  }
 0x677   :  { %2180 = vmatpush1.bf16.msra.mxu0 %v5385_v17 }
 0x678   :  { %2181 = vmatprep.subr.bf16.mxu0 %v5390_v18 }
 0x67b   :  { %v1937_v24 = vpop.f32.mrb[16].mxu1  ;;  %2182 = vmatpush1.bf16.msra.mxu0 %v5388_v20  ;;  %v1986_v20 = vrot.slane %v1981_v19, %v6179_v9 }
 0x67c   :  { %v1938_v26 = vadd.f32 %v1937_v24, %v1736_v21  ;;  %v1939_v27 = vpop.f32.mrb[17].mxu1  ;;  %2183 = vmatprep.subr.bf16.mxu0 %v5393_v22  ;;  %v1990_v21 = vrot.slane %v1981_v19, %v6184_v12 }
 0x67d   :  { %v1940_v28 = vadd.f32 %v1939_v27, %v1740_v23  ;;  %v1941_v29 = vpop.f32.mrb[18].mxu1 }
 0x67e   :  { %v1944_v30 = vmax.f32 %v1938_v26, 0.0  ;;  %v1942_v31 = vpop.f32.mrb[19].mxu1 }
 0x67f   :  { %v1945_v32 = vmax.f32 %v1940_v28, 0.0  ;;  %2184 = vmatpush1.bf16.msra.mxu0 %v5391_v25 }
 0x680   :  { %v1946_v35 = vpack.c.bf16 %v1944_v30, %v1944_v30  ;;  %2461 = vmatprep.subr.bf16.mxu0 %v5396_v36  ;;  %v5448_v36 = vld [vmem:[%s6855_s17 + $0x8] sm:$0xff]  }
 0x681   :  { %v1947_v34 = vpack.c.bf16 %v1945_v32, %v1945_v32  ;;  %v5445_v32 = vld [vmem:[%s6855_s17 + $0x40] sm:$0xff]  }
 0x683   :  { %2185 = vmatprep.mubr.bf16.mxu0 %v1947_v34  ;;  %v5446_v34 = vld [vmem:[%s6855_s17] sm:$0xff]  }
 0x684   :  { %2186 = vmatmul.mubr.bf16.vlgmr.msra.gmra.mrb[16].mxu0 %v1946_v35  ;;  %v5447_v35 = vld [vmem:[%s6855_s17 + $0x48] sm:$0xff]  }
 0x685   :  { %2493 = vmatprep.mubr.bf16.mxu0 %v5916_v0  ;;  %2462 = vmatpush1.bf16.msra.mxu0 %v5394_v37  ;;  %v5449_v37 = vld [vmem:[%s6855_s17 + $0x50] sm:$0xff]  }
 0x686   :  { %4893 = vmatprep.subr.bf16.mxu0 %v5445_v32 }
 0x715   :  { %v1692_v13 = vpop.f32.mrb[12].mxu0 }
 0x716   :  { %v1693_v11 = vadd.f32 %v1692_v13, %v1629_v10  ;;  %v4985_v14 = vpop.f32.mrb[13].mxu0  ;;  %v5469_v10 = vld [vmem:[#allocation9 + $0x24] ss:$16 sps:$4 sm:$0xff]   ;;  %v5472_v13 = vld [vmem:[#allocation9 + $0x2c] ss:$16 sps:$4 sm:$0xff]  }
 0x717   :  { %v1695_v16 = vpop.f32.mrb[14].mxu0  ;;  %v5470_v14 = vld [vmem:[#allocation9 + $0x28] ss:$16 sps:$4 sm:$0xff]  }
 0x718   :  { %v2444_v17 = vpack.c.bf16 %v1693_v11, %v1693_v11  ;;  %v4986_v18 = vpop.f32.mrb[15].mxu0  ;;  %v5467_v11 = vld [vmem:[#allocation9 + $0x20] ss:$16 sps:$4 sm:$0xff]  }
 0x719   :  { %v2685_v16 = vld [vmem:[#allocation9 + $0x40] sm:$0xff] }
 0x71a   :  { %4672 = vmatmul.mubr.msk.bf16.vlgmr.msra.gmra.mrb[20].mxu0 %vm2457_vm3, %v2444_v17  ;;  %v2686_v17 = vld [vmem:[#allocation9 + $0x48] sm:$0xff]  ;;  %v4698_v18 = vcombine.high %v2685_v16, %v2685_v16 }
 0x71b   :  { %4894 = vmatpush3.bf16.msra.mxu0 %v5446_v34  ;;  %v4700_v19 = vcombine.high %v2686_v17, %v2686_v17  ;;  %v5477_v34 = vld [vmem:[%s6847_s9] ss:$12 sps:$4 sm:$0xff]  }
 0x71c   :  { %4895 = vmatprep.subr.bf16.mxu0 %v5447_v35  ;;  %v5501_v35 = vld [vmem:[%s6847_s9 + $0x180] ss:$12 sps:$4 sm:$0xff]  }
 0x71f   :  { %4896 = vmatpush3.bf16.msra.mxu0 %v5448_v36 }
 0x720   :  { %4897 = vmatprep.subr.bf16.mxu0 %v5449_v37  ;;  %v5482_v37 = vld [vmem:[%s6847_s9 + $0x1c] ss:$12 sps:$4 sm:$0xff]  }
 0x723   :  { %4898 = vmatpush3.bf16.msra.mxu0 %v5450_v38  ;;  %v5509_v38 = vld [vmem:[%s6847_s9 + $0x19c] ss:$12 sps:$4 sm:$0xff]  }
 0x724   :  { %4899 = vmatprep.subr.bf16.mxu0 %v5451_v39  ;;  %v5480_v39 = vld [vmem:[%s6847_s9 + $0x18] ss:$12 sps:$4 sm:$0xff]  }
 0x727   :  { %4900 = vmatpush3.bf16.msra.mxu0 %v5452_v40  ;;  %v5507_v40 = vld [vmem:[%s6847_s9 + $0x198] ss:$12 sps:$4 sm:$0xff]  }
 0x728   :  { %4901 = vmatprep.subr.bf16.mxu0 %v5453_v41  ;;  %v5485_v41 = vld [vmem:[%s6847_s9 + $0x34] ss:$12 sps:$4 sm:$0xff]  }
 0x72b   :  { %4902 = vmatpush3.bf16.msra.mxu0 %v5454_v42  ;;  %v5515_v42 = vld [vmem:[%s6847_s9 + $0x1b4] ss:$12 sps:$4 sm:$0xff]  }
 0x72c   :  { %4903 = vmatprep.subr.bf16.mxu0 %v5455_v43  ;;  %v5483_v43 = vld [vmem:[%s6847_s9 + $0x30] ss:$12 sps:$4 sm:$0xff]  }
 0x72f   :  { %4904 = vmatpush3.bf16.msra.mxu0 %v5456_v44  ;;  %v5513_v44 = vld [vmem:[%s6847_s9 + $0x1b0] ss:$12 sps:$4 sm:$0xff]  }
 0x730   :  { %4905 = vmatprep.subr.bf16.mxu0 %v5457_v45  ;;  %v5488_v45 = vld [vmem:[%s6847_s9 + $0x4c] ss:$12 sps:$4 sm:$0xff]  }
 0x733   :  { %4906 = vmatpush3.bf16.msra.mxu0 %v5458_v46  ;;  %v5521_v46 = vld [vmem:[%s6847_s9 + $0x1cc] ss:$12 sps:$4 sm:$0xff]  }
 0x734   :  { %4907 = vmatprep.subr.bf16.mxu0 %v5459_v47  ;;  %v5486_v47 = vld [vmem:[%s6847_s9 + $0x48] ss:$12 sps:$4 sm:$0xff]  }
 0x737   :  { %4908 = vmatpush3.bf16.msra.mxu0 %v5460_v48  ;;  %v5519_v48 = vld [vmem:[%s6847_s9 + $0x1c8] ss:$12 sps:$4 sm:$0xff]  }
 0x738   :  { %2777 = vmatprep.subr.bf16.mxu0 %v5463_v49  ;;  %v5491_v49 = vld [vmem:[%s6847_s9 + $0x64] ss:$12 sps:$4 sm:$0xff]  }
 0x757   :  { %v2187_v22 = vpop.f32.mrb[16].mxu0 }
 0x758   :  { %v2188_v23 = vadd.f32 %v2187_v22, %v1986_v20  ;;  %v2189_v24 = vpop.f32.mrb[17].mxu0  ;;  %v4697_v20 = vcombine.low %v2685_v16, %v2685_v16  ;;  %v5534_v16 = vld [vmem:[%s6847_s9 + $0x138] ss:$12 sps:$4 sm:$0xff]  }
 0x759   :  { %v2190_v25 = vadd.f32 %v2189_v24, %v1990_v21  ;;  %v2191_v26 = vpop.f32.mrb[18].mxu0  ;;  %v4699_v21 = vcombine.low %v2686_v17, %v2686_v17  ;;  %v5479_v24 = vld [vmem:[%s6847_s9 + $0x4] ss:$12 sps:$4 sm:$0xff]   ;;  %v5542_v17 = vld [vmem:[%s6847_s9 + $0x154] ss:$12 sps:$4 sm:$0xff]  }
 0x75a   :  { %v2194_v27 = vmax.f32 %v2188_v23, 0.0  ;;  %v2192_v28 = vpop.f32.mrb[19].mxu0  ;;  %v2766_v22 = vsel %vm2764_vm4, %v4697_v20, 0  ;;  %v5543_v20 = vld [vmem:[%s6847_s9 + $0x228] ss:$12 sps:$4 sm:$0xff]  }
 0x75b   :  { %v2195_v29 = vmax.f32 %v2190_v25, 0.0  ;;  %v2772_v23 = vsel %vm2764_vm4, %v4699_v21, 0  ;;  %v5503_v25 = vld [vmem:[%s6847_s9 + $0x184] ss:$12 sps:$4 sm:$0xff]   ;;  %v5548_v21 = vld [vmem:[%s6847_s9 + $0x16c] ss:$12 sps:$4 sm:$0xff]  }
 0x75c   :  { %v2196_v31 = vpack.c.bf16 %v2194_v27, %v2194_v27  ;;  %v197_v27 = vld [vmem:[#allocation4] sm:$0xff] }
 0x75d   :  { %v2197_v30 = vpack.c.bf16 %v2195_v29, %v2195_v29 }
 0x75f   :  { %2435 = vmatprep.mubr.bf16.mxu1 %v2197_v30 }
 0x760   :  { %2436 = vmatmul.mubr.bf16.vlgmr.msra.gmra.mrb[20].mxu1 %v2196_v31 }
 0x761   :  { %2850 = vmatprep.mubr.bf16.mxu1 %v5916_v0  ;;  %2819 = vmatpush1.bf16.msra.mxu1 %v5464_v50  ;;  %v5527_v50 = vld [vmem:[%s6847_s9 + $0x1e4] ss:$12 sps:$4 sm:$0xff]  }
 0x762   :  { %2820 = vmatprep.subr.bf16.mxu1 %v5472_v13  ;;  %v5530_v13 = vld [vmem:[%s6847_s9 + $0x124] ss:$12 sps:$4 sm:$0xff]  }
 0x765   :  { %2821 = vmatpush1.bf16.msra.mxu1 %v5470_v14  ;;  %v5536_v14 = vld [vmem:[%s6847_s9 + $0x13c] ss:$12 sps:$4 sm:$0xff]  }
 0x766   :  { %4703 = vmatprep.subr.msk.bf16.mxu1 %vm2764_vm4, %v4700_v19  ;;  %v5540_v19 = vld [vmem:[%s6847_s9 + $0x150] ss:$12 sps:$4 sm:$0xff]  }
 0x769   :  { %2823 = vmatpush1.bf16.msra.mxu1 %v2772_v23  ;;  %v5546_v23 = vld [vmem:[%s6847_s9 + $0x168] ss:$12 sps:$4 sm:$0xff]  }
 0x76a   :  { %3415 = vmatprep.subr.bf16.mxu1 %v5503_v25  ;;  %v5552_v25 = vld [vmem:[%s6847_s9 + $0xc8] ss:$12 sps:$4 sm:$0xff]  }
 0x7ed   :  { %v2495_v52 = vpop.f32.mrb[20].mxu0 }
 0x7ee   :  { %v2497_v53 = vpop.f32.mrb[21].mxu0 }
 0x7ef   :  { %v2499_v54 = vpop.f32.mrb[22].mxu0 }
 0x7f0   :  { %v2500_v55 = vpop.f32.mrb[23].mxu0  ;;  %v5533_v54 = vld [vmem:[%s6847_s9 + $0x1fc] ss:$12 sps:$4 sm:$0xff]  }
 0x7f1   :  { %v5492_v55 = vld [vmem:[%s6847_s9 + $0x78] ss:$12 sps:$4 sm:$0xff]  }
 0x833   :  { %v2437_v59 = vpop.f32.mrb[20].mxu1 }
 0x834   :  { %v2438_v61 = vadd.f32 %v2437_v59, %v2236_v57  ;;  %v2439_v62 = vpop.f32.mrb[21].mxu1  ;;  %v5497_v57 = vld [vmem:[%s6847_s9 + $0x94] ss:$12 sps:$4 sm:$0xff]   ;;  %v5495_v59 = vld [vmem:[%s6847_s9 + $0x90] ss:$12 sps:$4 sm:$0xff]  }
 0x835   :  { %v2440_v63 = vadd.f32 %v2439_v62, %v2240_v58  ;;  %v2441_v1 = vpop.f32.mrb[22].mxu1  ;;  %v5539_v58 = vld [vmem:[%s6847_s9 + $0x214] ss:$12 sps:$4 sm:$0xff]   ;;  %v5500_v62 = vld [vmem:[%s6847_s9 + $0xac] ss:$12 sps:$4 sm:$0xff]  }
 0x836   :  { %v2502_v2 = vmul.f32 %v2495_v52, %v2438_v61  ;;  %v2442_v3 = vpop.f32.mrb[23].mxu1  ;;  %v5525_v52 = vld [vmem:[%s6847_s9 + $0x1e0] ss:$12 sps:$4 sm:$0xff]   ;;  %v5537_v61 = vld [vmem:[%s6847_s9 + $0x210] ss:$12 sps:$4 sm:$0xff]  }
 0x837   :  { %v2503_v4 = vmul.f32 %v2497_v53, %v2440_v63  ;;  %v5494_v53 = vld [vmem:[%s6847_s9 + $0x7c] ss:$12 sps:$4 sm:$0xff]   ;;  %v5506_v1 = vld [vmem:[%s6847_s9 + $0xc4] ss:$12 sps:$4 sm:$0xff]  }
 0x838   :  { %v2504_v8 = vpack.c.bf16 %v2502_v2, %v2502_v2  ;;  %v5498_v63 = vld [vmem:[%s6847_s9 + $0xa8] ss:$12 sps:$4 sm:$0xff]   ;;  %v5504_v2 = vld [vmem:[%s6847_s9 + $0xc0] ss:$12 sps:$4 sm:$0xff]  }
 0x839   :  { %v2505_v5 = vpack.c.bf16 %v2503_v4, %v2503_v4  ;;  %v5512_v3 = vld [vmem:[%s6847_s9 + $0xdc] ss:$12 sps:$4 sm:$0xff]   ;;  %v5510_v4 = vld [vmem:[%s6847_s9 + $0xd8] ss:$12 sps:$4 sm:$0xff]  }
 0x83b   :  { %2666 = vmatprep.mubr.bf16.mxu0 %v2505_v5  ;;  %v5518_v5 = vld [vmem:[%s6847_s9 + $0xf4] ss:$12 sps:$4 sm:$0xff]  }
 0x83c   :  { %2667 = vmatmul.mubr.bf16.vlgmr.msra.gmra.mrb[24].mxu0 %v2504_v8  ;;  %v5524_v8 = vld [vmem:[%s6847_s9 + $0x10c] ss:$12 sps:$4 sm:$0xff]  }
 0x83d   :  { %2778 = vmatpush1.bf16.msra.mxu0 %v5461_v7  ;;  %2809 = vmatprep.mubr.bf16.mxu0 %v5916_v0  ;;  %v5516_v7 = vld [vmem:[%s6847_s9 + $0xf0] ss:$12 sps:$4 sm:$0xff]  }
 0x83e   :  { %2779 = vmatprep.subr.bf16.mxu0 %v5469_v10  ;;  %v5522_v10 = vld [vmem:[%s6847_s9 + $0x108] ss:$12 sps:$4 sm:$0xff]  }
 0x841   :  { %2780 = vmatpush1.bf16.msra.mxu0 %v5467_v11  ;;  %v5528_v11 = vld [vmem:[%s6847_s9 + $0x120] ss:$12 sps:$4 sm:$0xff]  }
 0x842   :  { %4701 = vmatprep.subr.msk.bf16.mxu0 %vm2764_vm4, %v4698_v18  ;;  %v5545_v18 = vld [vmem:[%s6847_s9 + $0x22c] ss:$12 sps:$4 sm:$0xff]  }
 0x845   :  { %2782 = vmatpush1.bf16.msra.mxu0 %v2766_v22  ;;  %v5551_v22 = vld [vmem:[%s6847_s9 + $0x244] ss:$12 sps:$4 sm:$0xff]  }
 0x846   :  { %3374 = vmatprep.subr.bf16.mxu0 %v5479_v24  ;;  %v5549_v24 = vld [vmem:[%s6847_s9 + $0x240] ss:$12 sps:$4 sm:$0xff]  }
 0x90f   :  { %v4909_v26 = vpop.f32.mrb[24].mxu0 }
 0x910   :  { %v4910_v28 = vpop.f32.mrb[25].mxu0 }
 0x911   :  { %v6381_v29 = vadd.f32 %v4910_v28, %v4909_v26  ;;  %v4912_v30 = vpop.f32.mrb[26].mxu0  ;;  %v2688_v26 = vld [vmem:[#allocation16 + $0x22] ss:$8 sm:$0xf] }
 0x912   :  { %v4913_v31 = vpop.f32.mrb[27].mxu0  ;;  %v2701_v28 = vrot.slane %v2688_v26, %v6197_v60  ;;  %v2697_v30 = vrot.slane %v2688_v26, %v6184_v12 }
 0x913   :  { %v2675_v32 = vadd.f32 %v6381_v29, %v197_v27  ;;  %v2693_v27 = vrot.slane %v2688_v26, %v6179_v9  ;;  %v2705_v31 = vrot.slane %v2688_v26, %v222_v15  ;;  %v5554_v15 = vld [vmem:[%s6847_s9 + $0x188] ss:$12 sps:$4 sm:$0xff]  }
 0x914   :  { %v5592_v26 = vld [vmem:[%s6848_s10 + $0x34] ss:$8 sps:$4 sm:$0xff]  }
 0x915   :  { %v2676_v36 = vpack.c.bf16 %v2675_v32, %v2675_v32 }
 0x917   :  { %4702 = vmatmul.mubr.msk.bf16.vlgmr.msra.gmra.mrb[28].mxu0 %vm2760_vm5, %v2676_v36  ;;  %4704 = vmatmul.mubr.msk.bf16.vlgmr.msra.gmra.mrb[24].mxu1 %vm2760_vm5, %v2676_v36 }
 0x918   :  { %3375 = vmatpush1.bf16.msra.mxu0 %v5477_v34  ;;  %3416 = vmatpush1.bf16.msra.mxu1 %v5501_v35 }
 0x919   :  { %3376 = vmatprep.subr.bf16.mxu0 %v5482_v37  ;;  %3417 = vmatprep.subr.bf16.mxu1 %v5509_v38 }
 0x91c   :  { %3377 = vmatpush1.bf16.msra.mxu0 %v5480_v39  ;;  %3418 = vmatpush1.bf16.msra.mxu1 %v5507_v40 }
 0x91d   :  { %3378 = vmatprep.subr.bf16.mxu0 %v5485_v41  ;;  %3419 = vmatprep.subr.bf16.mxu1 %v5515_v42 }
 0x920   :  { %3379 = vmatpush1.bf16.msra.mxu0 %v5483_v43  ;;  %3420 = vmatpush1.bf16.msra.mxu1 %v5513_v44 }
 0x921   :  { %3380 = vmatprep.subr.bf16.mxu0 %v5488_v45  ;;  %3421 = vmatprep.subr.bf16.mxu1 %v5521_v46 }
 0x924   :  { %3381 = vmatpush1.bf16.msra.mxu0 %v5486_v47  ;;  %3422 = vmatpush1.bf16.msra.mxu1 %v5519_v48 }
 0x925   :  { %3382 = vmatprep.subr.bf16.mxu0 %v5491_v49  ;;  %3423 = vmatprep.subr.bf16.mxu1 %v5527_v50 }
 0x928   :  { %3383 = vmatpush1.bf16.msra.mxu0 %v5489_v51  ;;  %3424 = vmatpush1.bf16.msra.mxu1 %v5525_v52 }
 0x929   :  { %3384 = vmatprep.subr.bf16.mxu0 %v5494_v53  ;;  %3425 = vmatprep.subr.bf16.mxu1 %v5533_v54  ;;  %v5555_v53 = vld [vmem:[%s6847_s9 + $0xe0] ss:$12 sps:$4 sm:$0xff]  }
 0x92a   :  { %v5556_v54 = vld [vmem:[%s6847_s9 + $0x20] ss:$12 sps:$4 sm:$0xff]  }
 0x92c   :  { %3385 = vmatpush1.bf16.msra.mxu0 %v5492_v55  ;;  %3426 = vmatpush1.bf16.msra.mxu1 %v5531_v56  ;;  %v5557_v55 = vld [vmem:[%s6847_s9 + $0x1a0] ss:$12 sps:$4 sm:$0xff]   ;;  %v5558_v56 = vld [vmem:[%s6847_s9 + $0xf8] ss:$12 sps:$4 sm:$0xff]  }
 0x92d   :  { %3386 = vmatprep.subr.bf16.mxu0 %v5497_v57  ;;  %3427 = vmatprep.subr.bf16.mxu1 %v5539_v58  ;;  %v5559_v57 = vld [vmem:[%s6847_s9 + $0x38] ss:$12 sps:$4 sm:$0xff]  }
 0x92e   :  { %v5560_v58 = vld [vmem:[%s6847_s9 + $0x1b8] ss:$12 sps:$4 sm:$0xff]  }
 0x930   :  { %3387 = vmatpush1.bf16.msra.mxu0 %v5495_v59  ;;  %3428 = vmatpush1.bf16.msra.mxu1 %v5537_v61  ;;  %v5561_v59 = vld [vmem:[%s6847_s9 + $0x110] ss:$12 sps:$4 sm:$0xff]  }
 0x931   :  { %3388 = vmatprep.subr.bf16.mxu0 %v5500_v62  ;;  %3429 = vmatprep.subr.bf16.mxu1 %v5545_v18  ;;  %v5562_v61 = vld [vmem:[%s6847_s9 + $0x50] ss:$12 sps:$4 sm:$0xff]   ;;  %v5579_v18 = vld [vmem:[%s6847_s9 + $0x248] ss:$12 sps:$4 sm:$0xff]  }
 0x932   :  { %v5563_v62 = vld [vmem:[%s6847_s9 + $0x1d0] ss:$12 sps:$4 sm:$0xff]  }
 0x934   :  { %3389 = vmatpush1.bf16.msra.mxu0 %v5498_v63  ;;  %3430 = vmatpush1.bf16.msra.mxu1 %v5543_v20  ;;  %v5564_v63 = vld [vmem:[%s6847_s9 + $0x128] ss:$12 sps:$4 sm:$0xff]   ;;  %v6632_v20 = vpack.c.bf16 %v6381_v29, %v6381_v29 }
 0x935   :  { %3390 = vmatprep.subr.bf16.mxu0 %v5506_v1  ;;  %3431 = vmatprep.subr.bf16.mxu1 %v5551_v22  ;;  %v5565_v1 = vld [vmem:[%s6847_s9 + $0x68] ss:$12 sps:$4 sm:$0xff]  }
 0x936   :  { %v5581_v22 = vld [vmem:[%s6848_s10] ss:$8 sps:$4 sm:$0xff]   ;;  %v5586_v29 = vld [vmem:[%s6848_s10 + $0x14] ss:$8 sps:$4 sm:$0xff]  }
 0x938   :  { %3391 = vmatpush1.bf16.msra.mxu0 %v5504_v2  ;;  %3432 = vmatpush1.bf16.msra.mxu1 %v5549_v24  ;;  %v5566_v2 = vld [vmem:[%s6847_s9 + $0x1e8] ss:$12 sps:$4 sm:$0xff]   ;;  %v5589_v24 = vld [vmem:[%s6848_s10 + $0x24] ss:$8 sps:$4 sm:$0xff]  }
 0x939   :  { %3392 = vmatprep.subr.bf16.mxu0 %v5512_v3  ;;  %4915 = vmatprep.subr.bf16.mxu1 %v5552_v25  ;;  %v5567_v3 = vld [vmem:[%s6847_s9 + $0x140] ss:$12 sps:$4 sm:$0xff]  }
 0x93a   :  { %v5587_v25 = vld [vmem:[%s6848_s10 + $0x20] ss:$8 sps:$4 sm:$0xff]  }
 0x93c   :  { %3393 = vmatpush1.bf16.msra.mxu0 %v5510_v4  ;;  %v5568_v4 = vld [vmem:[%s6847_s9 + $0x80] ss:$12 sps:$4 sm:$0xff]  }
 0x93d   :  { %3394 = vmatprep.subr.bf16.mxu0 %v5518_v5  ;;  %v5569_v5 = vld [vmem:[%s6847_s9 + $0x200] ss:$12 sps:$4 sm:$0xff]  }
 0x940   :  { %3395 = vmatpush1.bf16.msra.mxu0 %v5516_v7  ;;  %v5570_v7 = vld [vmem:[%s6847_s9 + $0x158] ss:$12 sps:$4 sm:$0xff]  }
 0x941   :  { %3396 = vmatprep.subr.bf16.mxu0 %v5524_v8  ;;  %v5571_v8 = vld [vmem:[%s6847_s9 + $0x98] ss:$12 sps:$4 sm:$0xff]  }
 0x944   :  { %3397 = vmatpush1.bf16.msra.mxu0 %v5522_v10  ;;  %v5572_v10 = vld [vmem:[%s6847_s9 + $0x218] ss:$12 sps:$4 sm:$0xff]  }
 0x945   :  { %3398 = vmatprep.subr.bf16.mxu0 %v5530_v13  ;;  %v5573_v13 = vld [vmem:[%s6847_s9 + $0x170] ss:$12 sps:$4 sm:$0xff]  }
 0x948   :  { %3399 = vmatpush1.bf16.msra.mxu0 %v5528_v11  ;;  %v5574_v11 = vld [vmem:[%s6847_s9 + $0xb0] ss:$12 sps:$4 sm:$0xff]  }
 0x949   :  { %3400 = vmatprep.subr.bf16.mxu0 %v5536_v14  ;;  %v5575_v14 = vld [vmem:[%s6847_s9 + $0x230] ss:$12 sps:$4 sm:$0xff]  }
 0x94c   :  { %3401 = vmatpush1.bf16.msra.mxu0 %v5534_v16  ;;  %v5578_v16 = vld [vmem:[#allocation10 + $0x4] ss:$12 sps:$4 sm:$0xff]  }
 0x94d   :  { %3402 = vmatprep.subr.bf16.mxu0 %v5542_v17  ;;  %v5576_v17 = vld [vmem:[#allocation10] ss:$12 sps:$4 sm:$0xff]  }
 0x950   :  { %3403 = vmatpush1.bf16.msra.mxu0 %v5540_v19  ;;  %v5580_v19 = vld [vmem:[#allocation10 + $0x8] ss:$12 sps:$4 sm:$0xff]  }
 0x951   :  { %3404 = vmatprep.subr.bf16.mxu0 %v5548_v21  ;;  %v5583_v21 = vld [vmem:[%s6848_s10 + $0x4] ss:$8 sps:$4 sm:$0xff]  }
 0x954   :  { %3405 = vmatpush1.bf16.msra.mxu0 %v5546_v23  ;;  %v5584_v23 = vld [vmem:[%s6848_s10 + $0x10] ss:$8 sps:$4 sm:$0xff]  }
 0x955   :  { %3496 = vmatprep.subr.bf16.mxu0 %v5916_v0 }
 0x9ea   :  { %v2811_v32 = vpop.f32.mrb[28].mxu0  ;;  %v2852_v34 = vpop.f32.mrb[24].mxu1 }
 0x9eb   :  { %v2812_v35 = vadd.f32 %v2811_v32, %v2693_v27  ;;  %v2853_v36 = vadd.f32 %v2852_v34, %v2701_v28  ;;  %v2813_v37 = vpop.f32.mrb[29].mxu0  ;;  %v2854_v38 = vpop.f32.mrb[25].mxu1  ;;  %v5590_v27 = vld [vmem:[%s6848_s10 + $0x30] ss:$8 sps:$4 sm:$0xff]   ;;  %v5595_v28 = vld [vmem:[%s6848_s10 + $0x44] ss:$8 sps:$4 sm:$0xff]  }
 0x9ec   :  { %v2814_v39 = vadd.f32 %v2813_v37, %v2697_v30  ;;  %v2855_v40 = vadd.f32 %v2854_v38, %v2705_v31  ;;  %v2815_v41 = vpop.f32.mrb[30].mxu0  ;;  %v2856_v42 = vpop.f32.mrb[26].mxu1  ;;  %v5593_v30 = vld [vmem:[%s6848_s10 + $0x40] ss:$8 sps:$4 sm:$0xff]   ;;  %v5598_v31 = vld [vmem:[%s6848_s10 + $0x54] ss:$8 sps:$4 sm:$0xff]  }
 0x9ed   :  { %v2859_v43 = vmax.f32 %v2812_v35, 0.0  ;;  %v2861_v44 = vmax.f32 %v2853_v36, 0.0  ;;  %v2816_v45 = vpop.f32.mrb[31].mxu0  ;;  %v2857_v46 = vpop.f32.mrb[27].mxu1  ;;  %v5596_v32 = vld [vmem:[%s6848_s10 + $0x50] ss:$8 sps:$4 sm:$0xff]  }
 0x9ee   :  { %v2860_v47 = vmax.f32 %v2814_v39, 0.0  ;;  %v2862_v48 = vmax.f32 %v2855_v40, 0.0  ;;  %v5601_v34 = vld [vmem:[%s6848_s10 + $0x64] ss:$8 sps:$4 sm:$0xff]   ;;  %v5599_v35 = vld [vmem:[%s6848_s10 + $0x60] ss:$8 sps:$4 sm:$0xff]  }
 0x9ef   :  { %v6543_v51 = vpack.c.bf16 %v2859_v43, %v2859_v43  ;;  %v6545_v52 = vpack.c.bf16 %v2861_v44, %v2861_v44  ;;  %v5604_v36 = vld [vmem:[%s6848_s10 + $0x74] ss:$8 sps:$4 sm:$0xff]   ;;  %v5602_v37 = vld [vmem:[%s6848_s10 + $0x70] ss:$8 sps:$4 sm:$0xff]   ;;  %v5607_v38 = vld [vmem:[%s6848_s10 + $0x84] ss:$8 sps:$4 sm:$0xff]  }
 0x9f0   :  { %v2864_v49 = vpack.c.bf16 %v2860_v47, %v2860_v47  ;;  %v2866_v50 = vpack.c.bf16 %v2862_v48, %v2862_v48  ;;  %v5605_v39 = vld [vmem:[%s6848_s10 + $0x80] ss:$8 sps:$4 sm:$0xff]   ;;  %v5610_v40 = vld [vmem:[%s6848_s10 + $0x94] ss:$8 sps:$4 sm:$0xff]   ;;  %v5608_v41 = vld [vmem:[%s6848_s10 + $0x90] ss:$8 sps:$4 sm:$0xff]  }
 0x9f1   :  { %v5613_v42 = vld [vmem:[%s6848_s10 + $0xa4] ss:$8 sps:$4 sm:$0xff]   ;;  %v5611_v43 = vld [vmem:[%s6848_s10 + $0xa0] ss:$8 sps:$4 sm:$0xff]   ;;  %v5616_v44 = vld [vmem:[%s6848_s10 + $0xb4] ss:$8 sps:$4 sm:$0xff]  }
 0x9f2   :  { %3406 = vmatprep.mubr.bf16.mxu0 %v2864_v49  ;;  %4780 = vmatprep.mubr.msk.bf16.mxu1 %vm2457_vm3, %v2866_v50  ;;  %v5614_v45 = vld [vmem:[%s6848_s10 + $0xb0] ss:$8 sps:$4 sm:$0xff]   ;;  %v5619_v46 = vld [vmem:[%s6848_s10 + $0xc4] ss:$8 sps:$4 sm:$0xff]   ;;  %v5617_v47 = vld [vmem:[%s6848_s10 + $0xc0] ss:$8 sps:$4 sm:$0xff]  }
 0x9f3   :  { %3407 = vmatmul.mubr.bf16.vlgmr.msra.gmra.mrb[32].mxu0 %v6543_v51  ;;  %3448 = vmatmul.mubr.bf16.vlgmr.msra.gmra.mrb[28].mxu1 %v6545_v52  ;;  %v5622_v48 = vld [vmem:[%s6848_s10 + $0xd4] ss:$8 sps:$4 sm:$0xff]  }
 0x9f4   :  { %4916 = vmatpush3.bf16.msra.mxu1 %v5553_v6  ;;  %3497 = vmatpush1.bf16.msra.mxu0 %v5554_v15  ;;  %v5623_v6 = vld [vmem:[%s6848_s10 + $0xe0] ss:$8 sps:$4 sm:$0xff]   ;;  %v5628_v15 = vld [vmem:[%s6848_s10 + $0xf4] ss:$8 sps:$4 sm:$0xff]  }
 0x9f5   :  { %3488 = vmatprep.mubr.bf16.mxu1 %v2864_v49  ;;  %4781 = vmatprep.mubr.msk.bf16.mxu0 %vm2457_vm3, %v2866_v50  ;;  %v5620_v49 = vld [vmem:[%s6848_s10 + $0xd0] ss:$8 sps:$4 sm:$0xff]   ;;  %v5625_v50 = vld [vmem:[%s6848_s10 + $0xe4] ss:$8 sps:$4 sm:$0xff]  }
 0x9f6   :  { %4917 = vmatprep.subr.bf16.mxu1 %v5555_v53  ;;  %3498 = vmatprep.subr.bf16.mxu0 %v5916_v0  ;;  %v5638_v53 = vld [vmem:[#allocation13] sm:$0xff]  }
 0x9f8   :  { %4918 = vmatpush3.bf16.msra.mxu1 %v5556_v54  ;;  %3499 = vmatpush1.bf16.msra.mxu0 %v5557_v55  ;;  %v5639_v54 = vld [vmem:[#allocation13 + $0x8] sm:$0xff]   ;;  %v5640_v55 = vld [vmem:[#allocation13 + $0x10] sm:$0xff]  }
 0x9f9   :  { %4919 = vmatprep.subr.bf16.mxu1 %v5558_v56  ;;  %3500 = vmatprep.subr.bf16.mxu0 %v5916_v0  ;;  %v5641_v56 = vld [vmem:[#allocation13 + $0x18] sm:$0xff]  }
 0x9fc   :  { %4920 = vmatpush3.bf16.msra.mxu1 %v5559_v57  ;;  %3501 = vmatpush1.bf16.msra.mxu0 %v5560_v58  ;;  %v5642_v57 = vld [vmem:[#allocation13 + $0x20] sm:$0xff]   ;;  %v5643_v58 = vld [vmem:[#allocation13 + $0x28] sm:$0xff]  }
 0x9fd   :  { %4921 = vmatprep.subr.bf16.mxu1 %v5561_v59  ;;  %3502 = vmatprep.subr.bf16.mxu0 %v5916_v0  ;;  %v5644_v59 = vld [vmem:[#allocation13 + $0x30] sm:$0xff]  }
 0xa00   :  { %4922 = vmatpush3.bf16.msra.mxu1 %v5562_v61  ;;  %3503 = vmatpush1.bf16.msra.mxu0 %v5563_v62  ;;  %v5645_v61 = vld [vmem:[#allocation13 + $0x38] sm:$0xff]   ;;  %v5646_v62 = vld [vmem:[#allocation13 + $0x40] sm:$0xff]  }
 0xa01   :  { %4923 = vmatprep.subr.bf16.mxu1 %v5564_v63  ;;  %3504 = vmatprep.subr.bf16.mxu0 %v5916_v0  ;;  %v5647_v63 = vld [vmem:[#allocation13 + $0x48] sm:$0xff]  }
 0xa04   :  { %4924 = vmatpush3.bf16.msra.mxu1 %v5565_v1  ;;  %3505 = vmatpush1.bf16.msra.mxu0 %v5566_v2  ;;  %v5648_v1 = vld [vmem:[#allocation13 + $0x50] sm:$0xff]  }
 0xa05   :  { %4925 = vmatprep.subr.bf16.mxu1 %v5567_v3  ;;  %3506 = vmatprep.subr.bf16.mxu0 %v5916_v0 }
 0xa08   :  { %4926 = vmatpush3.bf16.msra.mxu1 %v5568_v4  ;;  %3507 = vmatpush1.bf16.msra.mxu0 %v5569_v5 }
 0xa09   :  { %4927 = vmatprep.subr.bf16.mxu1 %v5570_v7  ;;  %3508 = vmatprep.subr.bf16.mxu0 %v5916_v0 }
 0xa0c   :  { %4928 = vmatpush3.bf16.msra.mxu1 %v5571_v8  ;;  %3509 = vmatpush1.bf16.msra.mxu0 %v5572_v10 }
 0xa0d   :  { %4929 = vmatprep.subr.bf16.mxu1 %v5573_v13  ;;  %3510 = vmatprep.subr.bf16.mxu0 %v5916_v0 }
 0xa10   :  { %4930 = vmatpush3.bf16.msra.mxu1 %v5574_v11  ;;  %3511 = vmatpush1.bf16.msra.mxu0 %v5575_v14 }
 0xa11   :  { %3512 = vmatprep.subr.bf16.mxu0 %v5916_v0  ;;  %3555 = vmatprep.subr.bf16.mxu1 %v5578_v16 }
 0xa13   :  { %3489 = vmatmul.mubr.bf16.vlgmr.msra.gmra.mrb[32].mxu1 %v6543_v51  ;;  %v5626_v51 = vld [vmem:[%s6848_s10 + $0xf0] ss:$8 sps:$4 sm:$0xff]  }
 0xa14   :  { %3513 = vmatpush1.bf16.msra.mxu0 %v5579_v18  ;;  %3556 = vmatpush1.bf16.msra.mxu1 %v5576_v17 }
 0xa15   :  { %3587 = vmatprep.mubr.bf16.mxu1 %v5916_v0  ;;  %4987 = vmatprep.subr.bf16.mxu1 %v5917_v33 }
 0xa16   :  { %4108 = vmatprep.subr.bf16.mxu0 %v5916_v0 }
 0xa17   :  { %3529 = vmatmul.mubr.bf16.vlgmr.msra.gmra.mrb[36].mxu0 %v6545_v52  ;;  %v5631_v52 = vld [vmem:[%s6848_s10 + $0x104] ss:$8 sps:$4 sm:$0xff]  }
 0xa18   :  { %4109 = vmatpush1.bf16.msra.mxu0 %v5638_v53 }
 0xa19   :  { %4110 = vmatprep.subr.bf16.mxu0 %v5916_v0 }
 0xa1b   :  { %4785 = vmatmul.mubr.msk.bf16.vlgmr.msra.gmra.mrb[36].mxu1 %vm2457_vm3, %v6632_v20 }
 0xa1c   :  { %4988 = vmatpush3.bf16.msra.mxu1 %v5580_v19  ;;  %4989 = vmatprep.mubr.msk.bf16.mxu1 %vm5918_vm1, %v5917_v33 }
 0xa1d   :  { %3913 = vmatprep.subr.bf16.mxu1 %v5583_v21  ;;  %4111 = vmatpush1.bf16.msra.mxu0 %v5639_v54 }
 0xa1e   :  { %4112 = vmatprep.subr.bf16.mxu0 %v5916_v0 }
 0xa21   :  { %4113 = vmatpush1.bf16.msra.mxu0 %v5640_v55  ;;  %v5649_v55 = vld [vmem:[#allocation13 + $0x58] sm:$0xff]  }
 0xa22   :  { %4114 = vmatprep.subr.bf16.mxu0 %v5916_v0 }
 0xa23   :  { %4990 = vmatmul.mubr.msk.bf16.vlgmr.msra.gmra.mrb[40].mxu1 %vm2457_vm3, %v6632_v20 }
 0xa24   :  { %3914 = vmatpush1.bf16.msra.mxu1 %v5581_v22 }
 0xa25   :  { %3915 = vmatprep.subr.bf16.mxu1 %v5586_v29  ;;  %4115 = vmatpush1.bf16.msra.mxu0 %v5641_v56  ;;  %v3637_v29 = vld [vmem:[#allocation16 + $0x23] ss:$8 sm:$0x7]  ;;  %v5650_v56 = vld [vmem:[#allocation13 + $0x60] ss:$0 sps:$4 sm:$0xff]  }
 0xa26   :  { %4116 = vmatprep.subr.bf16.mxu0 %v5916_v0 }
 0xa28   :  { %3916 = vmatpush1.bf16.msra.mxu1 %v5584_v23 }
 0xa29   :  { %3917 = vmatprep.subr.bf16.mxu1 %v5589_v24  ;;  %4117 = vmatpush1.bf16.msra.mxu0 %v5642_v57  ;;  %v4106_v57 = vsel %vm2764_vm4, %v5650_v56, 0 }
 0xa2a   :  { %4118 = vmatprep.subr.bf16.mxu0 %v5916_v0 }
 0xa2c   :  { %3918 = vmatpush1.bf16.msra.mxu1 %v5587_v25 }
 0xa2d   :  { %3919 = vmatprep.subr.bf16.mxu1 %v5592_v26  ;;  %4119 = vmatpush1.bf16.msra.mxu0 %v5643_v58  ;;  %v3702_v58 = vld [vmem:[#allocation16 + $0x24] ss:$8 sm:$0x3] }
 0xa2e   :  { %4120 = vmatprep.subr.bf16.mxu0 %v5916_v0 }
 0xa30   :  { %3920 = vmatpush1.bf16.msra.mxu1 %v5590_v27  ;;  %v3642_v27 = vrot.slane %v3637_v29, %v6179_v9 }
 0xa31   :  { %3921 = vmatprep.subr.bf16.mxu1 %v5595_v28  ;;  %4121 = vmatpush1.bf16.msra.mxu0 %v5644_v59  ;;  %v3707_v59 = vrot.slane %v3702_v58, %v6179_v9  ;;  %v5652_v9 = vld [vmem:[%s6851_s13] sm:$0xff]  }
 0xa32   :  { %4122 = vmatprep.subr.bf16.mxu0 %v5916_v0 }
 0xa34   :  { %3922 = vmatpush1.bf16.msra.mxu1 %v5593_v30  ;;  %v3646_v30 = vrot.slane %v3637_v29, %v6184_v12 }
 0xa35   :  { %3923 = vmatprep.subr.bf16.mxu1 %v5598_v31  ;;  %4123 = vmatpush1.bf16.msra.mxu0 %v5645_v61  ;;  %v3711_v61 = vrot.slane %v3702_v58, %v6184_v12  ;;  %v5653_v12 = vld [vmem:[%s6851_s13 + $0x8] sm:$0xff]  }
 0xa36   :  { %4124 = vmatprep.subr.bf16.mxu0 %v5916_v0 }
 0xa38   :  { %3924 = vmatpush1.bf16.msra.mxu1 %v5596_v32 }
 0xa39   :  { %3925 = vmatprep.subr.bf16.mxu1 %v5601_v34  ;;  %4125 = vmatpush1.bf16.msra.mxu0 %v5646_v62 }
 0xa3a   :  { %4126 = vmatprep.subr.bf16.mxu0 %v5916_v0 }
 0xa3c   :  { %3926 = vmatpush1.bf16.msra.mxu1 %v5599_v35 }
 0xa3d   :  { %3927 = vmatprep.subr.bf16.mxu1 %v5604_v36  ;;  %4127 = vmatpush1.bf16.msra.mxu0 %v5647_v63 }
 0xa3e   :  { %4128 = vmatprep.subr.bf16.mxu0 %v5916_v0 }
 0xa40   :  { %3928 = vmatpush1.bf16.msra.mxu1 %v5602_v37 }
 0xa41   :  { %3929 = vmatprep.subr.bf16.mxu1 %v5607_v38  ;;  %4129 = vmatpush1.bf16.msra.mxu0 %v5648_v1 }
 0xa42   :  { %4130 = vmatprep.subr.bf16.mxu0 %v5916_v0 }
 0xa44   :  { %3930 = vmatpush1.bf16.msra.mxu1 %v5605_v39 }
 0xa45   :  { %3931 = vmatprep.subr.bf16.mxu1 %v5610_v40  ;;  %4131 = vmatpush1.bf16.msra.mxu0 %v5649_v55 }
 0xa46   :  { %4132 = vmatprep.subr.bf16.mxu0 %v5916_v0 }
 0xa48   :  { %3932 = vmatpush1.bf16.msra.mxu1 %v5608_v41 }
 0xa49   :  { %3933 = vmatprep.subr.bf16.mxu1 %v5613_v42  ;;  %4133 = vmatpush1.bf16.msra.mxu0 %v4106_v57 }
 0xa4a   :  { %4993 = vmatprep.subr.bf16.mxu0 %v5917_v33 }
 0xa4c   :  { %3934 = vmatpush1.bf16.msra.mxu1 %v5611_v43  ;;  %v5629_v43 = vld [vmem:[%s6848_s10 + $0x100] ss:$8 sps:$4 sm:$0xff]  }
 0xa4d   :  { %3935 = vmatprep.subr.bf16.mxu1 %v5616_v44 }
 0xa50   :  { %3936 = vmatpush1.bf16.msra.mxu1 %v5614_v45 }
 0xa51   :  { %3937 = vmatprep.subr.bf16.mxu1 %v5619_v46  ;;  %v3650_v46 = vrot.slane %v3637_v29, %v6197_v60  ;;  %v5635_v60 = vld [vmem:[%s6848_s10 + $0x124] ss:$8 sps:$4 sm:$0x3f]  }
 0xa54   :  { %3938 = vmatpush1.bf16.msra.mxu1 %v5617_v47 }
 0xa55   :  { %3939 = vmatprep.subr.bf16.mxu1 %v5622_v48  ;;  %v5634_v48 = vld [vmem:[%s6848_s10 + $0x114] ss:$8 sps:$4 sm:$0xff]  }
 0xa58   :  { %3940 = vmatpush1.bf16.msra.mxu1 %v5620_v49 }
 0xa59   :  { %3941 = vmatprep.subr.bf16.mxu1 %v5625_v50 }
 0xa5c   :  { %3942 = vmatpush1.bf16.msra.mxu1 %v5623_v6  ;;  %v5632_v6 = vld [vmem:[%s6848_s10 + $0x110] ss:$8 sps:$4 sm:$0xff]  }
 0xa5d   :  { %3943 = vmatprep.subr.bf16.mxu1 %v5628_v15 }
 0xa60   :  { %3944 = vmatpush1.bf16.msra.mxu1 %v5626_v51  ;;  %v5637_v51 = vld [vmem:[%s6848_s10 + $0x120] ss:$8 sps:$4 sm:$0x3f]  }
 0xa61   :  { %3954 = vmatprep.subr.bf16.mxu1 %v5631_v52  ;;  %v3908_v53 = vsel %vm3906_vm6, %v5637_v51, 0  ;;  %v4393_v51 = vld [vmem:[#allocation16 + $0x40] ss:$0 sm:$0xff] }
 0xac6   :  { %v3408_v2 = vpop.f32.mrb[32].mxu0  ;;  %v3449_v3 = vpop.f32.mrb[28].mxu1 }
 0xac7   :  { %v3450_v4 = vadd.f32 %v3449_v3, %v3408_v2  ;;  %v3410_v5 = vpop.f32.mrb[33].mxu0  ;;  %v3451_v7 = vpop.f32.mrb[29].mxu1 }
 0xac8   :  { %v3452_v8 = vadd.f32 %v3451_v7, %v3410_v5  ;;  %v3412_v10 = vpop.f32.mrb[34].mxu0  ;;  %v3453_v13 = vpop.f32.mrb[30].mxu1 }
 0xac9   :  { %v3413_v11 = vpop.f32.mrb[35].mxu0  ;;  %v3454_v14 = vpop.f32.mrb[31].mxu1  ;;  %v5654_v13 = vld [vmem:[%s6851_s13 + $0x10] sm:$0xff]  }
 0xaca   :  { %v5656_v11 = vld [vmem:[%s6851_s13 + $0x20] sm:$0xff]   ;;  %v5657_v14 = vld [vmem:[%s6851_s13 + $0x28] sm:$0xff]  }
 0xae6   :  { %v4931_v16 = vpop.f32.mrb[32].mxu1 }
 0xae7   :  { %v4932_v17 = vpop.f32.mrb[33].mxu1 }
 0xae8   :  { %v4933_v18 = vadd.f32 %v4932_v17, %v4931_v16  ;;  %v4934_v19 = vpop.f32.mrb[34].mxu1  ;;  %v5658_v16 = vld [vmem:[%s6851_s13 + $0x30] sm:$0xff]   ;;  %v5659_v17 = vld [vmem:[%s6851_s13 + $0x38] sm:$0xff]  }
 0xae9   :  { %v4935_v21 = vpop.f32.mrb[35].mxu1  ;;  %v5661_v19 = vld [vmem:[%s6852_s14 + $0x8] sm:$0xff]  }
 0xaea   :  { %v3530_v22 = vpop.f32.mrb[36].mxu0 }
 0xaeb   :  { %v3531_v23 = vadd.f32 %v4933_v18, %v3530_v22  ;;  %v3532_v24 = vpop.f32.mrb[37].mxu0  ;;  %v5660_v18 = vld [vmem:[%s6852_s14] sm:$0xff]  }
 0xaec   :  { %v3533_v25 = vpop.f32.mrb[38].mxu0 }
 0xaed   :  { %v3534_v26 = vpop.f32.mrb[39].mxu0  ;;  %v4194_v25 = vld [vmem:[#allocation16 + $0x25] ss:$0 sm:$0xff] }
 0xaee   :  { %v3589_v28 = vpop.f32.mrb[36].mxu1 }
 0xaef   :  { %v3590_v31 = vadd.f32 %v3589_v28, %v3450_v4  ;;  %v3591_v32 = vpop.f32.mrb[37].mxu1 }
 0xaf0   :  { %v3592_v34 = vadd.f32 %v3591_v32, %v3452_v8  ;;  %v3593_v35 = vpop.f32.mrb[38].mxu1  ;;  %v5651_v8 = vld [vmem:[#allocation12] sm:$0xff]  }
 0xaf1   :  { %v3654_v36 = vadd.f32 %v3642_v27, %v3590_v31  ;;  %v3594_v37 = vpop.f32.mrb[39].mxu1  ;;  %v5662_v35 = vld [vmem:[%s6852_s14 + $0x10] sm:$0xff]  }
 0xaf2   :  { %v3655_v38 = vadd.f32 %v3646_v30, %v3592_v34  ;;  %v4214_v37 = vld [vmem:[#allocation16 + $0x26] ss:$0 sm:$0xff] }
 0xaf3   :  { %v3657_v39 = vmax.f32 %v3654_v36, 0.0  ;;  %v5663_v36 = vld [vmem:[%s6852_s14 + $0x18] sm:$0xff]  }
 0xaf4   :  { %v3658_v40 = vmax.f32 %v3655_v38, 0.0 }
 0xaf5   :  { %v3660_v44 = vpack.c.bf16 %v3657_v39, %v3657_v39 }
 0xaf6   :  { %v3661_v41 = vpack.c.bf16 %v3658_v40, %v3658_v40  ;;  %v3630_v42 = vpop.f32.mrb[40].mxu1 }
 0xaf7   :  { %v3631_v45 = vadd.f32 %v3630_v42, %v3531_v23  ;;  %v4991_v47 = vpop.f32.mrb[41].mxu1 }
 0xaf8   :  { %v3633_v49 = vpop.f32.mrb[42].mxu1  ;;  %3945 = vmatprep.mubr.bf16.mxu1 %v3661_v41 }
 0xaf9   :  { %v4992_v50 = vpop.f32.mrb[43].mxu1  ;;  %3946 = vmatmul.mubr.bf16.vlgmr.msra.gmra.mrb[44].mxu1 %v3660_v44  ;;  %v3656_v15 = vadd.f32 %v3650_v46, %v3631_v45  ;;  %v4313_v45 = vld [vmem:[#allocation16 + $0x27] ss:$0 sm:$0xff]  ;;  %v4856_v49 = vld [vmem:[%s6853_s15] ss:$0 sm:$0xff] }
 0xafa   :  { %3955 = vmatpush1.bf16.msra.mxu1 %v5629_v43  ;;  %3986 = vmatprep.mubr.bf16.mxu1 %v5916_v0 }
 0xafb   :  { %3956 = vmatprep.subr.bf16.mxu1 %v5634_v48  ;;  %v3659_v52 = vmax.f32 %v3656_v15, 0.0 }
 0xafd   :  { %v3662_v54 = vpack.c.bf16 %v3659_v52, %v3659_v52 }
 0xafe   :  { %3957 = vmatpush1.bf16.msra.mxu1 %v5632_v6 }
 0xaff   :  { %4825 = vmatprep.subr.msk.bf16.mxu1 %vm3906_vm6, %v5635_v60 }
 0xb02   :  { %3959 = vmatpush1.bf16.msra.mxu1 %v3908_v53 }
 0xb03   :  { %5019 = vmatprep.subr.bf16.mxu1 %v5917_v33 }
 0xb05   :  { %4826 = vmatmul.mubr.msk.bf16.vlgmr.msra.gmra.mrb[44].mxu1 %vm3902_vm7, %v3662_v54 }
 0xb06   :  { %5027 = vmatprep.mubr.msk.bf16.mxu1 %vm5918_vm1, %v5917_v33  ;;  %5020 = vmatpush3.bf16.msra.mxu1 %v5660_v18 }
 0xb07   :  { %5021 = vmatprep.subr.bf16.mxu1 %v5917_v33 }
 0xb0a   :  { %5022 = vmatpush3.bf16.msra.mxu1 %v5661_v19 }
 0xb0b   :  { %5023 = vmatprep.subr.bf16.mxu1 %v5917_v33 }
 0xb0e   :  { %5024 = vmatpush3.bf16.msra.mxu1 %v5662_v35 }
 0xb0f   :  { %5025 = vmatprep.subr.bf16.mxu1 %v5917_v33 }
 0xb12   :  { %5026 = vmatpush3.bf16.msra.mxu1 %v5663_v36 }
 0xbd8   :  { %v3988_v62 = vpop.f32.mrb[44].mxu1 }
 0xbd9   :  { %v5033_v63 = vadd.f32 %v3988_v62, %v3707_v59  ;;  %v3990_v1 = vpop.f32.mrb[45].mxu1 }
 0xbda   :  { %v5034_v2 = vadd.f32 %v3990_v1, %v3711_v61  ;;  %v3992_v3 = vpop.f32.mrb[46].mxu1 }
 0xbdb   :  { %v3995_v4 = vmax.f32 %v5033_v63, 0.0  ;;  %v3993_v5 = vpop.f32.mrb[47].mxu1 }
 0xbdc   :  { %v3996_v7 = vmax.f32 %v5034_v2, 0.0 }
 0xbdd   :  { %v3997_v10 = vpack.c.bf16 %v3995_v4, %v3995_v4 }
 0xbde   :  { %v3998_v0 = vpack.c.bf16 %v3996_v7, %v3996_v7 }
 0xbe0   :  { %4840 = vmatprep.mubr.msk.bf16.mxu0 %vm4101_vm8, %v3998_v0 }
 0xbe1   :  { %4141 = vmatmul.mubr.bf16.vlgmr.msra.gmra.mrb[40].mxu0 %v3997_v10 }
 0xbe2   :  { %4994 = vmatpush3.bf16.msra.mxu0 %v5651_v8  ;;  %4995 = vmatprep.mubr.msk.bf16.mxu0 %vm5918_vm1, %v5917_v33 }
 0xbe3   :  { %4999 = vmatprep.subr.bf16.mxu0 %v5917_v33 }
 0xbe9   :  { %4996 = vmatmul.mubr.msk.bf16.vlgmr.msra.gmra.mrb[44].mxu0 %vm2457_vm3, %v6632_v20  ;;  %v5655_v20 = vld [vmem:[%s6851_s13 + $0x18] sm:$0xff]  }
 0xbea   :  { %5000 = vmatpush3.bf16.msra.mxu0 %v5652_v9  ;;  %5015 = vmatprep.mubr.msk.bf16.mxu0 %vm5918_vm1, %v5917_v33 }
 0xbeb   :  { %5001 = vmatprep.subr.bf16.mxu0 %v5917_v33 }
 0xbee   :  { %5002 = vmatpush3.bf16.msra.mxu0 %v5653_v12 }
 0xbef   :  { %5003 = vmatprep.subr.bf16.mxu0 %v5917_v33 }
 0xbf2   :  { %5004 = vmatpush3.bf16.msra.mxu0 %v5654_v13 }
 0xbf3   :  { %5005 = vmatprep.subr.bf16.mxu0 %v5917_v33 }
 0xbf6   :  { %5006 = vmatpush3.bf16.msra.mxu0 %v5655_v20 }
 0xbf7   :  { %5007 = vmatprep.subr.bf16.mxu0 %v5917_v33 }
 0xbfa   :  { %5008 = vmatpush3.bf16.msra.mxu0 %v5656_v11 }
 0xbfb   :  { %5009 = vmatprep.subr.bf16.mxu0 %v5917_v33 }
 0xbfe   :  { %5010 = vmatpush3.bf16.msra.mxu0 %v5657_v14 }
 0xbff   :  { %5011 = vmatprep.subr.bf16.mxu0 %v5917_v33 }
 0xc02   :  { %5012 = vmatpush3.bf16.msra.mxu0 %v5658_v16 }
 0xc03   :  { %5013 = vmatprep.subr.bf16.mxu0 %v5917_v33 }
 0xc06   :  { %5014 = vmatpush3.bf16.msra.mxu0 %v5659_v17 }
 0xcb4   :  { %v4142_v21 = vpop.f32.mrb[40].mxu0 }
 0xcb5   :  { %v4144_v22 = vpop.f32.mrb[41].mxu0 }
 0xcb6   :  { %v4145_v29 = vpop.f32.mrb[42].mxu0 }
 0xcb7   :  { %v4146_v23 = vpop.f32.mrb[43].mxu0 }
 0xcbc   :  { %v4188_v24 = vpop.f32.mrb[44].mxu0 }
 0xcbd   :  { %v4189_v26 = vadd.f32 %v4188_v24, %v4142_v21  ;;  %v4997_v27 = vpop.f32.mrb[45].mxu0 }
 0xcbe   :  { %v4191_v28 = vpop.f32.mrb[46].mxu0 }
 0xcbf   :  { %v4195_v30 = vadd.f32 %v4194_v25, %v4189_v26  ;;  %v4998_v31 = vpop.f32.mrb[47].mxu0 }
 0xcc1   :  { %v4196_v32 = vmax.f32 %v4195_v30, 0.0 }
 0xcc3   :  { %v4197_v34 = vpack.c.bf16 %v4196_v32, %v4196_v32 }
 0xcc5   :  { %5016 = vmatmul.mubr.bf16.vlgmr.msra.gmra.mrb[48].mxu0 %v4197_v34 }
 0xd98   :  { %v4297_v38 = vpop.f32.mrb[48].mxu0 }
 0xd99   :  { %v4298_v39 = vadd.f32 %v4297_v38, %v4214_v37  ;;  %v5017_v40 = vpop.f32.mrb[49].mxu0 }
 0xd9a   :  { %v4300_v41 = vpop.f32.mrb[50].mxu0 }
 0xd9b   :  { %v4303_v42 = vmax.f32 %v4298_v39, 0.0  ;;  %v5018_v43 = vpop.f32.mrb[51].mxu0 }
 0xd9d   :  { %v4304_v44 = vpack.c.bf16 %v4303_v42, %v4303_v42 }
 0xd9f   :  { %5028 = vmatmul.mubr.msk.bf16.vlgmr.msra.gmra.mrb[48].mxu1 %vm1654_vm2, %v4304_v44 }
 0xe72   :  { %v4375_v46 = vpop.f32.mrb[48].mxu1 }
 0xe73   :  { %v4376_v47 = vadd.f32 %v4375_v46, %v4313_v45  ;;  %v5029_v48 = vpop.f32.mrb[49].mxu1 }
 0xe74   :  { %v4378_v33 = vpop.f32.mrb[50].mxu1 }
 0xe75   :  { %v4381_v50 = vmax.f32 %v4376_v47, 0.0  ;;  %v5030_v6 = vpop.f32.mrb[51].mxu1 }
 0xe77   :  { %v4389_v15 = vmul.f32 %v4856_v49, %v4381_v50 }
 0xe79   :  { %v4390_v60 = vsel %vm268_vm0, %v4389_v15, 0.0 }
 0xe7a   :  { %4391 = vadd.xlane.f32.xlu0 %v4390_v60 }
 0xf07   :  { %v4392_v52 = vpop.xlane.xlu0 %4391 }
 0xf08   :  { %v4394_v53 = vadd.f32 %v4393_v51, %v4392_v52 }
 0xf0a   :  { %4396 = vst.msk [vmem:[%s6877_s11] sm:$0xff] %vm4395_vm9, %v4394_v53 }
 0xf0b   :  { %4401 = vsyncpa [#allocation3], 1 }
 0xf0c   :  { %4402 = vsyncpa [#allocation5], 1 }
 0xf0d   :  { %4403 = vsyncpa [#allocation8], 1 }
 0xf0e   :  { %4404 = vsyncpa [#allocation11], 1 }
 0xf0f   :  { %4405 = vsyncpa [#allocation14], 1 }
 0xf10   :  { %4406 = vsyncpa [#allocation17], 1 }

</bundles_post_ra>
